<compile_context>
chip_gen: v7x
topology: tpu7x:2x2x1
jax: 0.10.0
libtpu: 0.0.40
codegen_flags: <defaults>
</compile_context>

<pallas_src>
import functools
import math

import jax
import jax.numpy as jnp
from jax import lax
from jax.experimental import pallas as pl
from jax.experimental.pallas import tpu as pltpu

# --- model hyper-params (consistent with the PyTorch module defaults) ---
HIDDEN = 64          # BERT4Rec default hidden_size
HEADS = 2            # head_num
SESSION_LEN = 20     # module-level session_length
ITEM_NUM = 50
POS_NUM = 20
LN_EPS = 1e-5        # torch.nn.LayerNorm default eps
INIT_RANGE = 0.02


def _layer_norm(x, gamma, beta):
    mu = jnp.mean(x, axis=-1, keepdims=True)
    d = x - mu
    var = jnp.mean(d * d, axis=-1, keepdims=True)
    return d * lax.rsqrt(var + LN_EPS) * gamma + beta


def _gelu(x):
    # TODO(synk): torch F.gelu defaults to the exact erf formulation; Mosaic has no erf
    # lowering, so the tanh approximation is used here (max abs err ~3e-3).
    c = 0.7978845608028654  # sqrt(2/pi)
    return 0.5 * x * (1.0 + jnp.tanh(c * (x + 0.044715 * x * x * x)))


def bert4rec_kernel(ids_ref, pos_ref, itab_ref, pvec_ref,
                    wkv_ref, wq_ref, wc_ref, w1_ref, w2_ref, wp_ref, iout_ref,
                    o_ref, *, last_idx, heads):
    TB, LP = ids_ref.shape
    H = pos_ref.shape[1]
    Vp = itab_ref.shape[0]
    HD = H // heads
    FF = w1_ref.shape[1]
    IP = o_ref.shape[1]
    R = TB * LP

    # packed small params:
    # rows = [g_emb, b_emb, b_kv(2H), bq(scaled), g_tl, b_tl, b1, b2, bp, out_bias]
    pv = pvec_ref[...]
    g_emb, b_emb = pv[0:1, :H], pv[1:2, :H]
    b_kv = pv[2:3, :2 * H]
    bq = pv[3:4, :H]
    g_tl, b_tl = pv[4:5, :H], pv[5:6, :H]
    b1 = pv[6:7, :FF]
    b2 = pv[7:8, :H]
    bp = pv[8:9, :H]
    out_b = pv[9:10, :IP]

    # ---- in-kernel embedding gather (one-hot @ table on the MXU) + embedding LN ----
    ids = ids_ref[...]                                           # (TB, LP) int32
    ids3 = ids[:, :, None]                                       # (TB, LP, 1)
    validf = (ids != 0).astype(jnp.float32)                      # (TB, LP)  lane layout
    valid3 = (ids3 != 0).astype(jnp.float32)                     # (TB, LP, 1)

    onehot = (lax.broadcasted_iota(jnp.int32, (TB, LP, Vp), 2) == ids3)
    onehot = onehot.astype(jnp.float32).reshape(R, Vp)           # (R, Vp)
    item_e = jnp.dot(onehot, itab_ref[...],
                     preferred_element_type=jnp.float32)         # (R, H) exact gather
    x3 = (item_e.reshape(TB, LP, H) + pos_ref[...][None, :, :]) * valid3
    x0_3 = _layer_norm(x3, g_emb, b_emb)                         # (TB, LP, H) f32
    x0b = x0_3.reshape(R, H).astype(jnp.bfloat16)

    # ---- K / V projections for all positions (fused N = 2H matmul) ----
    kv = jnp.dot(x0b, wkv_ref[...], preferred_element_type=jnp.float32) + b_kv   # (R, 2H)
    k3 = kv[:, :H].reshape(TB, LP, H)
    v3 = kv[:, H:].reshape(TB, LP, H)

    # ---- last-position readout path only (reference consumes bert(...)[:, -1, :]) ----
    sel_l = (lax.broadcasted_iota(jnp.int32, (1, LP), 1) == last_idx).astype(jnp.float32)
    sel_s = (lax.broadcasted_iota(jnp.int32, (1, LP, 1), 1) == last_idx).astype(jnp.float32)
    x_last = jnp.sum(x0_3 * sel_s, axis=1)                       # (TB, H)
    valid_last = jnp.sum(validf * sel_l, axis=1, keepdims=True)  # (TB, 1)

    # 1/sqrt(HD) softmax scale folded into wq / bq at prepare_params time.
    q = jnp.dot(x_last.astype(jnp.bfloat16), wq_ref[...],
                preferred_element_type=jnp.float32) + bq         # (TB, H)

    # keep[b, j] = valid_last[b] * valid[b, j] * (j != last_idx)   (reference new_mask)
    keep = valid_last * validf * (1.0 - sel_l)                   # (TB, LP)
    neg = (1.0 - keep) * 1.0e12

    head_outs = []
    for h in range(heads):
        hs = slice(h * HD, (h + 1) * HD)
        qh = q[:, hs]                                            # (TB, HD)
        s = jnp.sum(qh[:, None, :] * k3[:, :, hs], axis=-1)      # (TB, LP)
        e = s - neg                                              # energies - new_mask*1e12
        m = jnp.max(e, axis=-1, keepdims=True)
        p = jnp.exp(e - m)
        w = (p / jnp.sum(p, axis=-1, keepdims=True)) * keep      # weights * (1 - new_mask)
        head_outs.append(jnp.sum(w[:, :, None] * v3[:, :, hs], axis=1))   # (TB, HD)
    attn = jnp.dot(jnp.concatenate(head_outs, axis=-1).astype(jnp.bfloat16),
                   wc_ref[...], preferred_element_type=jnp.float32)        # (TB, H)

    # ---- TransformerLayer tail + projection + lane-dense item logits (TB rows only) ----
    x1 = _layer_norm(x_last + attn, g_tl, b_tl)
    h1 = _gelu(jnp.dot(x1.astype(jnp.bfloat16), w1_ref[...],
                       preferred_element_type=jnp.float32) + b1)
    ffn = jnp.dot(h1.astype(jnp.bfloat16), w2_ref[...],
                  preferred_element_type=jnp.float32) + b2
    x2 = _layer_norm(x1 + ffn, g_tl, b_tl)

    proj = _gelu(jnp.dot(x2.astype(jnp.bfloat16), wp_ref[...],
                         preferred_element_type=jnp.float32) + bp)
    o_ref[...] = jnp.dot(proj.astype(jnp.bfloat16), iout_ref[...],
                         preferred_element_type=jnp.float32) + out_b


def init_params(key, hidden=HIDDEN, item_num=ITEM_NUM, pos_num=POS_NUM):
    ks = jax.random.split(key, 9)
    nrm = lambda k, s: (INIT_RANGE * jax.random.normal(k, s)).astype(jnp.float32)
    z = lambda s: jnp.zeros(s, jnp.float32)
    o = lambda s: jnp.ones(s, jnp.float32)
    item_table = nrm(ks[0], (item_num + 2, hidden)).at[0].set(0.0)   # padding_idx=0 zeroed
    pos_table = nrm(ks[1], (pos_num + 2, hidden)).at[0].set(0.0)
    return dict(
        item_table=item_table, pos_table=pos_table,
        g_emb=o((hidden,)), b_emb=z((hidden,)),                      # BERT4Rec.layer_norm
        wq=nrm(ks[2], (hidden, hidden)), bq=z((hidden,)),            # weights stored [in, out]
        wk=nrm(ks[3], (hidden, hidden)), bk=z((hidden,)),
        wv=nrm(ks[4], (hidden, hidden)), bv=z((hidden,)),
        wc=nrm(ks[5], (hidden, hidden)),                             # concat_weight (no bias)
        g_tl=o((hidden,)), b_tl=z((hidden,)),                        # TransformerLayer.layer_norm
        w1=nrm(ks[6], (hidden, 4 * hidden)), b1=z((4 * hidden,)),
        w2=nrm(ks[7], (4 * hidden, hidden)), b2=z((hidden,)),
        wp=nrm(ks[8], (hidden, hidden)), bp=z((hidden,)),            # projection
        out_bias=z((item_num,)),
    )


def _pack_row(v, width):
    v = jnp.asarray(v, jnp.float32).reshape(-1)
    return jnp.pad(v, (0, width - v.shape[0]))


def prepare_params(params, heads=HEADS):
    """One-time packing of the torch-style params into kernel-ready arrays."""
    H = params['wq'].shape[0]
    HD = H // heads
    item_num = params['out_bias'].shape[-1]
    IP = ((item_num + 127) // 128) * 128                  # lane-dense logits width
    FF = params['w1'].shape[1]
    W = max(FF, IP, 2 * H)
    scale = 1.0 / math.sqrt(HD)                           # folded into Wq / bq

    rows = [
        params['g_emb'], params['b_emb'],
        jnp.concatenate([params['bk'], params['bv']]),    # fused K|V bias
        params['bq'] * scale,
        params['g_tl'], params['b_tl'],
        params['b1'], params['b2'], params['bp'],
        jnp.pad(params['out_bias'].reshape(-1), (0, IP - item_num)),
    ]
    pvec = jnp.stack([_pack_row(r, W) for r in rows])     # (10, W) f32
    pvec = jnp.pad(pvec, ((0, 16 - pvec.shape[0]), (0, 0)))

    V = params['item_table'].shape[0]
    Vp = ((V + 7) // 8) * 8
    item_table_p = jnp.pad(params['item_table'], ((0, Vp - V), (0, 0))).astype(jnp.float32)
    item_out = jnp.pad(params['item_table'][1:-1].T, ((0, 0), (0, IP - item_num)))

    bf = lambda a: a.astype(jnp.bfloat16)
    return dict(
        item_table=item_table_p,                                           # (Vp, H) f32
        pos_table=params['pos_table'].astype(jnp.float32),
        pvec=pvec,
        wkv=bf(jnp.concatenate([params['wk'], params['wv']], axis=1)),     # (H, 2H)
        wq=bf(params['wq'] * scale),
        wc=bf(params['wc']), w1=bf(params['w1']), w2=bf(params['w2']), wp=bf(params['wp']),
        item_out=bf(item_out),                                             # (H, IP)
        item_num=item_num, hidden=H, item_pad=IP, heads=heads,
    )


def bert4rec_forward(session, kparams, *, block_b=128):
    # block_b: batch tile; ~64 is a good choice on v5e, 128+ on v6e/v7x (attention and
    # VMEM use are now linear in the tile, footprint is only a few MB per step).
    B, L = session.shape
    H = kparams['hidden']
    item_num = kparams['item_num']
    IP = kparams['item_pad']
    heads = kparams['heads']

    if block_b % 8 != 0:
        raise ValueError("block_b must be a multiple of 8")
    TB = block_b if B > block_b else max(8, ((B + 7) // 8) * 8)
    Bp = ((B + TB - 1) // TB) * TB
    nb = Bp // TB
    LP = ((L + 7) // 8) * 8                  # pad seq len to a sublane multiple (20 -> 24)

    # glue: only int32 ids (4 B/token) and a tiny (LP, H) position-embedding constant
    # cross HBM; item embedding gather / masking / attention mask are done in-kernel.
    sess = jnp.pad(session.astype(jnp.int32), ((0, Bp - B), (0, LP - L)))
    pos_emb = jnp.pad(kparams['pos_table'][:L], ((0, LP - L), (0, 0)))     # (LP, H) f32

    kern = functools.partial(bert4rec_kernel, last_idx=L - 1, heads=heads)

    out = pl.pallas_call(
        kern,
        out_shape=jax.ShapeDtypeStruct((Bp, IP), jnp.float32),
        grid_spec=pltpu.PrefetchScalarGridSpec(
            num_scalar_prefetch=0,
            grid=(nb,),
            in_specs=[
                pl.BlockSpec((TB, LP), lambda b: (b, 0)),                  # session ids
                pl.BlockSpec(pos_emb.shape, lambda b: (0, 0)),             # position emb
                pl.BlockSpec(kparams['item_table'].shape, lambda b: (0, 0)),
                pl.BlockSpec(kparams['pvec'].shape, lambda b: (0, 0)),     # packed biases/LN
                pl.BlockSpec(kparams['wkv'].shape, lambda b: (0, 0)),
                pl.BlockSpec(kparams['wq'].shape, lambda b: (0, 0)),
                pl.BlockSpec(kparams['wc'].shape, lambda b: (0, 0)),
                pl.BlockSpec(kparams['w1'].shape, lambda b: (0, 0)),
                pl.BlockSpec(kparams['w2'].shape, lambda b: (0, 0)),
                pl.BlockSpec(kparams['wp'].shape, lambda b: (0, 0)),
                pl.BlockSpec(kparams['item_out'].shape, lambda b: (0, 0)),
            ],
            out_specs=pl.BlockSpec((TB, IP), lambda b: (b, 0)),
        ),
        compiler_params=pltpu.CompilerParams(dimension_semantics=("parallel",)),
    )(sess, pos_emb, kparams['item_table'], kparams['pvec'], kparams['wkv'],
      kparams['wq'], kparams['wc'], kparams['w1'], kparams['w2'], kparams['wp'],
      kparams['item_out'])

    return out[:B, :item_num]


def bert4rec_reference(session, params, heads=HEADS):
    """Pure-JAX f32 mirror of the PyTorch module (same tanh-gelu) for verification."""
    H = params['wq'].shape[0]
    HD = H // heads
    B, L = session.shape
    valid = (session != 0).astype(jnp.float32)                       # (B, L)
    item_e = jnp.take(params['item_table'], session, axis=0)
    pos_e = params['pos_table'][jnp.arange(L)][None]
    x0 = _layer_norm((item_e + pos_e) * valid[:, :, None], params['g_emb'], params['b_emb'])
    q = x0 @ params['wq'] + params['bq']
    k = x0 @ params['wk'] + params['bk']
    v = x0 @ params['wv'] + params['bv']
    keep = valid[:, :, None] * valid[:, None, :] * (1.0 - jnp.eye(L))[None]
    outs = []
    for h in range(heads):
        sl = slice(h * HD, (h + 1) * HD)
        s = jnp.einsum('bqd,bkd->bqk', q[..., sl], k[..., sl]) / jnp.sqrt(float(HD))
        e = s - (1.0 - keep) * 1.0e12
        w = jax.nn.softmax(e, axis=-1) * keep
        outs.append(jnp.einsum('bqk,bkd->bqd', w, v[..., sl]))
    attn = jnp.concatenate(outs, axis=-1) @ params['wc']
    x1 = _layer_norm(x0 + attn, params['g_tl'], params['b_tl'])
    f = _gelu(x1 @ params['w1'] + params['b1']) @ params['w2'] + params['b2']
    x2 = _layer_norm(x1 + f, params['g_tl'], params['b_tl'])
    proj = _gelu(x2[:, -1, :] @ params['wp'] + params['bp'])
    return proj @ params['item_table'][1:-1].T + params['out_bias']


if __name__ == "__main__":
    key = jax.random.PRNGKey(0)
    pkey, skey = jax.random.split(key)
    params = init_params(pkey)
    kparams = prepare_params(params)    # one-time packing / fusion / bf16 casts

    B, L = 2, SESSION_LEN
    session = jax.random.randint(skey, (B, L), 1, ITEM_NUM + 1, dtype=jnp.int32)
    session = session.at[0, :3].set(0)  # a few padding tokens to exercise the attention mask

    result = bert4rec_forward(session, kparams)
    jax.block_until_ready(result)
    assert result.shape == (B, ITEM_NUM) and result.dtype == jnp.float32

    # loose correctness check vs. the f32 pure-JAX reference (bf16 matmuls inside the kernel)
    ref = bert4rec_reference(session, params)
    err = float(jnp.max(jnp.abs(result - ref)))
    assert err < 1e-2, f"max |kernel - reference| = {err}"

    print("KERNEL_OK")
</pallas_src>

<mosaic_0001>
module attributes {stable_mosaic.version = 11 : i64} {
  func.func @bert4rec_kernel(%arg0: i32, %arg1: memref<8x24xi32, #tpu.memory_space<vmem>>, %arg2: memref<24x64xf32, #tpu.memory_space<vmem>>, %arg3: memref<56x64xf32, #tpu.memory_space<vmem>>, %arg4: memref<16x256xf32, #tpu.memory_space<vmem>>, %arg5: memref<64x128xbf16, #tpu.memory_space<vmem>>, %arg6: memref<64x64xbf16, #tpu.memory_space<vmem>>, %arg7: memref<64x64xbf16, #tpu.memory_space<vmem>>, %arg8: memref<64x256xbf16, #tpu.memory_space<vmem>>, %arg9: memref<256x64xbf16, #tpu.memory_space<vmem>>, %arg10: memref<64x64xbf16, #tpu.memory_space<vmem>>, %arg11: memref<64x128xbf16, #tpu.memory_space<vmem>>, %arg12: memref<8x128xf32, #tpu.memory_space<vmem>>) attributes {dimension_semantics = [#tpu.dimension_semantics<parallel>], iteration_bounds = array<i64: 1>, scalar_prefetch = 0 : i64, scratch_operands = 0 : i64, tpu.core_type = #tpu.core_type<tc>, window_params = [{transform_indices = @transform_0, window_bounds = array<i64: 8, 24>}, {pipeline_mode = #tpu.pipeline_mode<synchronous>, transform_indices = @transform_1, window_bounds = array<i64: 24, 64>}, {pipeline_mode = #tpu.pipeline_mode<synchronous>, transform_indices = @transform_2, window_bounds = array<i64: 56, 64>}, {pipeline_mode = #tpu.pipeline_mode<synchronous>, transform_indices = @transform_3, window_bounds = array<i64: 16, 256>}, {pipeline_mode = #tpu.pipeline_mode<synchronous>, transform_indices = @transform_4, window_bounds = array<i64: 64, 128>}, {pipeline_mode = #tpu.pipeline_mode<synchronous>, transform_indices = @transform_5, window_bounds = array<i64: 64, 64>}, {pipeline_mode = #tpu.pipeline_mode<synchronous>, transform_indices = @transform_6, window_bounds = array<i64: 64, 64>}, {pipeline_mode = #tpu.pipeline_mode<synchronous>, transform_indices = @transform_7, window_bounds = array<i64: 64, 256>}, {pipeline_mode = #tpu.pipeline_mode<synchronous>, transform_indices = @transform_8, window_bounds = array<i64: 256, 64>}, {pipeline_mode = #tpu.pipeline_mode<synchronous>, transform_indices = @transform_9, window_bounds = array<i64: 64, 64>}, {pipeline_mode = #tpu.pipeline_mode<synchronous>, transform_indices = @transform_10, window_bounds = array<i64: 64, 128>}, {transform_indices = @transform_11, window_bounds = array<i64: 8, 128>}]} {
    %c0 = arith.constant 0 : index
    %c0_0 = arith.constant 0 : index
    %0 = vector.load %arg4[%c0, %c0_0] : memref<16x256xf32, #tpu.memory_space<vmem>>, vector<16x256xf32>
    %1 = vector.extract_strided_slice %0 {offsets = [0, 0], sizes = [1, 64], strides = [1, 1]} : vector<16x256xf32> to vector<1x64xf32>
    %2 = vector.extract_strided_slice %0 {offsets = [1, 0], sizes = [1, 64], strides = [1, 1]} : vector<16x256xf32> to vector<1x64xf32>
    %3 = vector.extract_strided_slice %0 {offsets = [2, 0], sizes = [1, 128], strides = [1, 1]} : vector<16x256xf32> to vector<1x128xf32>
    %4 = vector.extract_strided_slice %0 {offsets = [3, 0], sizes = [1, 64], strides = [1, 1]} : vector<16x256xf32> to vector<1x64xf32>
    %5 = vector.extract_strided_slice %0 {offsets = [4, 0], sizes = [1, 64], strides = [1, 1]} : vector<16x256xf32> to vector<1x64xf32>
    %6 = vector.extract_strided_slice %0 {offsets = [5, 0], sizes = [1, 64], strides = [1, 1]} : vector<16x256xf32> to vector<1x64xf32>
    %7 = vector.extract_strided_slice %0 {offsets = [6, 0], sizes = [1, 256], strides = [1, 1]} : vector<16x256xf32> to vector<1x256xf32>
    %8 = vector.extract_strided_slice %0 {offsets = [7, 0], sizes = [1, 64], strides = [1, 1]} : vector<16x256xf32> to vector<1x64xf32>
    %9 = vector.extract_strided_slice %0 {offsets = [8, 0], sizes = [1, 64], strides = [1, 1]} : vector<16x256xf32> to vector<1x64xf32>
    %10 = vector.extract_strided_slice %0 {offsets = [9, 0], sizes = [1, 128], strides = [1, 1]} : vector<16x256xf32> to vector<1x128xf32>
    %c0_1 = arith.constant 0 : index
    %c0_2 = arith.constant 0 : index
    %11 = vector.load %arg1[%c0_1, %c0_2] : memref<8x24xi32, #tpu.memory_space<vmem>>, vector<8x24xi32>
    %12 = vector.shape_cast %11 : vector<8x24xi32> to vector<8x24x1xi32>
    %c0_i32 = arith.constant 0 : i32
    %13 = vector.broadcast %c0_i32 : i32 to vector<8x24xi32>
    %14 = arith.cmpi ne, %11, %13 : vector<8x24xi32>
    %15 = arith.extui %14 : vector<8x24xi1> to vector<8x24xi32>
    %16 = arith.sitofp %15 : vector<8x24xi32> to vector<8x24xf32>
    %c0_i32_3 = arith.constant 0 : i32
    %17 = vector.broadcast %c0_i32_3 : i32 to vector<8x24x1xi32>
    %18 = arith.cmpi ne, %12, %17 : vector<8x24x1xi32>
    %19 = arith.extui %18 : vector<8x24x1xi1> to vector<8x24x1xi32>
    %20 = arith.sitofp %19 : vector<8x24x1xi32> to vector<8x24x1xf32>
    %21 = tpu.iota {dimensions = array<i32: 2>} : vector<8x24x56xi32>
    %22 = vector.broadcast %12 : vector<8x24x1xi32> to vector<8x24x56xi32>
    %23 = arith.cmpi eq, %21, %22 : vector<8x24x56xi32>
    %24 = arith.extui %23 : vector<8x24x56xi1> to vector<8x24x56xi32>
    %25 = arith.sitofp %24 : vector<8x24x56xi32> to vector<8x24x56xf32>
    %26 = vector.shape_cast %25 : vector<8x24x56xf32> to vector<192x56xf32>
    %c0_4 = arith.constant 0 : index
    %c0_5 = arith.constant 0 : index
    %27 = vector.load %arg3[%c0_4, %c0_5] : memref<56x64xf32, #tpu.memory_space<vmem>>, vector<56x64xf32>
    %cst = arith.constant dense<0.000000e+00> : vector<192x64xf32>
    %28 = tpu.matmul %26, %27, %cst {dimension_numbers = #tpu.dot_dimension_numbers<[1], [0], [0], [1], [0, 0, 1, 1], [], []>} : vector<192x56xf32>, vector<56x64xf32>, vector<192x64xf32> -> vector<192x64xf32>
    %29 = vector.shape_cast %28 : vector<192x64xf32> to vector<8x24x64xf32>
    %c0_6 = arith.constant 0 : index
    %c0_7 = arith.constant 0 : index
    %30 = vector.load %arg2[%c0_6, %c0_7] : memref<24x64xf32, #tpu.memory_space<vmem>>, vector<24x64xf32>
    %31 = vector.shape_cast %30 : vector<24x64xf32> to vector<1x24x64xf32>
    %32 = vector.broadcast %31 : vector<1x24x64xf32> to vector<8x24x64xf32>
    %33 = arith.addf %29, %32 : vector<8x24x64xf32>
    %34 = vector.broadcast %20 : vector<8x24x1xf32> to vector<8x24x64xf32>
    %35 = arith.mulf %33, %34 : vector<8x24x64xf32>
    %cst_8 = arith.constant dense<0.000000e+00> : vector<8x24xf32>
    %36 = vector.multi_reduction <add>, %35, %cst_8 [2] : vector<8x24x64xf32> to vector<8x24xf32>
    %37 = vector.shape_cast %36 : vector<8x24xf32> to vector<8x24x1xf32>
    %cst_9 = arith.constant 6.400000e+01 : f32
    %38 = vector.broadcast %cst_9 : f32 to vector<8x24x1xf32>
    %39 = arith.divf %37, %38 : vector<8x24x1xf32>
    %40 = vector.broadcast %39 : vector<8x24x1xf32> to vector<8x24x64xf32>
    %41 = arith.subf %35, %40 : vector<8x24x64xf32>
    %42 = arith.mulf %41, %41 : vector<8x24x64xf32>
    %cst_10 = arith.constant dense<0.000000e+00> : vector<8x24xf32>
    %43 = vector.multi_reduction <add>, %42, %cst_10 [2] : vector<8x24x64xf32> to vector<8x24xf32>
    %44 = vector.shape_cast %43 : vector<8x24xf32> to vector<8x24x1xf32>
    %cst_11 = arith.constant 6.400000e+01 : f32
    %45 = vector.broadcast %cst_11 : f32 to vector<8x24x1xf32>
    %46 = arith.divf %44, %45 : vector<8x24x1xf32>
    %cst_12 = arith.constant 9.99999974E-6 : f32
    %47 = vector.broadcast %cst_12 : f32 to vector<8x24x1xf32>
    %48 = arith.addf %46, %47 : vector<8x24x1xf32>
    %49 = math.rsqrt %48 : vector<8x24x1xf32>
    %50 = vector.broadcast %49 : vector<8x24x1xf32> to vector<8x24x64xf32>
    %51 = arith.mulf %41, %50 : vector<8x24x64xf32>
    %52 = vector.shape_cast %1 : vector<1x64xf32> to vector<1x1x64xf32>
    %53 = vector.broadcast %52 : vector<1x1x64xf32> to vector<8x24x64xf32>
    %54 = arith.mulf %51, %53 : vector<8x24x64xf32>
    %55 = vector.shape_cast %2 : vector<1x64xf32> to vector<1x1x64xf32>
    %56 = vector.broadcast %55 : vector<1x1x64xf32> to vector<8x24x64xf32>
    %57 = arith.addf %54, %56 : vector<8x24x64xf32>
    %58 = vector.shape_cast %57 : vector<8x24x64xf32> to vector<192x64xf32>
    %59 = arith.truncf %58 : vector<192x64xf32> to vector<192x64xbf16>
    %c0_13 = arith.constant 0 : index
    %c0_14 = arith.constant 0 : index
    %60 = vector.load %arg5[%c0_13, %c0_14] : memref<64x128xbf16, #tpu.memory_space<vmem>>, vector<64x128xbf16>
    %cst_15 = arith.constant dense<0.000000e+00> : vector<192x128xf32>
    %61 = tpu.matmul %59, %60, %cst_15 {dimension_numbers = #tpu.dot_dimension_numbers<[1], [0], [0], [1], [0, 0, 1, 1], [], []>} : vector<192x64xbf16>, vector<64x128xbf16>, vector<192x128xf32> -> vector<192x128xf32>
    %62 = vector.broadcast %3 : vector<1x128xf32> to vector<192x128xf32>
    %63 = arith.addf %61, %62 : vector<192x128xf32>
    %64 = vector.extract_strided_slice %63 {offsets = [0, 0], sizes = [192, 64], strides = [1, 1]} : vector<192x128xf32> to vector<192x64xf32>
    %65 = vector.shape_cast %64 : vector<192x64xf32> to vector<8x24x64xf32>
    %66 = vector.extract_strided_slice %63 {offsets = [0, 64], sizes = [192, 64], strides = [1, 1]} : vector<192x128xf32> to vector<192x64xf32>
    %67 = vector.shape_cast %66 : vector<192x64xf32> to vector<8x24x64xf32>
    %68 = tpu.iota {dimensions = array<i32: 1>} : vector<1x24xi32>
    %c19_i32 = arith.constant 19 : i32
    %69 = vector.broadcast %c19_i32 : i32 to vector<1x24xi32>
    %70 = arith.cmpi eq, %68, %69 : vector<1x24xi32>
    %71 = arith.extui %70 : vector<1x24xi1> to vector<1x24xi32>
    %72 = arith.sitofp %71 : vector<1x24xi32> to vector<1x24xf32>
    %73 = tpu.iota {dimensions = array<i32: 1>} : vector<1x24x1xi32>
    %c19_i32_16 = arith.constant 19 : i32
    %74 = vector.broadcast %c19_i32_16 : i32 to vector<1x24x1xi32>
    %75 = arith.cmpi eq, %73, %74 : vector<1x24x1xi32>
    %76 = arith.extui %75 : vector<1x24x1xi1> to vector<1x24x1xi32>
    %77 = arith.sitofp %76 : vector<1x24x1xi32> to vector<1x24x1xf32>
    %78 = vector.broadcast %77 : vector<1x24x1xf32> to vector<8x24x64xf32>
    %79 = arith.mulf %57, %78 : vector<8x24x64xf32>
    %cst_17 = arith.constant dense<0.000000e+00> : vector<8x64xf32>
    %80 = vector.multi_reduction <add>, %79, %cst_17 [1] : vector<8x24x64xf32> to vector<8x64xf32>
    %81 = vector.broadcast %72 : vector<1x24xf32> to vector<8x24xf32>
    %82 = arith.mulf %16, %81 : vector<8x24xf32>
    %cst_18 = arith.constant dense<0.000000e+00> : vector<8xf32>
    %83 = vector.multi_reduction <add>, %82, %cst_18 [1] : vector<8x24xf32> to vector<8xf32>
    %84 = vector.shape_cast %83 : vector<8xf32> to vector<8x1xf32>
    %85 = arith.truncf %80 : vector<8x64xf32> to vector<8x64xbf16>
    %c0_19 = arith.constant 0 : index
    %c0_20 = arith.constant 0 : index
    %86 = vector.load %arg6[%c0_19, %c0_20] : memref<64x64xbf16, #tpu.memory_space<vmem>>, vector<64x64xbf16>
    %cst_21 = arith.constant dense<0.000000e+00> : vector<8x64xf32>
    %87 = tpu.matmul %85, %86, %cst_21 {dimension_numbers = #tpu.dot_dimension_numbers<[1], [0], [0], [1], [0, 0, 1, 1], [], []>} : vector<8x64xbf16>, vector<64x64xbf16>, vector<8x64xf32> -> vector<8x64xf32>
    %88 = vector.broadcast %4 : vector<1x64xf32> to vector<8x64xf32>
    %89 = arith.addf %87, %88 : vector<8x64xf32>
    %90 = vector.broadcast %84 : vector<8x1xf32> to vector<8x24xf32>
    %91 = arith.mulf %90, %16 : vector<8x24xf32>
    %cst_22 = arith.constant 1.000000e+00 : f32
    %92 = vector.broadcast %cst_22 : f32 to vector<1x24xf32>
    %93 = arith.subf %92, %72 : vector<1x24xf32>
    %94 = vector.broadcast %93 : vector<1x24xf32> to vector<8x24xf32>
    %95 = arith.mulf %91, %94 : vector<8x24xf32>
    %cst_23 = arith.constant 1.000000e+00 : f32
    %96 = vector.broadcast %cst_23 : f32 to vector<8x24xf32>
    %97 = arith.subf %96, %95 : vector<8x24xf32>
    %cst_24 = arith.constant 9.99999995E+11 : f32
    %98 = vector.broadcast %cst_24 : f32 to vector<8x24xf32>
    %99 = arith.mulf %97, %98 : vector<8x24xf32>
    %100 = vector.extract_strided_slice %89 {offsets = [0, 0], sizes = [8, 32], strides = [1, 1]} : vector<8x64xf32> to vector<8x32xf32>
    %101 = vector.shape_cast %100 : vector<8x32xf32> to vector<8x1x32xf32>
    %102 = vector.extract_strided_slice %65 {offsets = [0, 0, 0], sizes = [8, 24, 32], strides = [1, 1, 1]} : vector<8x24x64xf32> to vector<8x24x32xf32>
    %103 = vector.broadcast %101 : vector<8x1x32xf32> to vector<8x24x32xf32>
    %104 = arith.mulf %103, %102 : vector<8x24x32xf32>
    %cst_25 = arith.constant dense<0.000000e+00> : vector<8x24xf32>
    %105 = vector.multi_reduction <add>, %104, %cst_25 [2] : vector<8x24x32xf32> to vector<8x24xf32>
    %106 = arith.subf %105, %99 : vector<8x24xf32>
    %cst_26 = arith.constant dense<0xFF800000> : vector<8xf32>
    %107 = vector.multi_reduction <maximumf>, %106, %cst_26 [1] : vector<8x24xf32> to vector<8xf32>
    %108 = vector.shape_cast %107 : vector<8xf32> to vector<8x1xf32>
    %109 = vector.broadcast %108 : vector<8x1xf32> to vector<8x24xf32>
    %110 = arith.subf %106, %109 : vector<8x24xf32>
    %111 = math.exp %110 : vector<8x24xf32>
    %cst_27 = arith.constant dense<0.000000e+00> : vector<8xf32>
    %112 = vector.multi_reduction <add>, %111, %cst_27 [1] : vector<8x24xf32> to vector<8xf32>
    %113 = vector.shape_cast %112 : vector<8xf32> to vector<8x1xf32>
    %114 = vector.broadcast %113 : vector<8x1xf32> to vector<8x24xf32>
    %115 = arith.divf %111, %114 : vector<8x24xf32>
    %116 = arith.mulf %115, %95 : vector<8x24xf32>
    %117 = vector.shape_cast %116 : vector<8x24xf32> to vector<8x24x1xf32>
    %118 = vector.extract_strided_slice %67 {offsets = [0, 0, 0], sizes = [8, 24, 32], strides = [1, 1, 1]} : vector<8x24x64xf32> to vector<8x24x32xf32>
    %119 = vector.broadcast %117 : vector<8x24x1xf32> to vector<8x24x32xf32>
    %120 = arith.mulf %119, %118 : vector<8x24x32xf32>
    %cst_28 = arith.constant dense<0.000000e+00> : vector<8x32xf32>
    %121 = vector.multi_reduction <add>, %120, %cst_28 [1] : vector<8x24x32xf32> to vector<8x32xf32>
    %122 = vector.extract_strided_slice %89 {offsets = [0, 32], sizes = [8, 32], strides = [1, 1]} : vector<8x64xf32> to vector<8x32xf32>
    %123 = vector.shape_cast %122 : vector<8x32xf32> to vector<8x1x32xf32>
    %124 = vector.extract_strided_slice %65 {offsets = [0, 0, 32], sizes = [8, 24, 32], strides = [1, 1, 1]} : vector<8x24x64xf32> to vector<8x24x32xf32>
    %125 = vector.broadcast %123 : vector<8x1x32xf32> to vector<8x24x32xf32>
    %126 = arith.mulf %125, %124 : vector<8x24x32xf32>
    %cst_29 = arith.constant dense<0.000000e+00> : vector<8x24xf32>
    %127 = vector.multi_reduction <add>, %126, %cst_29 [2] : vector<8x24x32xf32> to vector<8x24xf32>
    %128 = arith.subf %127, %99 : vector<8x24xf32>
    %cst_30 = arith.constant dense<0xFF800000> : vector<8xf32>
    %129 = vector.multi_reduction <maximumf>, %128, %cst_30 [1] : vector<8x24xf32> to vector<8xf32>
    %130 = vector.shape_cast %129 : vector<8xf32> to vector<8x1xf32>
    %131 = vector.broadcast %130 : vector<8x1xf32> to vector<8x24xf32>
    %132 = arith.subf %128, %131 : vector<8x24xf32>
    %133 = math.exp %132 : vector<8x24xf32>
    %cst_31 = arith.constant dense<0.000000e+00> : vector<8xf32>
    %134 = vector.multi_reduction <add>, %133, %cst_31 [1] : vector<8x24xf32> to vector<8xf32>
    %135 = vector.shape_cast %134 : vector<8xf32> to vector<8x1xf32>
    %136 = vector.broadcast %135 : vector<8x1xf32> to vector<8x24xf32>
    %137 = arith.divf %133, %136 : vector<8x24xf32>
    %138 = arith.mulf %137, %95 : vector<8x24xf32>
    %139 = vector.shape_cast %138 : vector<8x24xf32> to vector<8x24x1xf32>
    %140 = vector.extract_strided_slice %67 {offsets = [0, 0, 32], sizes = [8, 24, 32], strides = [1, 1, 1]} : vector<8x24x64xf32> to vector<8x24x32xf32>
    %141 = vector.broadcast %139 : vector<8x24x1xf32> to vector<8x24x32xf32>
    %142 = arith.mulf %141, %140 : vector<8x24x32xf32>
    %cst_32 = arith.constant dense<0.000000e+00> : vector<8x32xf32>
    %143 = vector.multi_reduction <add>, %142, %cst_32 [1] : vector<8x24x32xf32> to vector<8x32xf32>
    %144 = tpu.concatenate %121, %143 in 1 : vector<8x32xf32>, vector<8x32xf32> -> vector<8x64xf32>
    %145 = arith.truncf %144 : vector<8x64xf32> to vector<8x64xbf16>
    %c0_33 = arith.constant 0 : index
    %c0_34 = arith.constant 0 : index
    %146 = vector.load %arg7[%c0_33, %c0_34] : memref<64x64xbf16, #tpu.memory_space<vmem>>, vector<64x64xbf16>
    %cst_35 = arith.constant dense<0.000000e+00> : vector<8x64xf32>
    %147 = tpu.matmul %145, %146, %cst_35 {dimension_numbers = #tpu.dot_dimension_numbers<[1], [0], [0], [1], [0, 0, 1, 1], [], []>} : vector<8x64xbf16>, vector<64x64xbf16>, vector<8x64xf32> -> vector<8x64xf32>
    %148 = arith.addf %80, %147 : vector<8x64xf32>
    %cst_36 = arith.constant dense<0.000000e+00> : vector<8xf32>
    %149 = vector.multi_reduction <add>, %148, %cst_36 [1] : vector<8x64xf32> to vector<8xf32>
    %150 = vector.shape_cast %149 : vector<8xf32> to vector<8x1xf32>
    %cst_37 = arith.constant 6.400000e+01 : f32
    %151 = vector.broadcast %cst_37 : f32 to vector<8x1xf32>
    %152 = arith.divf %150, %151 : vector<8x1xf32>
    %153 = vector.broadcast %152 : vector<8x1xf32> to vector<8x64xf32>
    %154 = arith.subf %148, %153 : vector<8x64xf32>
    %155 = arith.mulf %154, %154 : vector<8x64xf32>
    %cst_38 = arith.constant dense<0.000000e+00> : vector<8xf32>
    %156 = vector.multi_reduction <add>, %155, %cst_38 [1] : vector<8x64xf32> to vector<8xf32>
    %157 = vector.shape_cast %156 : vector<8xf32> to vector<8x1xf32>
    %cst_39 = arith.constant 6.400000e+01 : f32
    %158 = vector.broadcast %cst_39 : f32 to vector<8x1xf32>
    %159 = arith.divf %157, %158 : vector<8x1xf32>
    %cst_40 = arith.constant 9.99999974E-6 : f32
    %160 = vector.broadcast %cst_40 : f32 to vector<8x1xf32>
    %161 = arith.addf %159, %160 : vector<8x1xf32>
    %162 = math.rsqrt %161 : vector<8x1xf32>
    %163 = vector.broadcast %162 : vector<8x1xf32> to vector<8x64xf32>
    %164 = arith.mulf %154, %163 : vector<8x64xf32>
    %165 = vector.broadcast %5 : vector<1x64xf32> to vector<8x64xf32>
    %166 = arith.mulf %164, %165 : vector<8x64xf32>
    %167 = vector.broadcast %6 : vector<1x64xf32> to vector<8x64xf32>
    %168 = arith.addf %166, %167 : vector<8x64xf32>
    %169 = arith.truncf %168 : vector<8x64xf32> to vector<8x64xbf16>
    %c0_41 = arith.constant 0 : index
    %c0_42 = arith.constant 0 : index
    %170 = vector.load %arg8[%c0_41, %c0_42] : memref<64x256xbf16, #tpu.memory_space<vmem>>, vector<64x256xbf16>
    %cst_43 = arith.constant dense<0.000000e+00> : vector<8x256xf32>
    %171 = tpu.matmul %169, %170, %cst_43 {dimension_numbers = #tpu.dot_dimension_numbers<[1], [0], [0], [1], [0, 0, 1, 1], [], []>} : vector<8x64xbf16>, vector<64x256xbf16>, vector<8x256xf32> -> vector<8x256xf32>
    %172 = vector.broadcast %7 : vector<1x256xf32> to vector<8x256xf32>
    %173 = arith.addf %171, %172 : vector<8x256xf32>
    %cst_44 = arith.constant 5.000000e-01 : f32
    %174 = vector.broadcast %cst_44 : f32 to vector<8x256xf32>
    %175 = arith.mulf %174, %173 : vector<8x256xf32>
    %cst_45 = arith.constant 4.471500e-02 : f32
    %176 = vector.broadcast %cst_45 : f32 to vector<8x256xf32>
    %177 = arith.mulf %176, %173 : vector<8x256xf32>
    %178 = arith.mulf %177, %173 : vector<8x256xf32>
    %179 = arith.mulf %178, %173 : vector<8x256xf32>
    %180 = arith.addf %173, %179 : vector<8x256xf32>
    %cst_46 = arith.constant 0.797884583 : f32
    %181 = vector.broadcast %cst_46 : f32 to vector<8x256xf32>
    %182 = arith.mulf %181, %180 : vector<8x256xf32>
    %183 = math.tanh %182 : vector<8x256xf32>
    %cst_47 = arith.constant 1.000000e+00 : f32
    %184 = vector.broadcast %cst_47 : f32 to vector<8x256xf32>
    %185 = arith.addf %184, %183 : vector<8x256xf32>
    %186 = arith.mulf %175, %185 : vector<8x256xf32>
    %187 = arith.truncf %186 : vector<8x256xf32> to vector<8x256xbf16>
    %c0_48 = arith.constant 0 : index
    %c0_49 = arith.constant 0 : index
    %188 = vector.load %arg9[%c0_48, %c0_49] : memref<256x64xbf16, #tpu.memory_space<vmem>>, vector<256x64xbf16>
    %cst_50 = arith.constant dense<0.000000e+00> : vector<8x64xf32>
    %189 = tpu.matmul %187, %188, %cst_50 {dimension_numbers = #tpu.dot_dimension_numbers<[1], [0], [0], [1], [0, 0, 1, 1], [], []>} : vector<8x256xbf16>, vector<256x64xbf16>, vector<8x64xf32> -> vector<8x64xf32>
    %190 = vector.broadcast %8 : vector<1x64xf32> to vector<8x64xf32>
    %191 = arith.addf %189, %190 : vector<8x64xf32>
    %192 = arith.addf %168, %191 : vector<8x64xf32>
    %cst_51 = arith.constant dense<0.000000e+00> : vector<8xf32>
    %193 = vector.multi_reduction <add>, %192, %cst_51 [1] : vector<8x64xf32> to vector<8xf32>
    %194 = vector.shape_cast %193 : vector<8xf32> to vector<8x1xf32>
    %cst_52 = arith.constant 6.400000e+01 : f32
    %195 = vector.broadcast %cst_52 : f32 to vector<8x1xf32>
    %196 = arith.divf %194, %195 : vector<8x1xf32>
    %197 = vector.broadcast %196 : vector<8x1xf32> to vector<8x64xf32>
    %198 = arith.subf %192, %197 : vector<8x64xf32>
    %199 = arith.mulf %198, %198 : vector<8x64xf32>
    %cst_53 = arith.constant dense<0.000000e+00> : vector<8xf32>
    %200 = vector.multi_reduction <add>, %199, %cst_53 [1] : vector<8x64xf32> to vector<8xf32>
    %201 = vector.shape_cast %200 : vector<8xf32> to vector<8x1xf32>
    %cst_54 = arith.constant 6.400000e+01 : f32
    %202 = vector.broadcast %cst_54 : f32 to vector<8x1xf32>
    %203 = arith.divf %201, %202 : vector<8x1xf32>
    %cst_55 = arith.constant 9.99999974E-6 : f32
    %204 = vector.broadcast %cst_55 : f32 to vector<8x1xf32>
    %205 = arith.addf %203, %204 : vector<8x1xf32>
    %206 = math.rsqrt %205 : vector<8x1xf32>
    %207 = vector.broadcast %206 : vector<8x1xf32> to vector<8x64xf32>
    %208 = arith.mulf %198, %207 : vector<8x64xf32>
    %209 = vector.broadcast %5 : vector<1x64xf32> to vector<8x64xf32>
    %210 = arith.mulf %208, %209 : vector<8x64xf32>
    %211 = vector.broadcast %6 : vector<1x64xf32> to vector<8x64xf32>
    %212 = arith.addf %210, %211 : vector<8x64xf32>
    %213 = arith.truncf %212 : vector<8x64xf32> to vector<8x64xbf16>
    %c0_56 = arith.constant 0 : index
    %c0_57 = arith.constant 0 : index
    %214 = vector.load %arg10[%c0_56, %c0_57] : memref<64x64xbf16, #tpu.memory_space<vmem>>, vector<64x64xbf16>
    %cst_58 = arith.constant dense<0.000000e+00> : vector<8x64xf32>
    %215 = tpu.matmul %213, %214, %cst_58 {dimension_numbers = #tpu.dot_dimension_numbers<[1], [0], [0], [1], [0, 0, 1, 1], [], []>} : vector<8x64xbf16>, vector<64x64xbf16>, vector<8x64xf32> -> vector<8x64xf32>
    %216 = vector.broadcast %9 : vector<1x64xf32> to vector<8x64xf32>
    %217 = arith.addf %215, %216 : vector<8x64xf32>
    %cst_59 = arith.constant 5.000000e-01 : f32
    %218 = vector.broadcast %cst_59 : f32 to vector<8x64xf32>
    %219 = arith.mulf %218, %217 : vector<8x64xf32>
    %cst_60 = arith.constant 4.471500e-02 : f32
    %220 = vector.broadcast %cst_60 : f32 to vector<8x64xf32>
    %221 = arith.mulf %220, %217 : vector<8x64xf32>
    %222 = arith.mulf %221, %217 : vector<8x64xf32>
    %223 = arith.mulf %222, %217 : vector<8x64xf32>
    %224 = arith.addf %217, %223 : vector<8x64xf32>
    %cst_61 = arith.constant 0.797884583 : f32
    %225 = vector.broadcast %cst_61 : f32 to vector<8x64xf32>
    %226 = arith.mulf %225, %224 : vector<8x64xf32>
    %227 = math.tanh %226 : vector<8x64xf32>
    %cst_62 = arith.constant 1.000000e+00 : f32
    %228 = vector.broadcast %cst_62 : f32 to vector<8x64xf32>
    %229 = arith.addf %228, %227 : vector<8x64xf32>
    %230 = arith.mulf %219, %229 : vector<8x64xf32>
    %231 = arith.truncf %230 : vector<8x64xf32> to vector<8x64xbf16>
    %c0_63 = arith.constant 0 : index
    %c0_64 = arith.constant 0 : index
    %232 = vector.load %arg11[%c0_63, %c0_64] : memref<64x128xbf16, #tpu.memory_space<vmem>>, vector<64x128xbf16>
    %cst_65 = arith.constant dense<0.000000e+00> : vector<8x128xf32>
    %233 = tpu.matmul %231, %232, %cst_65 {dimension_numbers = #tpu.dot_dimension_numbers<[1], [0], [0], [1], [0, 0, 1, 1], [], []>} : vector<8x64xbf16>, vector<64x128xbf16>, vector<8x128xf32> -> vector<8x128xf32>
    %234 = vector.broadcast %10 : vector<1x128xf32> to vector<8x128xf32>
    %235 = arith.addf %233, %234 : vector<8x128xf32>
    %c0_66 = arith.constant 0 : index
    %c0_67 = arith.constant 0 : index
    %236 = vector.load %arg12[%c0_66, %c0_67] : memref<8x128xf32, #tpu.memory_space<vmem>>, vector<8x128xf32>
    tpu.vector_store %arg12[%c0_66, %c0_67], %235 {strides = array<i32>} : memref<8x128xf32, #tpu.memory_space<vmem>>, vector<8x128xf32>,
    return
  }
  func.func @transform_0(%arg0: i32) -> (i32, i32) {
    %c0_i32 = arith.constant 0 : i32
    %c0_i32_0 = arith.constant 0 : i32
    return %arg0, %c0_i32 : i32, i32
  }
  func.func @transform_1(%arg0: i32) -> (i32, i32) {
    %c0_i32 = arith.constant 0 : i32
    %c0_i32_0 = arith.constant 0 : i32
    %c0_i32_1 = arith.constant 0 : i32
    return %c0_i32, %c0_i32_0 : i32, i32
  }
  func.func @transform_2(%arg0: i32) -> (i32, i32) {
    %c0_i32 = arith.constant 0 : i32
    %c0_i32_0 = arith.constant 0 : i32
    %c0_i32_1 = arith.constant 0 : i32
    return %c0_i32, %c0_i32_0 : i32, i32
  }
  func.func @transform_3(%arg0: i32) -> (i32, i32) {
    %c0_i32 = arith.constant 0 : i32
    %c0_i32_0 = arith.constant 0 : i32
    %c0_i32_1 = arith.constant 0 : i32
    return %c0_i32, %c0_i32_0 : i32, i32
  }
  func.func @transform_4(%arg0: i32) -> (i32, i32) {
    %c0_i32 = arith.constant 0 : i32
    %c0_i32_0 = arith.constant 0 : i32
    %c0_i32_1 = arith.constant 0 : i32
    return %c0_i32, %c0_i32_0 : i32, i32
  }
  func.func @transform_5(%arg0: i32) -> (i32, i32) {
    %c0_i32 = arith.constant 0 : i32
    %c0_i32_0 = arith.constant 0 : i32
    %c0_i32_1 = arith.constant 0 : i32
    return %c0_i32, %c0_i32_0 : i32, i32
  }
  func.func @transform_6(%arg0: i32) -> (i32, i32) {
    %c0_i32 = arith.constant 0 : i32
    %c0_i32_0 = arith.constant 0 : i32
    %c0_i32_1 = arith.constant 0 : i32
    return %c0_i32, %c0_i32_0 : i32, i32
  }
  func.func @transform_7(%arg0: i32) -> (i32, i32) {
    %c0_i32 = arith.constant 0 : i32
    %c0_i32_0 = arith.constant 0 : i32
    %c0_i32_1 = arith.constant 0 : i32
    return %c0_i32, %c0_i32_0 : i32, i32
  }
  func.func @transform_8(%arg0: i32) -> (i32, i32) {
    %c0_i32 = arith.constant 0 : i32
    %c0_i32_0 = arith.constant 0 : i32
    %c0_i32_1 = arith.constant 0 : i32
    return %c0_i32, %c0_i32_0 : i32, i32
  }
  func.func @transform_9(%arg0: i32) -> (i32, i32) {
    %c0_i32 = arith.constant 0 : i32
    %c0_i32_0 = arith.constant 0 : i32
    %c0_i32_1 = arith.constant 0 : i32
    return %c0_i32, %c0_i32_0 : i32, i32
  }
  func.func @transform_10(%arg0: i32) -> (i32, i32) {
    %c0_i32 = arith.constant 0 : i32
    %c0_i32_0 = arith.constant 0 : i32
    %c0_i32_1 = arith.constant 0 : i32
    return %c0_i32, %c0_i32_0 : i32, i32
  }
  func.func @transform_11(%arg0: i32) -> (i32, i32) {
    %c0_i32 = arith.constant 0 : i32
    %c0_i32_0 = arith.constant 0 : i32
    return %arg0, %c0_i32 : i32, i32
  }
}

</mosaic_0001>

<bundles_post_ra>
// kernel: tpu_custom_call.1
= control target key start
LH: loop header
LB: loop body
LE: loop exit
PB: predicated region body
PF: predicated region fallthrough
CT: control target
= control target key end

     0   :  { %16 = vsyncpa [#allocation3], 0  ;;  %s8203_s0 = inlined_call_operand.hbm [shape: s32[8,24], index: 0, kind: input, shape index: {}]   ;;  %s8204_s1 = inlined_call_operand.hbm [shape: f32[24,64], index: 1, kind: input, shape index: {}]   ;;  %s8205_s2 = inlined_call_operand.vmem [shape: f32[56,64], index: 2, kind: input, shape index: {}]   ;;  %s8206_s3 = inlined_call_operand.vmem [shape: f32[16,256], index: 3, kind: input, shape index: {}]   ;;  %s8207_s4 = inlined_call_operand.vmem [shape: bf16[64,128], index: 4, kind: input, shape index: {}]   ;;  %s8208_s5 = inlined_call_operand.hbm [shape: bf16[64,64], index: 5, kind: input, shape index: {}]   ;;  %s8209_s6 = inlined_call_operand.hbm [shape: bf16[64,64], index: 6, kind: input, shape index: {}]   ;;  %s8210_s7 = inlined_call_operand.vmem [shape: bf16[64,256], index: 7, kind: input, shape index: {}]   ;;  %s8211_s8 = inlined_call_operand.vmem [shape: bf16[256,64], index: 8, kind: input, shape index: {}]   ;;  %s8212_s9 = inlined_call_operand.vmem [shape: bf16[64,64], index: 9, kind: input, shape index: {}]   ;;  %s8213_s10 = inlined_call_operand.hbm [shape: bf16[64,128], index: 10, kind: input, shape index: {}]   ;;  %s8214_s11 = inlined_call_operand.hbm [shape: f32[8,128], index: 11, kind: output, shape index: {}]  }
   0x1   :  { %17 = vsyncpa [#allocation6], 0 }
   0x2   :  { %18 = vsyncpa [#allocation9], 0 }
   0x3   :  { %19 = vsyncpa [#allocation4], 0  ;;  %s5738_s17 = smov [#allocation5]   ;;  %s5598_s21 = scalar_lea.hbm %s8204_s1, 384 }
   0x4   :  { %s35_s18 = sshll.u32 %s5738_s17, 4  ;;  %p5599_p0 = scmp.ne.s32.totalorder %s8204_s1, %s5598_s21  ;;  %s36_s18 = int_to_ptr.vmem [resolvable:$true] %s35_s18 }
   0x5   :  { %p5602_p1 = scmp.lt.u32.totalorder %s5598_s21, %s8204_s1 }
   0x7   :  { %p5604_p2 = pnand %p5602_p1, %p5599_p0 }
   0x9   :  { %5607 = shalt.err (!%p5604_p2)
}
   0xa   :  { %s5608_s26 = scalar_lea.vmem %s36_s18, 384  ;;  %p5613_p4 = scmp.lt.s32.totalorder %s36_s18, %s36_s18 }
   0xb   :  { %p5609_p3 = scmp.ne.s32.totalorder %s36_s18, %s5608_s26  ;;  %p5614_p5 = scmp.lt.s32.totalorder %s5608_s26, %s5608_s26 }
   0xd   :  { %p5615_p6 = por %p5614_p5, %p5613_p4 }
   0xf   :  { %p5616_p7 = pnand %p5615_p6, %p5609_p3 }
  0x11   :  { %5619 = shalt.err (!%p5616_p7)
}
  0x12   :  { %s5739_s27 = smov 128   ;;  %s5740_s28 = smov 8  }
  0x13   :  { %41 = dma.hbm_to_vmem [thread:$0]  %s8204_s1, 384, %s36_s18, [#allocation6], %s5739_s27, %s5739_s27, %s5740_s28  }
  0x14   :  { %s5741_s12 = smov [#allocation8]   ;;  %s5742_s14 = smov [#allocation2]  }
  0x15   :  { %s65_s13 = sshll.u32 %s5741_s12, 4  ;;  %s26_s15 = sshll.u32 %s5742_s14, 4  ;;  %s66_s13 = int_to_ptr.vmem [resolvable:$true] %s65_s13  ;;  %s27_s15 = int_to_ptr.vmem [resolvable:$true] %s26_s15 }
  0x16   :  { %s5620_s19 = scalar_lea.hbm %s8209_s6, 512 }
  0x17   :  { %p5621_p8 = scmp.ne.s32.totalorder %s8209_s6, %s5620_s19  ;;  %p5624_p9 = scmp.lt.u32.totalorder %s5620_s19, %s8209_s6 }
  0x19   :  { %p5626_p10 = pnand %p5624_p9, %p5621_p8 }
  0x1b   :  { %5629 = shalt.err (!%p5626_p10)
}
  0x1c   :  { %s5630_s1 = scalar_lea.vmem %s66_s13, 512  ;;  %p5635_p12 = scmp.lt.s32.totalorder %s66_s13, %s66_s13 }
  0x1d   :  { %p5631_p11 = scmp.ne.s32.totalorder %s66_s13, %s5630_s1  ;;  %p5636_p13 = scmp.lt.s32.totalorder %s5630_s1, %s5630_s1 }
  0x1f   :  { %p5637_p0 = por %p5636_p13, %p5635_p12 }
  0x21   :  { %p5638_p1 = pnand %p5637_p0, %p5631_p11 }
  0x23   :  { %5641 = shalt.err (!%p5638_p1)
}
  0x24   :  { %s5743_s18 = smov 64   ;;  %s5744_s24 = smov 4  }
  0x25   :  { %71 = dma.hbm_to_vmem [thread:$0]  %s8209_s6, 512, %s66_s13, [#allocation9], %s5743_s18, %s5743_s18, %s5744_s24  }
  0x26   :  { %s5642_s29 = scalar_lea.hbm %s8203_s0, 128 }
  0x27   :  { %p5643_p2 = scmp.ne.s32.totalorder %s8203_s0, %s5642_s29  ;;  %p5646_p3 = scmp.lt.u32.totalorder %s5642_s29, %s8203_s0 }
  0x29   :  { %p5648_p4 = pnand %p5646_p3, %p5643_p2 }
  0x2b   :  { %5651 = shalt.err (!%p5648_p4)
}
  0x2c   :  { %s5652_s17 = scalar_lea.vmem %s27_s15, 128  ;;  %p5657_p6 = scmp.lt.s32.totalorder %s27_s15, %s27_s15 }
  0x2d   :  { %p5653_p5 = scmp.ne.s32.totalorder %s27_s15, %s5652_s17  ;;  %p5658_p7 = scmp.lt.s32.totalorder %s5652_s17, %s5652_s17 }
  0x2f   :  { %p5659_p8 = por %p5658_p7, %p5657_p6 }
  0x31   :  { %p5660_p9 = pnand %p5659_p8, %p5653_p5 }
  0x33   :  { %5663 = shalt.err (!%p5660_p9)
}
  0x34   :  { %29 = dma.hbm_to_vmem [thread:$0]  %s8203_s0, 128, %s27_s15, [#allocation3]  }
  0x35   :  { %s5745_s19 = smov [#allocation7]   ;;  %s5746_s21 = smov [#allocation10]  }
  0x36   :  { %s53_s20 = sshll.u32 %s5745_s19, 4  ;;  %s83_s22 = sshll.u32 %s5746_s21, 4  ;;  %s54_s20 = int_to_ptr.vmem [resolvable:$true] %s53_s20  ;;  %s84_s22 = int_to_ptr.vmem [resolvable:$true] %s83_s22 }
  0x37   :  { %s5664_s25 = scalar_lea.hbm %s8208_s5, 512 }
  0x38   :  { %p5665_p10 = scmp.ne.s32.totalorder %s8208_s5, %s5664_s25  ;;  %p5668_p11 = scmp.lt.u32.totalorder %s5664_s25, %s8208_s5 }
  0x3a   :  { %p5670_p12 = pnand %p5668_p11, %p5665_p10 }
  0x3c   :  { %5673 = shalt.err (!%p5670_p12)
}
  0x3d   :  { %s5674_s0 = scalar_lea.vmem %s54_s20, 512  ;;  %p5679_p0 = scmp.lt.s32.totalorder %s54_s20, %s54_s20 }
  0x3e   :  { %p5675_p13 = scmp.ne.s32.totalorder %s54_s20, %s5674_s0  ;;  %p5680_p1 = scmp.lt.s32.totalorder %s5674_s0, %s5674_s0 }
  0x40   :  { %p5681_p2 = por %p5680_p1, %p5679_p0 }
  0x42   :  { %p5682_p3 = pnand %p5681_p2, %p5675_p13 }
  0x44   :  { %5685 = shalt.err (!%p5682_p3)
}
  0x45   :  { %59 = dma.hbm_to_vmem [thread:$0]  %s8208_s5, 512, %s54_s20, [#allocation6], %s5743_s18, %s5743_s18, %s5744_s24  }
  0x46   :  { %s5686_s16 = scalar_lea.hbm %s8213_s10, 512 }
  0x47   :  { %p5687_p4 = scmp.ne.s32.totalorder %s8213_s10, %s5686_s16  ;;  %p5690_p5 = scmp.lt.u32.totalorder %s5686_s16, %s8213_s10 }
  0x49   :  { %p5692_p6 = pnand %p5690_p5, %p5687_p4 }
  0x4b   :  { %5695 = shalt.err (!%p5692_p6)
}
  0x4c   :  { %s5696_s21 = scalar_lea.vmem %s84_s22, 512  ;;  %p5701_p8 = scmp.lt.s32.totalorder %s84_s22, %s84_s22 }
  0x4d   :  { %p5697_p7 = scmp.ne.s32.totalorder %s84_s22, %s5696_s21  ;;  %p5702_p9 = scmp.lt.s32.totalorder %s5696_s21, %s5696_s21 }
  0x4f   :  { %p5703_p10 = por %p5702_p9, %p5701_p8 }
  0x51   :  { %p5704_p11 = pnand %p5703_p10, %p5697_p7 }
  0x53   :  { %5707 = shalt.err (!%p5704_p11)
}
  0x54   :  { %89 = dma.hbm_to_vmem [thread:$0]  %s8213_s10, 512, %s84_s22, [#allocation9], %s5743_s18, %s5743_s18, %s5744_s24  }
  0x55   :  { %5730 = dma.done.wait [#allocation3], 128  }
  0x56   :  { %5731 = vsyncadd [#allocation3], 4294967168 }
  0x57   :  { %5732 = dma.done.wait [#allocation6], 896  }
  0x58   :  { %5733 = vsyncadd [#allocation6], 4294966400 }
  0x59   :  { %5734 = dma.done.wait [#allocation9], 1024  }
  0x5a   :  { %5735 = vsyncadd [#allocation9], 4294966272  ;;  %v110_v0 = vlaneseq  ;;  %v5890_v4 = vld [vmem:[#allocation2] sm:$0xff]  ;;  %v380_v7 = vld [vmem:[%s8205_s2 + $0x8] sm:$0xff]  ;;  %v8215_v24 = vmov 0.0   ;;  %vm1407_vm2 = vcmask 195584  }
  0x5b   :  { %v379_v6 = vld [vmem:[%s8205_s2] sm:$0xff]  ;;  %v381_v9 = vld [vmem:[%s8205_s2 + $0x10] sm:$0xff]  ;;  %v382_v10 = vld [vmem:[%s8205_s2 + $0x18] sm:$0xff]  ;;  %vm230_vm0 = vcmp.ne.s32.totalorder %v5890_v4, 0  ;;  %vm386_vm3 = vcmask 457728   ;;  %s5750_s20 = smov 96  }
  0x5c   :  { %v5882_v1 = vshrl.u32 %v110_v0, 7  ;;  %v5329_v12 = vpack.c.bf16 %v380_v7, %v379_v6  ;;  %v383_v13 = vld [vmem:[%s8205_s2 + $0x20] sm:$0xff]  ;;  %v384_v14 = vld [vmem:[%s8205_s2 + $0x28] sm:$0xff]  ;;  %v5333_v15 = vpack.c.bf16 %v382_v10, %v381_v9  ;;  %v385_v19 = vld [vmem:[%s8205_s2 + $0x30] sm:$0xff]  ;;  %v5948_v30 = vand.u32 127, %v110_v0 }
  0x5d   :  { %v5337_v16 = vpack.c.bf16 %v384_v14, %v383_v13  ;;  %v5953_v31 = vsel %vm230_vm0, 1.0, %v8215_v24 }
  0x5e   :  { %v5885_v2 = vsub.s32 0, %v5882_v1  ;;  %v5888_v3 = vsub.s32 1, %v5882_v1  ;;  %v5901_v8 = vsub.s32 2, %v5882_v1  ;;  %5330 = vmatprep.subr.bf16.mxu0 %v5329_v12  ;;  %v5918_v17 = vsub.s32 3, %v5882_v1  ;;  %8356 = vst [vmem:[#allocation20_spill] sm:$0xff] %v5948_v30 }
  0x5f   :  { %5332 = vmatpush3.bf16.msra.mxu0 %v5329_v12  ;;  %v5926_v20 = vsub.s32 4, %v5882_v1  ;;  %v5929_v21 = vsub.s32 5, %v5882_v1  ;;  %v5932_v22 = vsub.s32 6, %v5882_v1  ;;  %v5944_v28 = vsub.s32 7, %v5882_v1 }
  0x60   :  { %v113_v5 = vrot.slane %v5890_v4, %v5885_v2  ;;  %v128_v11 = vrot.slane %v5890_v4, %v5888_v3  ;;  %5334 = vmatprep.subr.bf16.mxu0 %v5333_v15  ;;  %v143_v18 = vrot.slane %v5890_v4, %v5901_v8  ;;  %v158_v23 = vrot.slane %v5890_v4, %v5918_v17 }
  0x61   :  { %8352 = vst [vmem:[#allocation16_spill] sm:$0xff] %v5926_v20  ;;  %8353 = vst [vmem:[#allocation17_spill] sm:$0xff] %v5929_v21  ;;  %v173_v25 = vrot.slane %v5890_v4, %v5926_v20  ;;  %v188_v26 = vrot.slane %v5890_v4, %v5929_v21  ;;  %v203_v27 = vrot.slane %v5890_v4, %v5932_v22  ;;  %vm1278_vm1 = vcmp.eq.s32.totalorder %v5948_v30, 19 }
  0x62   :  { %115 = vbcast.lane.b32.xlu0 %v113_v5, 256  ;;  %123 = vbcast.lane.b32.xlu1 %v113_v5, 272  ;;  %8354 = vst [vmem:[#allocation18_spill] sm:$0xff] %v5932_v22  ;;  %8355 = vst [vmem:[#allocation19_spill] sm:$0xff] %v5944_v28  ;;  %v218_v29 = vrot.slane %v5890_v4, %v5944_v28  ;;  %v5956_v32 = vsel %vm1278_vm1, 1.0, %v8215_v24 }
  0x63   :  { %5336 = vmatpush3.bf16.msra.mxu0 %v5333_v15  ;;  %v1406_v33 = vmul.f32 %v5956_v32, %v5953_v31 }
  0x64   :  { %5338 = vmatprep.subr.bf16.mxu0 %v5337_v16 }
  0x65   :  { %v1408_v34 = vsel %vm1407_vm2, %v1406_v33, 0.0 }
  0x66   :  { %119 = vbcast.lane.b32.xlu0 %v113_v5, 264  ;;  %130 = vbcast.lane.b32.xlu1 %v128_v11, 256 }
  0x67   :  { %5340 = vmatpush3.bf16.msra.mxu0 %v5337_v16 }
  0x68   :  { %5211 = vmatprep.subr.mxu0 %v385_v19 }
  0x6a   :  { %134 = vbcast.lane.b32.xlu0 %v128_v11, 264  ;;  %138 = vbcast.lane.b32.xlu1 %v128_v11, 272 }
  0x6b   :  { %5212 = vmatpush3.msra.mxu0 %v385_v19 }
  0x6c   :  { %5281 = vmatprep.subr.bf16.mxu0 %v8215_v24 }
  0x6e   :  { %145 = vbcast.lane.b32.xlu0 %v143_v18, 256  ;;  %149 = vbcast.lane.b32.xlu1 %v143_v18, 264 }
  0x72   :  { %153 = vbcast.lane.b32.xlu0 %v143_v18, 272  ;;  %160 = vbcast.lane.b32.xlu1 %v158_v23, 256 }
  0x76   :  { %164 = vbcast.lane.b32.xlu0 %v158_v23, 264  ;;  %168 = vbcast.lane.b32.xlu1 %v158_v23, 272 }
  0x7a   :  { %175 = vbcast.lane.b32.xlu0 %v173_v25, 256  ;;  %179 = vbcast.lane.b32.xlu1 %v173_v25, 264 }
  0x7e   :  { %183 = vbcast.lane.b32.xlu0 %v173_v25, 272  ;;  %190 = vbcast.lane.b32.xlu1 %v188_v26, 256 }
  0x82   :  { %194 = vbcast.lane.b32.xlu0 %v188_v26, 264  ;;  %198 = vbcast.lane.b32.xlu1 %v188_v26, 272 }
  0x86   :  { %205 = vbcast.lane.b32.xlu0 %v203_v27, 256  ;;  %209 = vbcast.lane.b32.xlu1 %v203_v27, 264 }
  0x8a   :  { %213 = vbcast.lane.b32.xlu0 %v203_v27, 272  ;;  %220 = vbcast.lane.b32.xlu1 %v218_v29, 256 }
  0x8e   :  { %224 = vbcast.lane.b32.xlu0 %v218_v29, 264  ;;  %228 = vbcast.lane.b32.xlu1 %v218_v29, 272  ;;  %v1530_v29 = vsub.f32 1.0, %v5956_v32  ;;  %v6123_v32 = vld [vmem:[#allocation5] sm:$0xff] }
  0xb2   :  { %1409 = vadd.xlane.f32.xlu1 %v1408_v34 }
  0xd4   :  { %v5961_v35 = vpop.permute.xlu0 %115  ;;  %v5963_v36 = vpop.permute.xlu1 %123 }
  0xd5   :  { %vm307_vm4 = vcmp.eq.s32.totalorder %v5948_v30, %v5961_v35  ;;  %vm309_vm5 = vcmp.eq.s32.totalorder %v5948_v30, %v5963_v36 }
  0xd6   :  { %v4999_v37 = vsel %vm307_vm4, 1.0, %v8215_v24  ;;  %v5001_v40 = vsel %vm309_vm5, 1.0, %v8215_v24 }
  0xd7   :  { %5213 = vmatprep.mubr.msk.f32.mxu0 %vm386_vm3, %v4999_v37 }
  0xd8   :  { %v5971_v38 = vpop.permute.xlu0 %119  ;;  %v5973_v39 = vpop.permute.xlu1 %130 }
  0xd9   :  { %vm308_vm6 = vcmp.eq.s32.totalorder %v5948_v30, %v5971_v38  ;;  %vm310_vm7 = vcmp.eq.s32.totalorder %v5948_v30, %v5973_v39 }
  0xda   :  { %v5000_v41 = vsel %vm308_vm6, 1.0, %v8215_v24  ;;  %v5002_v42 = vsel %vm310_vm7, 1.0, %v8215_v24 }
  0xdb   :  { %5214 = vmatmul.mubr.msk.f32.vlgmr.msra.gmra.mrb[0].mxu0 %vm386_vm3, %v5000_v41 }
  0xdc   :  { %5216 = vmatprep.mubr.msk.f32.mxu0 %vm386_vm3, %v5001_v40  ;;  %v5984_v43 = vpop.permute.xlu0 %134  ;;  %v5986_v44 = vpop.permute.xlu1 %138 }
  0xdd   :  { %vm311_vm8 = vcmp.eq.s32.totalorder %v5948_v30, %v5984_v43  ;;  %vm312_vm9 = vcmp.eq.s32.totalorder %v5948_v30, %v5986_v44 }
  0xde   :  { %v5003_v45 = vsel %vm311_vm8, 1.0, %v8215_v24  ;;  %v5004_v46 = vsel %vm312_vm9, 1.0, %v8215_v24 }
  0xdf   :  { %5217 = vmatmul.mubr.msk.f32.gmra.mrb[2].mxu0 %vm386_vm3, %v5002_v42 }
  0xe0   :  { %5219 = vmatprep.mubr.msk.f32.mxu0 %vm386_vm3, %v5003_v45  ;;  %v5996_v47 = vpop.permute.xlu0 %145  ;;  %v5998_v48 = vpop.permute.xlu1 %149 }
  0xe1   :  { %vm313_vm10 = vcmp.eq.s32.totalorder %v5948_v30, %v5996_v47  ;;  %vm314_vm11 = vcmp.eq.s32.totalorder %v5948_v30, %v5998_v48 }
  0xe2   :  { %v5005_v49 = vsel %vm313_vm10, 1.0, %v8215_v24  ;;  %v5006_v50 = vsel %vm314_vm11, 1.0, %v8215_v24 }
  0xe3   :  { %5220 = vmatmul.mubr.msk.f32.gmra.mrb[4].mxu0 %vm386_vm3, %v5004_v46 }
  0xe4   :  { %5222 = vmatprep.mubr.msk.f32.mxu0 %vm386_vm3, %v5005_v49  ;;  %v6008_v51 = vpop.permute.xlu0 %153  ;;  %v6010_v52 = vpop.permute.xlu1 %160 }
  0xe5   :  { %vm315_vm12 = vcmp.eq.s32.totalorder %v5948_v30, %v6008_v51  ;;  %vm316_vm13 = vcmp.eq.s32.totalorder %v5948_v30, %v6010_v52 }
  0xe6   :  { %v5007_v53 = vsel %vm315_vm12, 1.0, %v8215_v24  ;;  %v5008_v54 = vsel %vm316_vm13, 1.0, %v8215_v24 }
  0xe7   :  { %5223 = vmatmul.mubr.msk.f32.gmra.mrb[6].mxu0 %vm386_vm3, %v5006_v50 }
  0xe8   :  { %5225 = vmatprep.mubr.msk.f32.mxu0 %vm386_vm3, %v5007_v53  ;;  %v6020_v55 = vpop.permute.xlu0 %164  ;;  %v6022_v56 = vpop.permute.xlu1 %168 }
  0xe9   :  { %vm317_vm14 = vcmp.eq.s32.totalorder %v5948_v30, %v6020_v55  ;;  %vm318_vm15 = vcmp.eq.s32.totalorder %v5948_v30, %v6022_v56 }
  0xea   :  { %v5009_v57 = vsel %vm317_vm14, 1.0, %v8215_v24  ;;  %v5010_v58 = vsel %vm318_vm15, 1.0, %v8215_v24  ;;  %vm233_vm14 = vcmp.ne.s32.totalorder %v5961_v35, 0  ;;  %vm695_vm15 = vcmask 523264  }
  0xeb   :  { %5226 = vmatmul.mubr.msk.f32.gmra.mrb[8].mxu0 %vm386_vm3, %v5008_v54 }
  0xec   :  { %5228 = vmatprep.mubr.msk.f32.mxu0 %vm386_vm3, %v5009_v57  ;;  %v6032_v59 = vpop.permute.xlu0 %175  ;;  %v6034_v60 = vpop.permute.xlu1 %179  ;;  %v6130_v57 = vld [vmem:[#allocation5 + $0x10] sm:$0xff] }
  0xed   :  { %vm319_vm0 = vcmp.eq.s32.totalorder %v5948_v30, %v6032_v59  ;;  %vm320_vm1 = vcmp.eq.s32.totalorder %v5948_v30, %v6034_v60 }
  0xee   :  { %v5011_v61 = vsel %vm319_vm0, 1.0, %v8215_v24  ;;  %v5012_v62 = vsel %vm320_vm1, 1.0, %v8215_v24  ;;  %vm236_vm0 = vcmp.ne.s32.totalorder %v5973_v39, 0  ;;  %vm235_vm1 = vcmp.ne.s32.totalorder %v5963_v36, 0 }
  0xef   :  { %5229 = vmatmul.mubr.msk.f32.gmra.mrb[10].mxu0 %vm386_vm3, %v5010_v58 }
  0xf0   :  { %5231 = vmatprep.mubr.msk.f32.mxu0 %vm386_vm3, %v5011_v61  ;;  %v6044_v63 = vpop.permute.xlu0 %183  ;;  %v6046_v0 = vpop.permute.xlu1 %190 }
  0xf1   :  { %vm321_vm4 = vcmp.eq.s32.totalorder %v5948_v30, %v6044_v63  ;;  %vm322_vm5 = vcmp.eq.s32.totalorder %v5948_v30, %v6046_v0 }
  0xf2   :  { %v5013_v4 = vsel %vm321_vm4, 1.0, %v8215_v24  ;;  %v5014_v5 = vsel %vm322_vm5, 1.0, %v8215_v24  ;;  %vm238_vm4 = vcmp.ne.s32.totalorder %v5986_v44, 0  ;;  %vm237_vm5 = vcmp.ne.s32.totalorder %v5984_v43, 0 }
  0xf3   :  { %5232 = vmatmul.mubr.msk.f32.gmra.mrb[12].mxu0 %vm386_vm3, %v5012_v62 }
  0xf4   :  { %5234 = vmatprep.mubr.msk.f32.mxu0 %vm386_vm3, %v5013_v4  ;;  %v6056_v6 = vpop.permute.xlu0 %194  ;;  %v6058_v7 = vpop.permute.xlu1 %198 }
  0xf5   :  { %vm323_vm6 = vcmp.eq.s32.totalorder %v5948_v30, %v6056_v6  ;;  %vm324_vm7 = vcmp.eq.s32.totalorder %v5948_v30, %v6058_v7 }
  0xf6   :  { %v5015_v9 = vsel %vm323_vm6, 1.0, %v8215_v24  ;;  %v5016_v10 = vsel %vm324_vm7, 1.0, %v8215_v24  ;;  %vm240_vm6 = vcmp.ne.s32.totalorder %v5998_v48, 0  ;;  %vm239_vm7 = vcmp.ne.s32.totalorder %v5996_v47, 0 }
  0xf7   :  { %5235 = vmatmul.mubr.msk.f32.gmra.mrb[14].mxu0 %vm386_vm3, %v5014_v5 }
  0xf8   :  { %5237 = vmatprep.mubr.msk.f32.mxu0 %vm386_vm3, %v5015_v9  ;;  %v6068_v11 = vpop.permute.xlu0 %205  ;;  %v6070_v12 = vpop.permute.xlu1 %209 }
  0xf9   :  { %vm325_vm8 = vcmp.eq.s32.totalorder %v5948_v30, %v6068_v11  ;;  %vm326_vm9 = vcmp.eq.s32.totalorder %v5948_v30, %v6070_v12 }
  0xfa   :  { %v5017_v13 = vsel %vm325_vm8, 1.0, %v8215_v24  ;;  %v5018_v14 = vsel %vm326_vm9, 1.0, %v8215_v24  ;;  %vm242_vm8 = vcmp.ne.s32.totalorder %v6010_v52, 0  ;;  %vm241_vm9 = vcmp.ne.s32.totalorder %v6008_v51, 0 }
  0xfb   :  { %5238 = vmatmul.mubr.msk.f32.gmra.mrb[16].mxu0 %vm386_vm3, %v5016_v10  ;;  %v4978_v10 = vsel %vm236_vm0, 1.0, %v8215_v24  ;;  %vm250_vm0 = vcmp.ne.s32.totalorder %v6058_v7, 0 }
  0xfc   :  { %5240 = vmatprep.mubr.msk.f32.mxu0 %vm386_vm3, %v5017_v13  ;;  %v6080_v15 = vpop.permute.xlu0 %213  ;;  %v6082_v16 = vpop.permute.xlu1 %220  ;;  %v4977_v13 = vsel %vm235_vm1, 1.0, %v8215_v24  ;;  %vm249_vm1 = vcmp.ne.s32.totalorder %v6056_v6, 0 }
  0xfd   :  { %vm327_vm10 = vcmp.eq.s32.totalorder %v5948_v30, %v6080_v15  ;;  %vm328_vm11 = vcmp.eq.s32.totalorder %v5948_v30, %v6082_v16 }
  0xfe   :  { %v5019_v18 = vsel %vm327_vm10, 1.0, %v8215_v24  ;;  %v5020_v19 = vsel %vm328_vm11, 1.0, %v8215_v24  ;;  %vm244_vm10 = vcmp.ne.s32.totalorder %v6022_v56, 0  ;;  %vm243_vm11 = vcmp.ne.s32.totalorder %v6020_v55, 0 }
  0xff   :  { %5241 = vmatmul.mubr.msk.f32.gmra.mrb[18].mxu0 %vm386_vm3, %v5018_v14 }
 0x100   :  { %5243 = vmatprep.mubr.msk.f32.mxu0 %vm386_vm3, %v5019_v18  ;;  %v6092_v23 = vpop.permute.xlu0 %224  ;;  %v6094_v25 = vpop.permute.xlu1 %228 }
 0x101   :  { %vm329_vm12 = vcmp.eq.s32.totalorder %v5948_v30, %v6092_v23  ;;  %vm330_vm13 = vcmp.eq.s32.totalorder %v5948_v30, %v6094_v25 }
 0x102   :  { %v5021_v26 = vsel %vm329_vm12, 1.0, %v8215_v24  ;;  %v5022_v27 = vsel %vm330_vm13, 1.0, %v8215_v24  ;;  %vm246_vm12 = vcmp.ne.s32.totalorder %v6034_v60, 0  ;;  %vm245_vm13 = vcmp.ne.s32.totalorder %v6032_v59, 0 }
 0x103   :  { %5244 = vmatmul.mubr.msk.f32.gmra.mrb[20].mxu0 %vm386_vm3, %v5020_v19  ;;  %v4988_v60 = vsel %vm246_vm12, 1.0, %v8215_v24  ;;  %vm1447_vm12 = vcmask 1041409  }
 0x104   :  { %5246 = vmatprep.mubr.msk.f32.mxu0 %vm386_vm3, %v5021_v26 }
 0x107   :  { %5247 = vmatmul.mubr.msk.f32.gmra.mrb[22].mxu0 %vm386_vm3, %v5022_v27  ;;  %vm234_vm3 = vcmp.ne.s32.totalorder %v5971_v38, 0  ;;  %v4975_v38 = vsel %vm233_vm14, 1.0, %v8215_v24  ;;  %vm247_vm14 = vcmp.ne.s32.totalorder %v6044_v63, 0 }
 0x108   :  { %v4976_v54 = vsel %vm234_vm3, 1.0, %v8215_v24  ;;  %vm248_vm3 = vcmp.ne.s32.totalorder %v6046_v0, 0 }
 0x13f   :  { %v1410_v33 = vpop.xlane.xlu1 %1409 }
 0x140   :  { %v1529_v34 = vmul.f32 %v5953_v31, %v1410_v33  ;;  %v6120_v31 = vld [vmem:[#allocation5 + $0x8] sm:$0xff]  ;;  %v4980_v33 = vsel %vm238_vm4, 1.0, %v8215_v24  ;;  %vm252_vm4 = vcmp.ne.s32.totalorder %v6070_v12, 0 }
 0x141   :  { %v4994_v12 = vsel %vm252_vm4, 1.0, %v8215_v24  ;;  %vm1459_vm4 = vcmask 1047559  }
 0x142   :  { %v6107_v37 = vmul.f32 %v1530_v29, %v1529_v34 }
 0x144   :  { %8357 = vst [vmem:[#allocation21_spill] sm:$0xff] %v6107_v37  ;;  %v1532_v40 = vsub.f32 1.0, %v6107_v37 }
 0x146   :  { %v6110_v41 = vmul.f32 1e+12, %v1532_v40 }
 0x148   :  { %v1725_v42 = vrot.slane %v6110_v41, %v5885_v2  ;;  %v6116_v45 = vrot.slane %v6110_v41, %v5888_v3 }
 0x14a   :  { %1731 = vbcast.lane.b32.xlu1 %v1725_v42, 264  ;;  %1727 = vbcast.lane.b32.xlu0 %v1725_v42, 256 }
 0x14e   :  { %1742 = vbcast.lane.b32.xlu1 %v6116_v45, 256  ;;  %1746 = vbcast.lane.b32.xlu0 %v6116_v45, 264 }
 0x152   :  { %1735 = vbcast.lane.b32.xlu1 %v1725_v42, 272 }
 0x1ae   :  { %v5215_v46 = vpop.f32.mrb[0].mxu0 }
 0x1af   :  { %v648_v49 = vadd.f32 %v5215_v46, %v6120_v31  ;;  %v525_v50 = vpop.f32.mrb[1].mxu0 }
 0x1b0   :  { %v647_v53 = vadd.f32 %v6123_v32, %v525_v50 }
 0x1b1   :  { %v6132_v58 = vmul.f32 %v4976_v54, %v648_v49  ;;  %v4979_v49 = vsel %vm237_vm5, 1.0, %v8215_v24  ;;  %vm251_vm5 = vcmp.ne.s32.totalorder %v6068_v11, 0 }
 0x1b2   :  { %v5218_v35 = vpop.f32.mrb[2].mxu0  ;;  %v6136_v61 = vmul.f32 %v4975_v38, %v647_v53  ;;  %v4982_v53 = vsel %vm240_vm6, 1.0, %v8215_v24  ;;  %vm254_vm6 = vcmp.ne.s32.totalorder %v6082_v16, 0 }
 0x1b3   :  { %v650_v62 = vadd.f32 %v5218_v35, %v6123_v32  ;;  %v535_v4 = vpop.f32.mrb[3].mxu0  ;;  %v699_v5 = vsel %vm695_vm15, %v6132_v58, 0.0 }
 0x1b4   :  { %v649_v9 = vadd.f32 %v6130_v57, %v535_v4  ;;  %700 = vadd.xlane.f32.xlu1 %v699_v5  ;;  %v696_v39 = vsel %vm695_vm15, %v6136_v61, 0.0  ;;  %v4981_v4 = vsel %vm239_vm7, 1.0, %v8215_v24  ;;  %vm253_vm7 = vcmp.ne.s32.totalorder %v6080_v15, 0 }
 0x1b5   :  { %697 = vadd.xlane.f32.xlu0 %v696_v39  ;;  %v6146_v36 = vmul.f32 %v4978_v10, %v650_v62 }
 0x1b6   :  { %v5221_v14 = vpop.f32.mrb[4].mxu0  ;;  %v6149_v18 = vmul.f32 %v4977_v13, %v649_v9  ;;  %v4984_v9 = vsel %vm242_vm8, 1.0, %v8215_v24  ;;  %v4983_v13 = vsel %vm241_vm9, 1.0, %v8215_v24  ;;  %vm256_vm8 = vcmp.ne.s32.totalorder %v6094_v25, 0 }
 0x1b7   :  { %v652_v19 = vadd.f32 %v5221_v14, %v6130_v57  ;;  %v545_v26 = vpop.f32.mrb[5].mxu0  ;;  %v705_v27 = vsel %vm695_vm15, %v6146_v36, 0.0  ;;  %vm255_vm9 = vcmp.ne.s32.totalorder %v6092_v23, 0 }
 0x1b8   :  { %v651_v29 = vadd.f32 %v6120_v31, %v545_v26  ;;  %v702_v44 = vsel %vm695_vm15, %v6149_v18, 0.0 }
 0x1b9   :  { %706 = vadd.xlane.f32.xlu0 %v705_v27  ;;  %703 = vadd.xlane.f32.xlu1 %v702_v44  ;;  %v6160_v34 = vmul.f32 %v4980_v33, %v652_v19  ;;  %v4986_v44 = vsel %vm244_vm10, 1.0, %v8215_v24  ;;  %vm5748_vm10 = vmmov 0  }
 0x1ba   :  { %v5224_v40 = vpop.f32.mrb[6].mxu0  ;;  %v6169_v48 = vmul.f32 %v4979_v49, %v651_v29  ;;  %v4985_v49 = vsel %vm243_vm11, 1.0, %v8215_v24  ;;  %5289 = vmatprep.mubr.msk.bf16.mxu0 %vm5748_vm10, %v8215_v24 }
 0x1bb   :  { %v654_v42 = vadd.f32 %v5224_v40, %v6120_v31  ;;  %v555_v46 = vpop.f32.mrb[7].mxu0  ;;  %v711_v43 = vsel %vm695_vm15, %v6160_v34, 0.0 }
 0x1bc   :  { %v653_v50 = vadd.f32 %v6123_v32, %v555_v46  ;;  %v708_v52 = vsel %vm695_vm15, %v6169_v48, 0.0 }
 0x1bd   :  { %712 = vadd.xlane.f32.xlu0 %v711_v43  ;;  %v6172_v54 = vmul.f32 %v4982_v53, %v654_v42 }
 0x1be   :  { %v5227_v38 = vpop.f32.mrb[8].mxu0  ;;  %v6183_v39 = vmul.f32 %v4981_v4, %v653_v50  ;;  %v4987_v4 = vsel %vm245_vm13, 1.0, %v8215_v24  ;;  %vm1449_vm13 = vcmask 1042434  }
 0x1bf   :  { %v656_v35 = vadd.f32 %v5227_v38, %v6123_v32  ;;  %v565_v62 = vpop.f32.mrb[9].mxu0  ;;  %v717_v47 = vsel %vm695_vm15, %v6172_v54, 0.0 }
 0x1c0   :  { %v655_v5 = vadd.f32 %v6130_v57, %v565_v62  ;;  %718 = vadd.xlane.f32.xlu1 %v717_v47  ;;  %v714_v56 = vsel %vm695_vm15, %v6183_v39, 0.0 }
 0x1c1   :  { %709 = vadd.xlane.f32.xlu0 %v708_v52  ;;  %v6186_v51 = vmul.f32 %v4984_v9, %v656_v35  ;;  %v4990_v52 = vsel %vm248_vm3, 1.0, %v8215_v24  ;;  %vm1451_vm3 = vcmask 1043459  }
 0x1c2   :  { %v5230_v10 = vpop.f32.mrb[10].mxu0  ;;  %v6192_v27 = vmul.f32 %v4983_v13, %v655_v5  ;;  %v4989_v13 = vsel %vm247_vm14, 1.0, %v8215_v24  ;;  %vm1453_vm14 = vcmask 1044484  }
 0x1c3   :  { %v658_v14 = vadd.f32 %v5230_v10, %v6130_v57  ;;  %v575_v19 = vpop.f32.mrb[11].mxu0  ;;  %v723_v26 = vsel %vm695_vm15, %v6186_v51, 0.0 }
 0x1c4   :  { %v657_v29 = vadd.f32 %v6120_v31, %v575_v19  ;;  %724 = vadd.xlane.f32.xlu1 %v723_v26  ;;  %v720_v55 = vsel %vm695_vm15, %v6192_v27, 0.0 }
 0x1c5   :  { %715 = vadd.xlane.f32.xlu0 %v714_v56  ;;  %v6200_v33 = vmul.f32 %v4986_v44, %v658_v14  ;;  %v4992_v44 = vsel %vm250_vm0, 1.0, %v8215_v24  ;;  %vm1455_vm0 = vcmask 1045509  }
 0x1c6   :  { %v5233_v40 = vpop.f32.mrb[12].mxu0  ;;  %v6211_v53 = vmul.f32 %v4985_v49, %v657_v29  ;;  %v4991_v49 = vsel %vm249_vm1, 1.0, %v8215_v24  ;;  %vm1457_vm1 = vcmask 1046534  }
 0x1c7   :  { %v660_v42 = vadd.f32 %v5233_v40, %v6120_v31  ;;  %v585_v46 = vpop.f32.mrb[13].mxu0  ;;  %v729_v43 = vsel %vm695_vm15, %v6200_v33, 0.0 }
 0x1c8   :  { %v659_v50 = vadd.f32 %v6123_v32, %v585_v46  ;;  %721 = vadd.xlane.f32.xlu1 %v720_v55  ;;  %v726_v0 = vsel %vm695_vm15, %v6211_v53, 0.0 }
 0x1c9   :  { %730 = vadd.xlane.f32.xlu0 %v729_v43  ;;  %v6214_v38 = vmul.f32 %v4988_v60, %v660_v42 }
 0x1ca   :  { %v5236_v35 = vpop.f32.mrb[14].mxu0  ;;  %v6225_v9 = vmul.f32 %v4987_v4, %v659_v50  ;;  %v4993_v4 = vsel %vm251_vm5, 1.0, %v8215_v24  ;;  %vm1648_vm5 = vcmask 261120  }
 0x1cb   :  { %v662_v62 = vadd.f32 %v5236_v35, %v6123_v32  ;;  %v595_v47 = vpop.f32.mrb[15].mxu0  ;;  %v735_v59 = vsel %vm695_vm15, %v6214_v38, 0.0 }
 0x1cc   :  { %v661_v5 = vadd.f32 %v6130_v57, %v595_v47  ;;  %736 = vadd.xlane.f32.xlu1 %v735_v59  ;;  %v732_v7 = vsel %vm695_vm15, %v6225_v9, 0.0 }
 0x1cd   :  { %727 = vadd.xlane.f32.xlu0 %v726_v0  ;;  %v6228_v63 = vmul.f32 %v4990_v52, %v662_v62  ;;  %v4996_v0 = vsel %vm254_vm6, 1.0, %v8215_v24  ;;  %vm1995_vm6 = vcmask 130112  }
 0x1ce   :  { %v5239_v10 = vpop.f32.mrb[16].mxu0  ;;  %v6234_v29 = vmul.f32 %v4989_v13, %v661_v5 }
 0x1cf   :  { %v664_v14 = vadd.f32 %v5239_v10, %v6130_v57  ;;  %v605_v19 = vpop.f32.mrb[17].mxu0  ;;  %v741_v26 = vsel %vm695_vm15, %v6228_v63, 0.0  ;;  %v4995_v10 = vsel %vm253_vm7, 1.0, %v8215_v24  ;;  %vm2002_vm7 = vcmask 195712  }
 0x1d0   :  { %v663_v56 = vadd.f32 %v6120_v31, %v605_v19  ;;  %742 = vadd.xlane.f32.xlu1 %v741_v26  ;;  %v738_v6 = vsel %vm695_vm15, %v6234_v29, 0.0 }
 0x1d1   :  { %733 = vadd.xlane.f32.xlu0 %v732_v7  ;;  %v6242_v40 = vmul.f32 %v4992_v44, %v664_v14  ;;  %v4998_v7 = vsel %vm256_vm8, 1.0, %v8215_v24  ;;  %vm3904_vm8 = vcmask 1048320  }
 0x1d2   :  { %v5242_v42 = vpop.f32.mrb[18].mxu0  ;;  %v6253_v60 = vmul.f32 %v4991_v49, %v663_v56  ;;  %v6304_v49 = vpop.permute.xlu0 %1727 }
 0x1d3   :  { %v666_v46 = vadd.f32 %v5242_v42, %v6120_v31  ;;  %v615_v55 = vpop.f32.mrb[19].mxu0  ;;  %v747_v43 = vsel %vm695_vm15, %v6242_v40, 0.0 }
 0x1d4   :  { %v665_v50 = vadd.f32 %v6123_v32, %v615_v55  ;;  %739 = vadd.xlane.f32.xlu1 %v738_v6  ;;  %v744_v16 = vsel %vm695_vm15, %v6253_v60, 0.0  ;;  %v6296_v55 = vrot.slane %v6110_v41, %v5901_v8  ;;  %v6300_v6 = vpop.permute.xlu1 %1731 }
 0x1d5   :  { %748 = vadd.xlane.f32.xlu0 %v747_v43  ;;  %v6256_v35 = vmul.f32 %v4994_v12, %v666_v46  ;;  %v4997_v46 = vsel %vm255_vm9, 1.0, %v8215_v24 }
 0x1d6   :  { %v5245_v62 = vpop.f32.mrb[20].mxu0  ;;  %v6267_v52 = vmul.f32 %v4993_v4, %v665_v50  ;;  %v6308_v12 = vpop.permute.xlu0 %1746 }
 0x1d7   :  { %v668_v47 = vadd.f32 %v5245_v62, %v6123_v32  ;;  %v625_v59 = vpop.f32.mrb[21].mxu0  ;;  %v753_v11 = vsel %vm695_vm15, %v6256_v35, 0.0 }
 0x1d8   :  { %v667_v5 = vadd.f32 %v6130_v57, %v625_v59  ;;  %754 = vadd.xlane.f32.xlu1 %v753_v11  ;;  %v750_v25 = vsel %vm695_vm15, %v6267_v52, 0.0  ;;  %v6302_v43 = vpop.permute.xlu1 %1742 }
 0x1d9   :  { %745 = vadd.xlane.f32.xlu0 %v744_v16  ;;  %v6270_v15 = vmul.f32 %v4996_v0, %v668_v47 }
 0x1da   :  { %v5248_v32 = vpop.f32.mrb[22].mxu0  ;;  %v6276_v26 = vmul.f32 %v4995_v10, %v667_v5 }
 0x1db   :  { %v670_v13 = vadd.f32 %v5248_v32, %v6130_v57  ;;  %v635_v14 = vpop.f32.mrb[23].mxu0  ;;  %v759_v19 = vsel %vm695_vm15, %v6270_v15, 0.0 }
 0x1dc   :  { %v669_v56 = vadd.f32 %v6120_v31, %v635_v14  ;;  %760 = vadd.xlane.f32.xlu1 %v759_v19  ;;  %v756_v57 = vsel %vm695_vm15, %v6276_v26, 0.0  ;;  %v6306_v50 = vpop.permute.xlu1 %1735 }
 0x1dd   :  { %751 = vadd.xlane.f32.xlu0 %v750_v25  ;;  %v6283_v44 = vmul.f32 %v4998_v7, %v670_v13 }
 0x1de   :  { %v6290_v23 = vmul.f32 %v4997_v46, %v669_v56 }
 0x1df   :  { %v765_v42 = vsel %vm695_vm15, %v6283_v44, 0.0 }
 0x1e0   :  { %757 = vadd.xlane.f32.xlu1 %v756_v57  ;;  %v762_v31 = vsel %vm695_vm15, %v6290_v23, 0.0 }
 0x1e1   :  { %766 = vadd.xlane.f32.xlu0 %v765_v42 }
 0x1e5   :  { %763 = vadd.xlane.f32.xlu0 %v762_v31 }
 0x1f1   :  { %1757 = vbcast.lane.b32.xlu1 %v6296_v55, 256 }
 0x1fb   :  { %1750 = vbcast.lane.b32.xlu0 %v6116_v45, 272 }
 0x241   :  { %v701_v62 = vpop.xlane.xlu1 %700 }
 0x242   :  { %v770_v47 = vmul.f32 0.015625, %v701_v62  ;;  %v698_v59 = vpop.xlane.xlu0 %697 }
 0x243   :  { %v769_v11 = vmul.f32 0.015625, %v698_v59 }
 0x244   :  { %v6311_v4 = vsub.f32 %v6132_v58, %v770_v47 }
 0x245   :  { %v6314_v5 = vsub.f32 %v6136_v61, %v769_v11 }
 0x246   :  { %v704_v45 = vpop.xlane.xlu1 %703  ;;  %v707_v16 = vpop.xlane.xlu0 %706  ;;  %v818_v0 = vmul.f32 %v6311_v4, %v6311_v4 }
 0x247   :  { %v771_v32 = vmul.f32 0.015625, %v704_v45  ;;  %v772_v10 = vmul.f32 0.015625, %v707_v16  ;;  %v817_v13 = vmul.f32 %v6314_v5, %v6314_v5 }
 0x248   :  { %v844_v14 = vsel %vm695_vm15, %v818_v0, 0.0 }
 0x249   :  { %v6322_v19 = vsub.f32 %v6149_v18, %v771_v32  ;;  %v6325_v58 = vsub.f32 %v6146_v36, %v772_v10  ;;  %845 = vadd.xlane.f32.xlu0 %v844_v14  ;;  %v841_v61 = vsel %vm695_vm15, %v817_v13, 0.0 }
 0x24a   :  { %842 = vadd.xlane.f32.xlu1 %v841_v61  ;;  %v713_v56 = vpop.xlane.xlu0 %712 }
 0x24b   :  { %v774_v25 = vmul.f32 0.015625, %v713_v56  ;;  %v820_v7 = vmul.f32 %v6325_v58, %v6325_v58  ;;  %v819_v18 = vmul.f32 %v6322_v19, %v6322_v19 }
 0x24d   :  { %v6331_v57 = vsub.f32 %v6160_v34, %v774_v25  ;;  %v719_v42 = vpop.xlane.xlu1 %718  ;;  %v850_v46 = vsel %vm695_vm15, %v820_v7, 0.0  ;;  %v847_v45 = vsel %vm695_vm15, %v819_v18, 0.0 }
 0x24e   :  { %v776_v36 = vmul.f32 0.015625, %v719_v42  ;;  %851 = vadd.xlane.f32.xlu1 %v850_v46  ;;  %v710_v31 = vpop.xlane.xlu0 %709 }
 0x24f   :  { %v773_v62 = vmul.f32 0.015625, %v710_v31  ;;  %v822_v47 = vmul.f32 %v6331_v57, %v6331_v57 }
 0x250   :  { %v6339_v59 = vsub.f32 %v6172_v54, %v776_v36 }
 0x251   :  { %v6342_v11 = vsub.f32 %v6169_v48, %v773_v62  ;;  %v725_v34 = vpop.xlane.xlu1 %724  ;;  %v856_v16 = vsel %vm695_vm15, %v822_v47, 0.0 }
 0x252   :  { %v778_v0 = vmul.f32 0.015625, %v725_v34  ;;  %848 = vadd.xlane.f32.xlu1 %v847_v45  ;;  %857 = vadd.xlane.f32.xlu0 %v856_v16  ;;  %v716_v32 = vpop.xlane.xlu0 %715  ;;  %v824_v10 = vmul.f32 %v6339_v59, %v6339_v59 }
 0x253   :  { %v775_v13 = vmul.f32 0.015625, %v716_v32  ;;  %v821_v54 = vmul.f32 %v6342_v11, %v6342_v11 }
 0x254   :  { %v6351_v14 = vsub.f32 %v6186_v51, %v778_v0  ;;  %v862_v48 = vsel %vm695_vm15, %v824_v10, 0.0 }
 0x255   :  { %v6355_v61 = vsub.f32 %v6183_v39, %v775_v13  ;;  %v722_v56 = vpop.xlane.xlu1 %721  ;;  %v853_v25 = vsel %vm695_vm15, %v821_v54, 0.0 }
 0x256   :  { %v777_v7 = vmul.f32 0.015625, %v722_v56  ;;  %863 = vadd.xlane.f32.xlu1 %v862_v48  ;;  %854 = vadd.xlane.f32.xlu0 %v853_v25  ;;  %v731_v42 = vpop.xlane.xlu0 %730  ;;  %v826_v46 = vmul.f32 %v6351_v14, %v6351_v14 }
 0x257   :  { %v780_v18 = vmul.f32 0.015625, %v731_v42  ;;  %v823_v51 = vmul.f32 %v6355_v61, %v6355_v61 }
 0x258   :  { %v6363_v36 = vsub.f32 %v6192_v27, %v777_v7  ;;  %v868_v39 = vsel %vm695_vm15, %v826_v46, 0.0 }
 0x259   :  { %v6367_v31 = vsub.f32 %v6200_v33, %v780_v18  ;;  %v737_v62 = vpop.xlane.xlu1 %736  ;;  %v859_v47 = vsel %vm695_vm15, %v823_v51, 0.0 }
 0x25a   :  { %v782_v34 = vmul.f32 0.015625, %v737_v62  ;;  %869 = vadd.xlane.f32.xlu1 %v868_v39  ;;  %860 = vadd.xlane.f32.xlu0 %v859_v47  ;;  %v728_v45 = vpop.xlane.xlu0 %727  ;;  %v825_v16 = vmul.f32 %v6363_v36, %v6363_v36 }
 0x25b   :  { %v779_v0 = vmul.f32 0.015625, %v728_v45  ;;  %v828_v27 = vmul.f32 %v6367_v31, %v6367_v31 }
 0x25c   :  { %v6375_v32 = vsub.f32 %v6214_v38, %v782_v34  ;;  %v865_v33 = vsel %vm695_vm15, %v825_v16, 0.0 }
 0x25d   :  { %v6379_v10 = vsub.f32 %v6211_v53, %v779_v0  ;;  %v743_v13 = vpop.xlane.xlu1 %742  ;;  %v874_v54 = vsel %vm695_vm15, %v828_v27, 0.0 }
 0x25e   :  { %v784_v48 = vmul.f32 0.015625, %v743_v13  ;;  %866 = vadd.xlane.f32.xlu1 %v865_v33  ;;  %875 = vadd.xlane.f32.xlu0 %v874_v54  ;;  %v734_v56 = vpop.xlane.xlu0 %733  ;;  %v830_v25 = vmul.f32 %v6375_v32, %v6375_v32 }
 0x25f   :  { %v781_v7 = vmul.f32 0.015625, %v734_v56  ;;  %v827_v38 = vmul.f32 %v6379_v10, %v6379_v10 }
 0x260   :  { %v6387_v42 = vsub.f32 %v6228_v63, %v784_v48  ;;  %v880_v53 = vsel %vm695_vm15, %v830_v25, 0.0 }
 0x261   :  { %v6391_v46 = vsub.f32 %v6225_v9, %v781_v7  ;;  %v740_v18 = vpop.xlane.xlu1 %739  ;;  %v871_v51 = vsel %vm695_vm15, %v827_v38, 0.0 }
 0x262   :  { %v783_v39 = vmul.f32 0.015625, %v740_v18  ;;  %881 = vadd.xlane.f32.xlu1 %v880_v53  ;;  %872 = vadd.xlane.f32.xlu0 %v871_v51  ;;  %v749_v62 = vpop.xlane.xlu0 %748  ;;  %v832_v47 = vmul.f32 %v6387_v42, %v6387_v42 }
 0x263   :  { %v786_v34 = vmul.f32 0.015625, %v749_v62  ;;  %v829_v63 = vmul.f32 %v6391_v46, %v6391_v46 }
 0x264   :  { %v6399_v45 = vsub.f32 %v6234_v29, %v783_v39  ;;  %v886_v9 = vsel %vm695_vm15, %v832_v47, 0.0  ;;  %v5363_v29 = vld [vmem:[%s8207_s4] sm:$0xff]  }
 0x265   :  { %v6403_v16 = vsub.f32 %v6242_v40, %v786_v34  ;;  %v755_v0 = vpop.xlane.xlu1 %754  ;;  %v877_v27 = vsel %vm695_vm15, %v829_v63, 0.0  ;;  %5249 = vmatprep.subr.bf16.mxu1 %v5363_v29 }
 0x266   :  { %v788_v33 = vmul.f32 0.015625, %v755_v0  ;;  %887 = vadd.xlane.f32.xlu1 %v886_v9  ;;  %878 = vadd.xlane.f32.xlu0 %v877_v27  ;;  %v746_v13 = vpop.xlane.xlu0 %745  ;;  %v831_v54 = vmul.f32 %v6399_v45, %v6399_v45 }
 0x267   :  { %v785_v48 = vmul.f32 0.015625, %v746_v13  ;;  %v834_v56 = vmul.f32 %v6403_v16, %v6403_v16  ;;  %5250 = vmatpush3.bf16.msra.mxu1 %v5363_v29 }
 0x268   :  { %v6414_v40 = vsub.f32 %v6256_v35, %v788_v33  ;;  %v883_v25 = vsel %vm695_vm15, %v831_v54, 0.0  ;;  %v5364_v35 = vld [vmem:[%s8207_s4 + $0x8] sm:$0xff]  }
 0x269   :  { %v6418_v7 = vsub.f32 %v6253_v60, %v785_v48  ;;  %v761_v38 = vpop.xlane.xlu1 %760  ;;  %v892_v53 = vsel %vm695_vm15, %v834_v56, 0.0  ;;  %5251 = vmatprep.subr.bf16.mxu1 %v5364_v35 }
 0x26a   :  { %v790_v18 = vmul.f32 0.015625, %v761_v38  ;;  %884 = vadd.xlane.f32.xlu1 %v883_v25  ;;  %893 = vadd.xlane.f32.xlu0 %v892_v53  ;;  %v752_v51 = vpop.xlane.xlu0 %751  ;;  %v836_v39 = vmul.f32 %v6414_v40, %v6414_v40 }
 0x26b   :  { %v787_v62 = vmul.f32 0.015625, %v752_v51  ;;  %v833_v60 = vmul.f32 %v6418_v7, %v6418_v7  ;;  %5252 = vmatpush3.bf16.msra.mxu1 %v5364_v35 }
 0x26c   :  { %v6429_v47 = vsub.f32 %v6270_v15, %v790_v18  ;;  %v898_v34 = vsel %vm695_vm15, %v836_v39, 0.0  ;;  %v5365_v15 = vld [vmem:[%s8207_s4 + $0x10] sm:$0xff]  }
 0x26d   :  { %v6433_v63 = vsub.f32 %v6267_v52, %v787_v62  ;;  %v758_v9 = vpop.xlane.xlu1 %757  ;;  %v889_v0 = vsel %vm695_vm15, %v833_v60, 0.0  ;;  %5253 = vmatprep.subr.bf16.mxu1 %v5365_v15 }
 0x26e   :  { %v789_v27 = vmul.f32 0.015625, %v758_v9  ;;  %899 = vadd.xlane.f32.xlu1 %v898_v34  ;;  %890 = vadd.xlane.f32.xlu0 %v889_v0  ;;  %v767_v33 = vpop.xlane.xlu0 %766  ;;  %v838_v13 = vmul.f32 %v6429_v47, %v6429_v47  ;;  %v1770_v34 = vrot.slane %v6110_v41, %v5918_v17  ;;  %v1800_v9 = vrot.slane %v6110_v41, %v5929_v21 }
 0x26f   :  { %v792_v54 = vmul.f32 0.015625, %v767_v33  ;;  %v835_v52 = vmul.f32 %v6433_v63, %v6433_v63  ;;  %5254 = vmatpush3.bf16.msra.mxu1 %v5365_v15  ;;  %v1815_v0 = vrot.slane %v6110_v41, %v5932_v22  ;;  %v6482_v33 = vrot.slane %v6107_v37, %v5885_v2  ;;  %v5369_v15 = vld [vmem:[#allocation7 + $0x10] sm:$0xff]  }
 0x270   :  { %v6444_v29 = vsub.f32 %v6276_v26, %v789_v27  ;;  %v904_v48 = vsel %vm695_vm15, %v838_v13, 0.0  ;;  %v5366_v26 = vld [vmem:[%s8207_s4 + $0x18] sm:$0xff]   ;;  %v5367_v27 = vld [vmem:[#allocation7] sm:$0xff]   ;;  %v5368_v13 = vld [vmem:[#allocation7 + $0x8] sm:$0xff]  }
 0x271   :  { %v6448_v56 = vsub.f32 %v6283_v44, %v792_v54  ;;  %v895_v25 = vsel %vm695_vm15, %v835_v52, 0.0  ;;  %5255 = vmatprep.subr.bf16.mxu1 %v5366_v26  ;;  %5282 = vmatpush3.bf16.msra.mxu0 %v5367_v27  ;;  %8358 = vst [vmem:[#allocation22_spill] sm:$0xff] %v6482_v33  ;;  %v6492_v52 = vpop.permute.xlu1 %1757 }
 0x272   :  { %905 = vadd.xlane.f32.xlu1 %v904_v48  ;;  %896 = vadd.xlane.f32.xlu0 %v895_v25  ;;  %v764_v38 = vpop.xlane.xlu0 %763  ;;  %v837_v53 = vmul.f32 %v6444_v29, %v6444_v29 }
 0x273   :  { %v791_v18 = vmul.f32 0.015625, %v764_v38  ;;  %v840_v51 = vmul.f32 %v6448_v56, %v6448_v56  ;;  %5256 = vmatpush3.bf16.msra.mxu1 %v5366_v26  ;;  %5283 = vmatprep.subr.bf16.mxu0 %v8215_v24 }
 0x274   :  { %v901_v44 = vsel %vm695_vm15, %v837_v53, 0.0  ;;  %5293 = vmatprep.subr.bf16.mxu1 %v8215_v24 }
 0x275   :  { %v6460_v39 = vsub.f32 %v6290_v23, %v791_v18  ;;  %v910_v35 = vsel %vm695_vm15, %v840_v51, 0.0  ;;  %v1785_v23 = vrot.slane %v6110_v41, %v5926_v20  ;;  %5284 = vmatpush3.bf16.msra.mxu0 %v5368_v13 }
 0x276   :  { %902 = vadd.xlane.f32.xlu1 %v901_v44  ;;  %911 = vadd.xlane.f32.xlu0 %v910_v35  ;;  %v6490_v54 = vpop.permute.xlu0 %1750 }
 0x277   :  { %v839_v62 = vmul.f32 %v6460_v39, %v6460_v39  ;;  %5285 = vmatprep.subr.bf16.mxu0 %v8215_v24 }
 0x279   :  { %v907_v60 = vsel %vm695_vm15, %v839_v62, 0.0  ;;  %5286 = vmatpush3.bf16.msra.mxu0 %v5369_v15 }
 0x27a   :  { %908 = vadd.xlane.f32.xlu0 %v907_v60  ;;  %5287 = vmatprep.subr.bf16.mxu0 %v8215_v24 }
 0x287   :  { %1765 = vbcast.lane.b32.xlu1 %v6296_v55, 272 }
 0x28b   :  { %1776 = vbcast.lane.b32.xlu1 %v1770_v34, 264 }
 0x28f   :  { %1787 = vbcast.lane.b32.xlu1 %v1785_v23, 256 }
 0x290   :  { %1761 = vbcast.lane.b32.xlu0 %v6296_v55, 264  ;;  %v1830_v55 = vrot.slane %v6110_v41, %v5944_v28  ;;  %v5370_v41 = vld [vmem:[#allocation7 + $0x18] sm:$0xff]  }
 0x291   :  { %5288 = vmatpush3.bf16.msra.mxu0 %v5370_v41 }
 0x293   :  { %1795 = vbcast.lane.b32.xlu1 %v1785_v23, 272 }
 0x294   :  { %1772 = vbcast.lane.b32.xlu0 %v1770_v34, 256 }
 0x297   :  { %1806 = vbcast.lane.b32.xlu1 %v1800_v9, 264 }
 0x298   :  { %1780 = vbcast.lane.b32.xlu0 %v1770_v34, 272 }
 0x29b   :  { %1817 = vbcast.lane.b32.xlu1 %v1815_v0, 256 }
 0x29c   :  { %1791 = vbcast.lane.b32.xlu0 %v1785_v23, 264 }
 0x29f   :  { %1825 = vbcast.lane.b32.xlu1 %v1815_v0, 272 }
 0x2a0   :  { %1802 = vbcast.lane.b32.xlu0 %v1800_v9, 256 }
 0x2a3   :  { %1836 = vbcast.lane.b32.xlu1 %v1830_v55, 264 }
 0x2a4   :  { %1810 = vbcast.lane.b32.xlu0 %v1800_v9, 272  ;;  %v6497_v9 = vld [vmem:[%s8206_s3] sm:$0xff] }
 0x2a5   :  { %v6501_v15 = vrot.slane %v6497_v9, %v5885_v2 }
 0x2a7   :  { %2528 = vbcast.lane.b32.xlu1 %v6482_v33, 264 }
 0x2a8   :  { %1821 = vbcast.lane.b32.xlu0 %v1815_v0, 264 }
 0x2ac   :  { %1832 = vbcast.lane.b32.xlu0 %v1830_v55, 256 }
 0x2b0   :  { %1840 = vbcast.lane.b32.xlu0 %v1830_v55, 272 }
 0x2b4   :  { %2524 = vbcast.lane.b32.xlu0 %v6482_v33, 256 }
 0x2d6   :  { %v846_v48 = vpop.xlane.xlu0 %845 }
 0x2d7   :  { %v914_v25 = vmul.f32 0.015625, %v846_v48  ;;  %v843_v38 = vpop.xlane.xlu1 %842 }
 0x2d8   :  { %v913_v53 = vmul.f32 0.015625, %v843_v38 }
 0x2d9   :  { %v938_v26 = vadd.f32 1e-05, %v914_v25 }
 0x2da   :  { %v937_v18 = vadd.f32 1e-05, %v913_v53  ;;  %v6505_v53 = vrot.slane %v6497_v9, %v5888_v3 }
 0x2db   :  { %5411 = vrsqrt.f32 %v938_v26  ;;  %v852_v51 = vpop.xlane.xlu1 %851 }
 0x2dc   :  { %5413 = vrsqrt.f32 %v937_v18  ;;  %v916_v44 = vmul.f32 0.015625, %v852_v51 }
 0x2de   :  { %v940_v35 = vadd.f32 1e-05, %v916_v44 }
 0x2df   :  { %v849_v62 = vpop.xlane.xlu1 %848  ;;  %v858_v60 = vpop.xlane.xlu0 %857 }
 0x2e0   :  { %5415 = vrsqrt.f32 %v940_v35  ;;  %v915_v34 = vmul.f32 0.015625, %v849_v62  ;;  %v918_v23 = vmul.f32 0.015625, %v858_v60 }
 0x2e2   :  { %v939_v0 = vadd.f32 1e-05, %v915_v34  ;;  %v942_v27 = vadd.f32 1e-05, %v918_v23 }
 0x2e3   :  { %v864_v55 = vpop.xlane.xlu1 %863  ;;  %v855_v13 = vpop.xlane.xlu0 %854 }
 0x2e4   :  { %5417 = vrsqrt.f32 %v939_v0  ;;  %v920_v41 = vmul.f32 0.015625, %v864_v55  ;;  %v917_v48 = vmul.f32 0.015625, %v855_v13 }
 0x2e5   :  { %v5412_v25 = vpop.eup %5411  ;;  %5419 = vrsqrt.f32 %v942_v27 }
 0x2e6   :  { %v5414_v38 = vpop.eup %5413  ;;  %v944_v26 = vadd.f32 1e-05, %v920_v41  ;;  %v941_v18 = vadd.f32 1e-05, %v917_v48  ;;  %v986_v51 = vmul.f32 %v5412_v25, %v6311_v4 }
 0x2e7   :  { %v870_v44 = vpop.xlane.xlu1 %869  ;;  %v861_v35 = vpop.xlane.xlu0 %860  ;;  %v985_v62 = vmul.f32 %v5414_v38, %v6314_v5 }
 0x2e8   :  { %5421 = vrsqrt.f32 %v944_v26  ;;  %v922_v60 = vmul.f32 0.015625, %v870_v44  ;;  %v919_v34 = vmul.f32 0.015625, %v861_v35  ;;  %v1014_v23 = vmul.f32 %v6501_v15, %v986_v51 }
 0x2e9   :  { %5423 = vrsqrt.f32 %v941_v18  ;;  %v1013_v0 = vmul.f32 %v6501_v15, %v985_v62 }
 0x2ea   :  { %v5416_v27 = vpop.eup %5415  ;;  %v943_v55 = vadd.f32 1e-05, %v919_v34  ;;  %v1042_v13 = vadd.f32 %v6505_v53, %v1014_v23  ;;  %v946_v41 = vadd.f32 1e-05, %v922_v60  ;;  %v1284_v23 = vadd.s32 16, %v5882_v1 }
 0x2eb   :  { %v867_v48 = vpop.xlane.xlu1 %866  ;;  %v876_v24 = vpop.xlane.xlu0 %875  ;;  %v1041_v4 = vadd.f32 %v6505_v53, %v1013_v0  ;;  %v988_v25 = vmul.f32 %v5416_v27, %v6325_v58 }
 0x2ec   :  { %v921_v5 = vmul.f32 0.015625, %v867_v48  ;;  %5425 = vrsqrt.f32 %v943_v55  ;;  %v924_v55 = vmul.f32 0.015625, %v876_v24  ;;  %vm1287_vm11 = vcmp.eq.s32.totalorder %v1284_v23, 19 }
 0x2ed   :  { %v1065_v38 = vpack.c.bf16 %v1042_v13, %v1041_v4  ;;  %5427 = vrsqrt.f32 %v946_v41  ;;  %v1016_v60 = vmul.f32 %v6501_v15, %v988_v25 }
 0x2ee   :  { %v5418_v26 = vpop.eup %5417  ;;  %v945_v44 = vadd.f32 1e-05, %v921_v5 }
 0x2ef   :  { %v5420_v51 = vpop.eup %5419  ;;  %v882_v18 = vpop.xlane.xlu1 %881  ;;  %5257 = vmatprep.mubr.msk.bf16.mxu1 %vm695_vm15, %v1065_v38  ;;  %v987_v62 = vmul.f32 %v5418_v26, %v6322_v19  ;;  %v1044_v19 = vadd.f32 %v6505_v53, %v1016_v60  ;;  %v8359_v60 = vmov 0.0  }
 0x2f0   :  { %v873_v35 = vpop.xlane.xlu0 %872  ;;  %5429 = vrsqrt.f32 %v945_v44  ;;  %v990_v0 = vmul.f32 %v5420_v51, %v6331_v57  ;;  %v948_v57 = vadd.f32 1e-05, %v924_v55  ;;  %v926_v51 = vmul.f32 0.015625, %v882_v18 }
 0x2f1   :  { %v923_v34 = vmul.f32 0.015625, %v873_v35  ;;  %v1015_v58 = vmul.f32 %v6501_v15, %v987_v62  ;;  %v6528_v23 = vsel %vm1287_vm11, 1.0, %v8359_v60 }
 0x2f2   :  { %v5422_v27 = vpop.eup %5421  ;;  %v1018_v26 = vmul.f32 %v6501_v15, %v990_v0 }
 0x2f3   :  { %v947_v48 = vadd.f32 1e-05, %v923_v34  ;;  %v5424_v41 = vpop.eup %5423  ;;  %v888_v5 = vpop.xlane.xlu1 %887  ;;  %v1043_v38 = vadd.f32 %v6505_v53, %v1015_v58  ;;  %v992_v62 = vmul.f32 %v5422_v27, %v6339_v59  ;;  %v1295_v58 = vmul.f32 0.0, %v1042_v13 }
 0x2f4   :  { %v879_v28 = vpop.xlane.xlu0 %878  ;;  %v989_v25 = vmul.f32 %v5424_v41, %v6342_v11  ;;  %v1294_v11 = vmul.f32 0.0, %v1041_v4 }
 0x2f5   :  { %v925_v44 = vmul.f32 0.015625, %v879_v28  ;;  %v1066_v35 = vpack.c.bf16 %v1044_v19, %v1043_v38  ;;  %5431 = vrsqrt.f32 %v947_v48  ;;  %v1046_v28 = vadd.f32 %v6505_v53, %v1018_v26 }
 0x2f6   :  { %v1017_v24 = vmul.f32 %v6501_v15, %v989_v25  ;;  %v5426_v34 = vpop.eup %5425  ;;  %v1020_v55 = vmul.f32 %v6501_v15, %v992_v62  ;;  %5433 = vrsqrt.f32 %v948_v57  ;;  %v950_v25 = vadd.f32 1e-05, %v926_v51 }
 0x2f7   :  { %v885_v22 = vpop.xlane.xlu1 %884  ;;  %5258 = vmatmul.mubr.msk.bf16.vlgmr.msra.gmra.mrb[0].mxu1 %vm695_vm15, %v1066_v35  ;;  %v5428_v41 = vpop.eup %5427  ;;  %v949_v59 = vadd.f32 1e-05, %v925_v44  ;;  %v991_v27 = vmul.f32 %v5426_v34, %v6355_v61  ;;  %v928_v35 = vmul.f32 0.015625, %v888_v5  ;;  %v1296_v30 = vmul.f32 %v6528_v23, %v1043_v38 }
 0x2f8   :  { %v894_v21 = vpop.xlane.xlu0 %893  ;;  %v927_v0 = vmul.f32 0.015625, %v885_v22  ;;  %v1045_v18 = vadd.f32 %v6505_v53, %v1017_v24  ;;  %v1318_v24 = vsel %vm695_vm15, %v1294_v11, 0.0  ;;  %v1319_v61 = vsel %vm695_vm15, %v1295_v58, 0.0 }
 0x2f9   :  { %v1019_v26 = vmul.f32 %v6501_v15, %v991_v27  ;;  %5435 = vrsqrt.f32 %v949_v59  ;;  %v1048_v5 = vadd.f32 %v6505_v53, %v1020_v55  ;;  %v994_v38 = vmul.f32 %v5428_v41, %v6351_v14 }
 0x2fa   :  { %v5430_v48 = vpop.eup %5429  ;;  %v951_v20 = vadd.f32 1e-05, %v927_v0  ;;  %v1067_v22 = vpack.c.bf16 %v1046_v28, %v1045_v18  ;;  %5437 = vrsqrt.f32 %v950_v25  ;;  %v952_v57 = vadd.f32 1e-05, %v928_v35 }
 0x2fb   :  { %v900_v4 = vpop.xlane.xlu1 %899  ;;  %v993_v44 = vmul.f32 %v5430_v48, %v6363_v36  ;;  %v1047_v62 = vadd.f32 %v6505_v53, %v1019_v26  ;;  %v1321_v51 = vsel %vm695_vm15, %v1296_v30, 0.0  ;;  %v930_v36 = vmul.f32 0.015625, %v894_v21 }
 0x2fc   :  { %v891_v13 = vpop.xlane.xlu0 %890  ;;  %5261 = vmatprep.mubr.msk.bf16.mxu1 %vm695_vm15, %v1067_v22  ;;  %5439 = vrsqrt.f32 %v951_v20  ;;  %v1320_v48 = vadd.f32 %v1319_v61, %v1318_v24  ;;  %v932_v22 = vmul.f32 0.015625, %v900_v4  ;;  %v1297_v26 = vmul.f32 0.0, %v1044_v19 }
 0x2fd   :  { %v929_v34 = vmul.f32 0.015625, %v891_v13  ;;  %v1068_v27 = vpack.c.bf16 %v1048_v5, %v1047_v62  ;;  %v1021_v58 = vmul.f32 %v6501_v15, %v993_v44  ;;  %v1022_v14 = vmul.f32 %v6501_v15, %v994_v38 }
 0x2fe   :  { %5441 = vrsqrt.f32 %v952_v57  ;;  %v6547_v41 = vadd.f32 %v1321_v51, %v1320_v48  ;;  %v1299_v20 = vmul.f32 %v6528_v23, %v1046_v28  ;;  %v954_v21 = vadd.f32 1e-05, %v930_v36 }
 0x2ff   :  { %v906_v0 = vpop.xlane.xlu1 %905  ;;  %v5432_v59 = vpop.eup %5431  ;;  %5262 = vmatmul.mubr.msk.bf16.gmra.mrb[4].mxu1 %vm695_vm15, %v1068_v27  ;;  %v953_v30 = vadd.f32 1e-05, %v929_v34  ;;  %v1049_v35 = vadd.f32 %v6505_v53, %v1021_v58  ;;  %v1050_v13 = vadd.f32 %v6505_v53, %v1022_v14  ;;  %v956_v44 = vadd.f32 1e-05, %v932_v22 }
 0x300   :  { %v897_v11 = vpop.xlane.xlu0 %896  ;;  %v995_v19 = vmul.f32 %v5432_v59, %v6379_v10  ;;  %v5434_v4 = vpop.eup %5433  ;;  %v1298_v24 = vmul.f32 0.0, %v1045_v18  ;;  %v1301_v61 = vmul.f32 0.0, %v1048_v5  ;;  %v934_v57 = vmul.f32 0.015625, %v906_v0 }
 0x301   :  { %v931_v33 = vmul.f32 0.015625, %v897_v11  ;;  %v1300_v11 = vmul.f32 0.0, %v1047_v62  ;;  %v1069_v34 = vpack.c.bf16 %v1050_v13, %v1049_v35  ;;  %v1329_v28 = vsel %vm695_vm15, %v1297_v26, 0.0 }
 0x302   :  { %5443 = vrsqrt.f32 %v953_v30  ;;  %v1332_v36 = vsel %vm695_vm15, %v1299_v20, 0.0  ;;  %v1323_v58 = vrot.slane %v6547_v41, 4  ;;  %v996_v10 = vmul.f32 %v5434_v4, %v6367_v31 }
 0x303   :  { %v903_v55 = vpop.xlane.xlu1 %902  ;;  %v955_v51 = vadd.f32 1e-05, %v931_v33  ;;  %v5436_v27 = vpop.eup %5435  ;;  %5445 = vrsqrt.f32 %v954_v21  ;;  %5265 = vmatprep.mubr.msk.bf16.mxu1 %vm695_vm15, %v1069_v34  ;;  %v1023_v18 = vmul.f32 %v6501_v15, %v995_v19  ;;  %v1330_v33 = vsel %vm695_vm15, %v1298_v24, 0.0 }
 0x304   :  { %v912_v25 = vpop.xlane.xlu0 %911  ;;  %v933_v38 = vmul.f32 0.015625, %v903_v55  ;;  %v5438_v5 = vpop.eup %5437  ;;  %5447 = vrsqrt.f32 %v956_v44  ;;  %v1341_v62 = vsel %vm695_vm15, %v1301_v61, 0.0  ;;  %v958_v22 = vadd.f32 1e-05, %v934_v57 }
 0x305   :  { %5449 = vrsqrt.f32 %v955_v51  ;;  %v1340_v26 = vsel %vm695_vm15, %v1300_v11, 0.0  ;;  %v1024_v14 = vmul.f32 %v6501_v15, %v996_v10  ;;  %v936_v30 = vmul.f32 0.015625, %v912_v25 }
 0x306   :  { %v957_v0 = vadd.f32 1e-05, %v933_v38  ;;  %v5440_v48 = vpop.eup %5439  ;;  %v1302_v31 = vmul.f32 %v6528_v23, %v1049_v35  ;;  %v1051_v20 = vadd.f32 %v6505_v53, %v1023_v18  ;;  %v997_v21 = vmul.f32 %v5436_v27, %v6391_v46 }
 0x307   :  { %v1303_v55 = vmul.f32 0.0, %v1050_v13  ;;  %v1052_v4 = vadd.f32 %v6505_v53, %v1024_v14  ;;  %v998_v44 = vmul.f32 %v5438_v5, %v6375_v32  ;;  %v999_v57 = vmul.f32 %v5440_v48, %v6399_v45 }
 0x308   :  { %v909_v59 = vpop.xlane.xlu0 %908  ;;  %v5442_v24 = vpop.eup %5441  ;;  %5451 = vrsqrt.f32 %v957_v0  ;;  %v1304_v61 = vmul.f32 0.0, %v1051_v20  ;;  %v1025_v38 = vmul.f32 %v6501_v15, %v997_v21  ;;  %v1331_v25 = vadd.f32 %v1330_v33, %v1329_v28 }
 0x309   :  { %v935_v19 = vmul.f32 0.015625, %v909_v59  ;;  %v1342_v51 = vadd.f32 %v1341_v62, %v1340_v26  ;;  %v1070_v35 = vpack.c.bf16 %v1052_v4, %v1051_v20  ;;  %v1026_v11 = vmul.f32 %v6501_v15, %v998_v44 }
 0x30a   :  { %5453 = vrsqrt.f32 %v958_v22  ;;  %v960_v46 = vadd.f32 1e-05, %v936_v30  ;;  %v1352_v13 = vsel %vm695_vm15, %v1304_v61, 0.0  ;;  %v1053_v34 = vadd.f32 %v6505_v53, %v1025_v38 }
 0x30b   :  { %v1343_v32 = vsel %vm695_vm15, %v1302_v31, 0.0  ;;  %v959_v27 = vadd.f32 1e-05, %v935_v19  ;;  %5266 = vmatmul.mubr.msk.bf16.gmra.mrb[8].mxu1 %vm695_vm15, %v1070_v35  ;;  %v1054_v10 = vadd.f32 %v6505_v53, %v1026_v11  ;;  %v1000_v45 = vmul.f32 %v5442_v24, %v6387_v42 }
 0x30c   :  { %v5444_v28 = vpop.eup %5443  ;;  %v1351_v18 = vsel %vm695_vm15, %v1303_v55, 0.0  ;;  %v1305_v5 = vmul.f32 %v6528_v23, %v1052_v4  ;;  %v1306_v33 = vmul.f32 0.0, %v1053_v34  ;;  %v1027_v62 = vmul.f32 %v6501_v15, %v999_v57 }
 0x30d   :  { %v5446_v0 = vpop.eup %5445  ;;  %v1353_v59 = vadd.f32 %v1352_v13, %v1351_v18  ;;  %v1071_v48 = vpack.c.bf16 %v1054_v10, %v1053_v34  ;;  %v1307_v22 = vmul.f32 0.0, %v1054_v10  ;;  %v1028_v26 = vmul.f32 %v6501_v15, %v1000_v45 }
 0x30e   :  { %v5448_v14 = vpop.eup %5447  ;;  %v1333_v30 = vadd.f32 %v1332_v36, %v1331_v25  ;;  %5455 = vrsqrt.f32 %v960_v46  ;;  %v1362_v31 = vsel %vm695_vm15, %v1306_v33, 0.0  ;;  %v1055_v42 = vadd.f32 %v6505_v53, %v1027_v62 }
 0x30f   :  { %v5450_v20 = vpop.eup %5449  ;;  %v1344_v21 = vadd.f32 %v1343_v32, %v1342_v51  ;;  %5457 = vrsqrt.f32 %v959_v27  ;;  %5269 = vmatprep.mubr.msk.bf16.mxu1 %vm695_vm15, %v1071_v48  ;;  %v1056_v55 = vadd.f32 %v6505_v53, %v1028_v26  ;;  %v1001_v19 = vmul.f32 %v5444_v28, %v6418_v7 }
 0x310   :  { %v1354_v4 = vsel %vm695_vm15, %v1305_v5, 0.0  ;;  %v1363_v44 = vsel %vm695_vm15, %v1307_v22, 0.0  ;;  %v1308_v36 = vmul.f32 %v6528_v23, %v1055_v42  ;;  %v1002_v24 = vmul.f32 %v5446_v0, %v6403_v16 }
 0x311   :  { %v1355_v61 = vadd.f32 %v1354_v4, %v1353_v59  ;;  %v1364_v38 = vadd.f32 %v1363_v44, %v1362_v31  ;;  %v1072_v57 = vpack.c.bf16 %v1056_v55, %v1055_v42  ;;  %v1029_v25 = vmul.f32 %v6501_v15, %v1001_v19 }
 0x312   :  { %v5452_v51 = vpop.eup %5451  ;;  %v1334_v35 = vrot.slane %v1333_v30, 4  ;;  %v1365_v11 = vsel %vm695_vm15, %v1308_v36, 0.0  ;;  %v1030_v46 = vmul.f32 %v6501_v15, %v1002_v24  ;;  %v1003_v7 = vmul.f32 %v5450_v20, %v6433_v63 }
 0x313   :  { %5270 = vmatmul.mubr.msk.bf16.gmra.mrb[12].mxu1 %vm695_vm15, %v1072_v57  ;;  %v1309_v13 = vmul.f32 0.0, %v1056_v55  ;;  %v1366_v34 = vadd.f32 %v1365_v11, %v1364_v38  ;;  %v1057_v32 = vadd.f32 %v6505_v53, %v1029_v25  ;;  %v1345_v27 = vrot.slane %v1344_v21, 4 }
 0x314   :  { %v5454_v16 = vpop.eup %5453  ;;  %v1058_v10 = vadd.f32 %v6505_v53, %v1030_v46  ;;  %v1004_v45 = vmul.f32 %v5448_v14, %v6414_v40  ;;  %v1031_v28 = vmul.f32 %v6501_v15, %v1003_v7  ;;  %v1324_v18 = vadd.f32 %v1323_v58, %v6547_v41 }
 0x315   :  { %v1356_v5 = vrot.slane %v1355_v61, 4  ;;  %v1310_v63 = vmul.f32 0.0, %v1057_v32  ;;  %v1005_v33 = vmul.f32 %v5452_v51, %v6444_v29  ;;  %v1335_v62 = vadd.f32 %v1334_v35, %v1333_v30 }
 0x316   :  { %v1073_v0 = vpack.c.bf16 %v1058_v10, %v1057_v32  ;;  %v1311_v59 = vmul.f32 %v6528_v23, %v1058_v10  ;;  %v1032_v48 = vmul.f32 %v6501_v15, %v1004_v45  ;;  %v1367_v22 = vrot.slane %v1366_v34, 4 }
 0x317   :  { %v1373_v26 = vsel %vm695_vm15, %v1309_v13, 0.0  ;;  %v1374_v40 = vsel %vm695_vm15, %v1310_v63, 0.0  ;;  %v1059_v14 = vadd.f32 %v6505_v53, %v1031_v28  ;;  %v1346_v42 = vadd.f32 %v1345_v27, %v1344_v21 }
 0x318   :  { %v5456_v31 = vpop.eup %5455  ;;  %5273 = vmatprep.mubr.msk.bf16.mxu1 %vm695_vm15, %v1073_v0  ;;  %v1375_v41 = vadd.f32 %v1374_v40, %v1373_v26  ;;  %v1060_v29 = vadd.f32 %v6505_v53, %v1032_v48  ;;  %v1006_v58 = vmul.f32 %v5454_v16, %v6429_v47  ;;  %v1357_v20 = vadd.f32 %v1356_v5, %v1355_v61 }
 0x319   :  { %v5458_v30 = vpop.eup %5457  ;;  %v1376_v55 = vsel %vm695_vm15, %v1311_v59, 0.0  ;;  %v1312_v19 = vmul.f32 0.0, %v1059_v14  ;;  %v1033_v4 = vmul.f32 %v6501_v15, %v1005_v33  ;;  %v1336_v21 = vrot.slane %v1335_v62, 2 }
 0x31a   :  { %v1377_v44 = vadd.f32 %v1376_v55, %v1375_v41  ;;  %v1074_v36 = vpack.c.bf16 %v1060_v29, %v1059_v14  ;;  %v1313_v24 = vmul.f32 0.0, %v1060_v29  ;;  %v1034_v38 = vmul.f32 %v6501_v15, %v1006_v58 }
 0x31b   :  { %v1368_v57 = vadd.f32 %v1367_v22, %v1366_v34  ;;  %v1384_v25 = vsel %vm695_vm15, %v1312_v19, 0.0  ;;  %v1061_v51 = vadd.f32 %v6505_v53, %v1033_v4  ;;  %v1325_v35 = vrot.slane %v1324_v18, 2 }
 0x31c   :  { %v1378_v47 = vrot.slane %v1377_v44, 4  ;;  %5274 = vmatmul.mubr.msk.bf16.gmra.mrb[16].mxu1 %vm695_vm15, %v1074_v36  ;;  %v1062_v61 = vadd.f32 %v6505_v53, %v1034_v38  ;;  %v1007_v11 = vmul.f32 %v5458_v30, %v6460_v39  ;;  %v1347_v46 = vrot.slane %v1346_v42, 2 }
 0x31d   :  { %v1358_v7 = vrot.slane %v1357_v20, 2  ;;  %v1385_v13 = vsel %vm695_vm15, %v1313_v24, 0.0  ;;  %v1314_v32 = vmul.f32 %v6528_v23, %v1061_v51  ;;  %v1008_v10 = vmul.f32 %v5456_v31, %v6448_v56 }
 0x31e   :  { %v1379_v16 = vadd.f32 %v1378_v47, %v1377_v44  ;;  %v1386_v34 = vadd.f32 %v1385_v13, %v1384_v25  ;;  %v1075_v27 = vpack.c.bf16 %v1062_v61, %v1061_v51  ;;  %v1337_v45 = vadd.f32 %v1336_v21, %v1335_v62 }
 0x31f   :  { %v1369_v28 = vrot.slane %v1368_v57, 2  ;;  %v1387_v5 = vsel %vm695_vm15, %v1314_v32, 0.0  ;;  %v1035_v63 = vmul.f32 %v6501_v15, %v1007_v11  ;;  %v1036_v0 = vmul.f32 %v6501_v15, %v1008_v10 }
 0x320   :  { %v1380_v33 = vrot.slane %v1379_v16, 2  ;;  %5277 = vmatprep.mubr.msk.bf16.mxu1 %vm695_vm15, %v1075_v27  ;;  %v1388_v39 = vadd.f32 %v1387_v5, %v1386_v34  ;;  %v1348_v59 = vadd.f32 %v1347_v46, %v1346_v42  ;;  %v1315_v48 = vmul.f32 0.0, %v1062_v61 }
 0x321   :  { %v1063_v22 = vadd.f32 %v6505_v53, %v1035_v63  ;;  %v1326_v26 = vadd.f32 %v1325_v35, %v1324_v18  ;;  %v1359_v40 = vadd.f32 %v1358_v7, %v1357_v20  ;;  %v1064_v56 = vadd.f32 %v6505_v53, %v1036_v0 }
 0x322   :  { %v1389_v14 = vrot.slane %v1388_v39, 4  ;;  %v1338_v62 = vrot.slane %v1337_v45, 1  ;;  %v1370_v31 = vadd.f32 %v1369_v28, %v1368_v57  ;;  %v1381_v29 = vadd.f32 %v1380_v33, %v1379_v16 }
 0x323   :  { %v1316_v41 = vmul.f32 0.0, %v1063_v22  ;;  %v1076_v30 = vpack.c.bf16 %v1064_v56, %v1063_v22  ;;  %v1317_v55 = vmul.f32 %v6528_v23, %v1064_v56  ;;  %v1349_v19 = vrot.slane %v1348_v59, 1 }
 0x324   :  { %v1390_v58 = vadd.f32 %v1389_v14, %v1388_v39  ;;  %v1395_v15 = vsel %vm695_vm15, %v1315_v48, 0.0  ;;  %v1327_v4 = vrot.slane %v1326_v26, 1  ;;  %v1360_v44 = vrot.slane %v1359_v40, 1 }
 0x325   :  { %v1396_v42 = vsel %vm695_vm15, %v1316_v41, 0.0  ;;  %5278 = vmatmul.mubr.msk.bf16.gmra.mrb[20].mxu1 %vm695_vm15, %v1076_v30  ;;  %v1371_v53 = vrot.slane %v1370_v31, 1  ;;  %v1398_v36 = vsel %vm695_vm15, %v1317_v55, 0.0  ;;  %v6635_v24 = vadd.f32 %v1338_v62, %v1337_v45 }
 0x326   :  { %v1391_v18 = vrot.slane %v1390_v58, 2  ;;  %v1397_v20 = vadd.f32 %v1396_v42, %v1395_v15  ;;  %5301 = vmatprep.mubr.msk.bf16.mxu1 %vm5748_vm10, %v8359_v60  ;;  %v1382_v23 = vrot.slane %v1381_v29, 1  ;;  %v6637_v57 = vadd.f32 %v1349_v19, %v1348_v59 }
 0x327   :  { %8360 = vst [vmem:[#allocation23_spill] sm:$0xff] %v6635_v24  ;;  %v6639_v25 = vadd.f32 %v1327_v4, %v1326_v26  ;;  %v6641_v51 = vadd.f32 %v1360_v44, %v1359_v40  ;;  %v6643_v61 = vadd.f32 %v1371_v53, %v1370_v31  ;;  %v1412_v11 = vpack.c.bf16 %v6635_v24, %v6635_v24 }
 0x328   :  { %v1392_v38 = vadd.f32 %v1391_v18, %v1390_v58  ;;  %v1399_v21 = vadd.f32 %v1398_v36, %v1397_v20  ;;  %8361 = vst [vmem:[#allocation24_spill] sm:$0xff] %v6637_v57  ;;  %v6647_v46 = vadd.f32 %v1382_v23, %v1381_v29  ;;  %v1413_v13 = vpack.c.bf16 %v6637_v57, %v6637_v57 }
 0x329   :  { %8362 = vst [vmem:[#allocation25_spill] sm:$0xff] %v6639_v25  ;;  %8363 = vst [vmem:[#allocation26_spill] sm:$0xff] %v6641_v51  ;;  %v1411_v16 = vpack.c.bf16 %v6639_v25, %v6639_v25  ;;  %v1414_v34 = vpack.c.bf16 %v6641_v51, %v6641_v51  ;;  %v1415_v10 = vpack.c.bf16 %v6643_v61, %v6643_v61  ;;  %v1440_v45 = vunpack.c.l.b16 %v1412_v11 }
 0x32a   :  { %v1393_v35 = vrot.slane %v1392_v38, 1  ;;  %v1400_v47 = vrot.slane %v1399_v21, 4  ;;  %8364 = vst [vmem:[#allocation27_spill] sm:$0xff] %v6643_v61  ;;  %8365 = vst [vmem:[#allocation28_spill] sm:$0xff] %v6647_v46  ;;  %v1416_v28 = vpack.c.bf16 %v6647_v46, %v6647_v46  ;;  %v1441_v63 = vunpack.c.l.b16 %v1413_v13 }
 0x32b   :  { %v1439_v39 = vunpack.c.l.b16 %v1411_v16  ;;  %v1442_v0 = vunpack.c.l.b16 %v1414_v34  ;;  %v1443_v48 = vunpack.c.l.b16 %v1415_v10  ;;  %v6683_v20 = vrot.slane %v6497_v9, %v5901_v8 }
 0x32c   :  { %v1401_v7 = vadd.f32 %v1400_v47, %v1399_v21  ;;  %v6651_v32 = vadd.f32 %v1393_v35, %v1392_v38  ;;  %v1444_v26 = vunpack.c.l.b16 %v1416_v28 }
 0x32d   :  { %v1448_v22 = vsel %vm1447_vm12, %v1440_v45, %v1439_v39 }
 0x32e   :  { %8366 = vst [vmem:[#allocation29_spill] sm:$0xff] %v6651_v32  ;;  %v1402_v27 = vrot.slane %v1401_v7, 2  ;;  %v1417_v33 = vpack.c.bf16 %v6651_v32, %v6651_v32  ;;  %v1450_v14 = vsel %vm1449_vm13, %v1441_v63, %v1448_v22 }
 0x32f   :  { %v1452_v31 = vsel %vm1451_vm3, %v1442_v0, %v1450_v14 }
 0x330   :  { %v1403_v5 = vadd.f32 %v1402_v27, %v1401_v7  ;;  %v1445_v56 = vunpack.c.l.b16 %v1417_v33  ;;  %v1454_v41 = vsel %vm1453_vm14, %v1443_v48, %v1452_v31 }
 0x331   :  { %v1456_v58 = vsel %vm1455_vm0, %v1444_v26, %v1454_v41 }
 0x332   :  { %v1404_v59 = vrot.slane %v1403_v5, 1  ;;  %v1458_v30 = vsel %vm1457_vm1, %v1445_v56, %v1456_v58 }
 0x334   :  { %v6664_v40 = vadd.f32 %v1404_v59, %v1403_v5 }
 0x336   :  { %8367 = vst [vmem:[#allocation30_spill] sm:$0xff] %v6664_v40  ;;  %v1418_v62 = vpack.c.bf16 %v6664_v40, %v6664_v40 }
 0x338   :  { %v1446_v29 = vunpack.c.l.b16 %v1418_v62 }
 0x33a   :  { %v1460_v55 = vsel %vm1459_vm4, %v1446_v29, %v1458_v30 }
 0x33b   :  { %v1461_v19 = vpack.c.b16 %v1460_v55, %v1460_v55 }
 0x33d   :  { %5290 = vmatmul.mubr.msk.bf16.vlgmr.msra.gmra.mrb[24].mxu0 %vm695_vm15, %v1461_v19 }
 0x3ca   :  { %v6675_v15 = vpop.f32.mrb[0].mxu1 }
 0x3cb   :  { %v1183_v42 = vpop.f32.mrb[1].mxu1 }
 0x3cc   :  { %v6677_v4 = vpop.f32.mrb[2].mxu1 }
 0x3cd   :  { %v1186_v44 = vpop.f32.mrb[3].mxu1 }
 0x3d2   :  { %v6679_v18 = vpop.f32.mrb[4].mxu1 }
 0x3d3   :  { %v6685_v53 = vpop.f32.mrb[5].mxu1 }
 0x3d4   :  { %v5264_v36 = vpop.f32.mrb[6].mxu1 }
 0x3d5   :  { %v6688_v23 = vadd.f32 %v5264_v36, %v6683_v20  ;;  %v6690_v38 = vpop.f32.mrb[7].mxu1 }
 0x3d7   :  { %8368 = vst [vmem:[#allocation31_spill] sm:$0xff] %v6688_v23 }
 0x3de   :  { %v5267_v21 = vpop.f32.mrb[8].mxu1 }
 0x3df   :  { %v6693_v35 = vadd.f32 %v5267_v21, %v6683_v20  ;;  %v1215_v47 = vpop.f32.mrb[9].mxu1  ;;  %v5749_v21 = vmov 1966171168  }
 0x3e0   :  { %v6696_v11 = vadd.f32 %v1215_v47, %v6683_v20  ;;  %v5268_v7 = vpop.f32.mrb[10].mxu1  ;;  %v1537_v47 = vunpack.c.l.s4 %v5749_v21  ;;  %v6746_v21 = vadd.f32 %v1183_v42, %v6683_v20 }
 0x3e1   :  { %8369 = vst [vmem:[#allocation32_spill] sm:$0xff] %v6693_v35  ;;  %v6699_v13 = vadd.f32 %v5268_v7, %v6683_v20  ;;  %v1218_v16 = vpop.f32.mrb[11].mxu1 }
 0x3e2   :  { %8370 = vst [vmem:[#allocation33_spill] sm:$0xff] %v6696_v11  ;;  %v6702_v34 = vadd.f32 %v1218_v16, %v6683_v20  ;;  %v1538_v7 = vunpack.c.0.s8 %v1537_v47  ;;  %v1430_v16 = vrot.slane %v6497_v9, %v5918_v17  ;;  %8385 = vst [vmem:[#allocation48_spill] sm:$0xff] %v6746_v21  ;;  %v6749_v47 = vadd.f32 %v1186_v44, %v6683_v20 }
 0x3e3   :  { %8371 = vst [vmem:[#allocation34_spill] sm:$0xff] %v6699_v13 }
 0x3e4   :  { %8372 = vst [vmem:[#allocation35_spill] sm:$0xff] %v6702_v34  ;;  %8386 = vst [vmem:[#allocation49_spill] sm:$0xff] %v6749_v47 }
 0x3e6   :  { %v5271_v27 = vpop.f32.mrb[12].mxu1 }
 0x3e7   :  { %v6705_v10 = vadd.f32 %v5271_v27, %v6683_v20  ;;  %v1231_v45 = vpop.f32.mrb[13].mxu1  ;;  %v1541_v27 = vsub.s32 %v1538_v7, %v5882_v1 }
 0x3e8   :  { %v6708_v28 = vadd.f32 %v1231_v45, %v6683_v20  ;;  %v5272_v5 = vpop.f32.mrb[14].mxu1 }
 0x3e9   :  { %8373 = vst [vmem:[#allocation36_spill] sm:$0xff] %v6705_v10  ;;  %v6711_v63 = vadd.f32 %v5272_v5, %v6683_v20  ;;  %v1234_v33 = vpop.f32.mrb[15].mxu1 }
 0x3ea   :  { %8374 = vst [vmem:[#allocation37_spill] sm:$0xff] %v6708_v28  ;;  %v6714_v39 = vadd.f32 %v1234_v33, %v6683_v20 }
 0x3eb   :  { %8375 = vst [vmem:[#allocation38_spill] sm:$0xff] %v6711_v63 }
 0x3ec   :  { %8376 = vst [vmem:[#allocation39_spill] sm:$0xff] %v6714_v39 }
 0x3ef   :  { %v5275_v0 = vpop.f32.mrb[16].mxu1 }
 0x3f0   :  { %v6717_v59 = vadd.f32 %v5275_v0, %v6683_v20  ;;  %v1247_v48 = vpop.f32.mrb[17].mxu1 }
 0x3f1   :  { %v6720_v22 = vadd.f32 %v1247_v48, %v6683_v20  ;;  %v5276_v26 = vpop.f32.mrb[18].mxu1 }
 0x3f2   :  { %8377 = vst [vmem:[#allocation40_spill] sm:$0xff] %v6717_v59  ;;  %v6723_v14 = vadd.f32 %v5276_v26, %v6683_v20  ;;  %v1250_v56 = vpop.f32.mrb[19].mxu1 }
 0x3f3   :  { %8378 = vst [vmem:[#allocation41_spill] sm:$0xff] %v6720_v22  ;;  %v6726_v62 = vadd.f32 %v1250_v56, %v6683_v20 }
 0x3f4   :  { %8379 = vst [vmem:[#allocation42_spill] sm:$0xff] %v6723_v14 }
 0x3f5   :  { %8380 = vst [vmem:[#allocation43_spill] sm:$0xff] %v6726_v62 }
 0x3f8   :  { %v5279_v31 = vpop.f32.mrb[20].mxu1 }
 0x3f9   :  { %v6729_v41 = vadd.f32 %v5279_v31, %v6683_v20  ;;  %v1263_v29 = vpop.f32.mrb[21].mxu1 }
 0x3fa   :  { %v6732_v58 = vadd.f32 %v1263_v29, %v6683_v20  ;;  %v5280_v30 = vpop.f32.mrb[22].mxu1 }
 0x3fb   :  { %8381 = vst [vmem:[#allocation44_spill] sm:$0xff] %v6729_v41  ;;  %v6735_v55 = vadd.f32 %v5280_v30, %v6683_v20  ;;  %v1266_v19 = vpop.f32.mrb[23].mxu1 }
 0x3fc   :  { %8382 = vst [vmem:[#allocation45_spill] sm:$0xff] %v6732_v58  ;;  %v6738_v36 = vadd.f32 %v1266_v19, %v6683_v20 }
 0x3fd   :  { %8383 = vst [vmem:[#allocation46_spill] sm:$0xff] %v6735_v55 }
 0x3fe   :  { %8384 = vst [vmem:[#allocation47_spill] sm:$0xff] %v6738_v36 }
 0x410   :  { %v1523_v45 = vpop.f32.mrb[24].mxu0 }
 0x411   :  { %v1524_v5 = vadd.f32 %v1523_v45, %v1430_v16  ;;  %v5291_v33 = vpop.f32.mrb[25].mxu0 }
 0x412   :  { %v1526_v0 = vpop.f32.mrb[26].mxu0 }
 0x413   :  { %v1535_v48 = vcombine.high %v1524_v5, %v1524_v5  ;;  %v1542_v26 = vrot.slane %v1524_v5, %v1541_v27  ;;  %v5292_v56 = vpop.f32.mrb[27].mxu0  ;;  %v6758_v5 = vadd.f32 %v6675_v15, %v6683_v20 }
 0x415   :  { %v1549_v31 = vrot.slane %v1535_v48, %v1541_v27  ;;  %v1558_v29 = vrot.slane %v1542_v26, %v1541_v27  ;;  %8387 = vst [vmem:[#allocation50_spill] sm:$0xff] %v6758_v5  ;;  %v1550_v15 = vcombine.high %v1542_v26, %v1542_v26  ;;  %v6785_v26 = vadd.f32 %v6690_v38, %v6683_v20 }
 0x417   :  { %v1551_v30 = vcombine.high %v1549_v31, %v1549_v31  ;;  %v6743_v19 = vrot.slane %v1549_v31, %v1541_v27  ;;  %v1587_v9 = vrot.slane %v1558_v29, %v5885_v2  ;;  %v1572_v48 = vrot.slane %v1550_v15, %v1541_v27  ;;  %8391 = vst [vmem:[#allocation54_spill] sm:$0xff] %v6785_v26 }
 0x418   :  { %v1580_v56 = vcombine.high %v1558_v29, %v1558_v29 }
 0x419   :  { %v6752_v7 = vrot.slane %v1551_v30, %v1541_v27  ;;  %v1625_v16 = vmul.f32 %v1587_v9, %v6749_v47  ;;  %v1624_v45 = vmul.f32 %v1587_v9, %v6746_v21  ;;  %v1626_v42 = vmul.f32 %v1587_v9, %v6758_v5 }
 0x41a   :  { %v1591_v31 = vrot.slane %v1572_v48, %v5885_v2  ;;  %v6770_v30 = vadd.f32 %v6677_v4, %v6683_v20  ;;  %v6774_v9 = vadd.f32 %v6685_v53, %v6683_v20  ;;  %v6781_v27 = vadd.f32 %v6679_v18, %v6683_v20 }
 0x41b   :  { %2946 = vrot.lane.b32.xlu1 %v1625_v16, %s5750_s20  ;;  %2944 = vrot.lane.b32.xlu0 %v1624_v45, %s5750_s20  ;;  %v1652_v44 = vsel %vm1648_vm5, %v1625_v16, 0.0  ;;  %v1655_v33 = vsel %vm1648_vm5, %v1626_v42, 0.0  ;;  %v1649_v0 = vsel %vm1648_vm5, %v1624_v45, 0.0  ;;  %v1595_v16 = vrot.slane %v1580_v56, %v5885_v2 }
 0x41c   :  { %8388 = vst [vmem:[#allocation51_spill] sm:$0xff] %v6770_v30  ;;  %8389 = vst [vmem:[#allocation52_spill] sm:$0xff] %v6774_v9  ;;  %v1627_v45 = vmul.f32 %v1591_v31, %v6770_v30  ;;  %v1629_v4 = vmul.f32 %v1591_v31, %v6785_v26  ;;  %v1603_v18 = vrot.slane %v6743_v19, %v5885_v2 }
 0x41d   :  { %8390 = vst [vmem:[#allocation53_spill] sm:$0xff] %v6781_v27  ;;  %v1630_v53 = vmul.f32 %v1595_v16, %v6781_v27  ;;  %v1631_v29 = vmul.f32 %v1595_v16, %v6688_v23  ;;  %v1632_v20 = vmul.f32 %v1595_v16, %v6696_v11 }
 0x41e   :  { %v1637_v38 = vmul.f32 %v1603_v18, %v6714_v39  ;;  %v1664_v40 = vsel %vm1648_vm5, %v1629_v4, 0.0 }
 0x41f   :  { %2948 = vrot.lane.b32.xlu1 %v1626_v42, %s5750_s20  ;;  %v1628_v42 = vmul.f32 %v1591_v31, %v6774_v9  ;;  %v1667_v15 = vsel %vm1648_vm5, %v1630_v53, 0.0  ;;  %v1673_v56 = vsel %vm1648_vm5, %v1632_v20, 0.0 }
 0x420   :  { %v1688_v16 = vsel %vm1648_vm5, %v1637_v38, 0.0 }
 0x421   :  { %v1661_v31 = vsel %vm1648_vm5, %v1628_v42, 0.0 }
 0x43a   :  { %1653 = vadd.xlane.f32.xlu0 %v1652_v44  ;;  %v1636_v44 = vmul.f32 %v1603_v18, %v6708_v28  ;;  %v5751_v28 = vmov 0  }
 0x43b   :  { %5356 = vset.pattern.permute.xlu1 %v5751_v28  ;;  %5357 = vset.pattern.permute.xlu0 %v5751_v28 }
 0x43c   :  { %4396 = vmatprep.mubr.bf16.mxu0 %v5751_v28 }
 0x43e   :  { %1656 = vadd.xlane.f32.xlu0 %v1655_v33  ;;  %v1638_v33 = vmul.f32 %v1603_v18, %v6705_v10 }
 0x440   :  { %v1691_v18 = vsel %vm1648_vm5, %v1638_v33, 0.0 }
 0x443   :  { %1650 = vadd.xlane.f32.xlu1 %v1649_v0  ;;  %v1658_v0 = vsel %vm1648_vm5, %v1627_v45, 0.0 }
 0x454   :  { %2952 = vrot.lane.b32.xlu0 %v1628_v42, %s5750_s20  ;;  %2950 = vrot.lane.b32.xlu1 %v1627_v45, %s5750_s20  ;;  %v1670_v45 = vsel %vm1648_vm5, %v1631_v29, 0.0  ;;  %v1581_v42 = vcombine.high %v6743_v19, %v6743_v19 }
 0x458   :  { %2954 = vrot.lane.b32.xlu0 %v1629_v4, %s5750_s20  ;;  %2956 = vrot.lane.b32.xlu1 %v1630_v53, %s5750_s20  ;;  %v1685_v53 = vsel %vm1648_vm5, %v1636_v44, 0.0 }
 0x45c   :  { %2958 = vrot.lane.b32.xlu0 %v1631_v29, %s5750_s20  ;;  %2960 = vrot.lane.b32.xlu1 %v1632_v20, %s5750_s20  ;;  %v1582_v20 = vcombine.high %v1572_v48, %v1572_v48  ;;  %v1611_v29 = vrot.slane %v1581_v42, %v5885_v2 }
 0x460   :  { %2970 = vrot.lane.b32.xlu0 %v1637_v38, %s5750_s20  ;;  %2968 = vrot.lane.b32.xlu1 %v1636_v44, %s5750_s20  ;;  %v1607_v38 = vrot.slane %v6752_v7, %v5885_v2 }
 0x462   :  { %v1640_v44 = vmul.f32 %v1607_v38, %v6720_v22  ;;  %v1639_v19 = vmul.f32 %v1607_v38, %v6711_v63 }
 0x464   :  { %2972 = vrot.lane.b32.xlu1 %v1638_v33, %s5750_s20  ;;  %v1642_v33 = vmul.f32 %v1611_v29, %v6717_v59 }
 0x47f   :  { %1659 = vadd.xlane.f32.xlu0 %v1658_v0  ;;  %v1599_v0 = vrot.slane %v1582_v20, %v5885_v2 }
 0x481   :  { %v1634_v4 = vmul.f32 %v1599_v0, %v6693_v35  ;;  %v1635_v48 = vmul.f32 %v1599_v0, %v6699_v13 }
 0x483   :  { %1668 = vadd.xlane.f32.xlu0 %v1667_v15  ;;  %v6830_v15 = vpop.permute.xlu0 %1761  ;;  %v1679_v61 = vsel %vm1648_vm5, %v1634_v4, 0.0 }
 0x487   :  { %1674 = vadd.xlane.f32.xlu0 %v1673_v56  ;;  %v1641_v56 = vmul.f32 %v1607_v38, %v6726_v62  ;;  %v1697_v62 = vsel %vm1648_vm5, %v1640_v44, 0.0 }
 0x488   :  { %1662 = vadd.xlane.f32.xlu1 %v1661_v31  ;;  %v1644_v31 = vmul.f32 %v1611_v29, %v6732_v58  ;;  %v1682_v58 = vsel %vm1648_vm5, %v1635_v48, 0.0 }
 0x48b   :  { %1689 = vadd.xlane.f32.xlu0 %v1688_v16  ;;  %v6838_v16 = vpop.permute.xlu0 %1772 }
 0x48c   :  { %1665 = vadd.xlane.f32.xlu1 %v1664_v40  ;;  %v1633_v40 = vmul.f32 %v1599_v0, %v6702_v34 }
 0x48e   :  { %v1676_v57 = vsel %vm1648_vm5, %v1633_v40, 0.0 }
 0x48f   :  { %1692 = vadd.xlane.f32.xlu0 %v1691_v18  ;;  %v1643_v18 = vmul.f32 %v1611_v29, %v6723_v14  ;;  %v1694_v14 = vsel %vm1648_vm5, %v1639_v19, 0.0 }
 0x490   :  { %1671 = vadd.xlane.f32.xlu1 %v1670_v45  ;;  %v6842_v45 = vpop.permute.xlu1 %1765 }
 0x494   :  { %1686 = vadd.xlane.f32.xlu1 %v1685_v53  ;;  %v6844_v53 = vpop.permute.xlu0 %1780  ;;  %v6846_v20 = vpop.permute.xlu1 %1776 }
 0x498   :  { %v6848_v0 = vpop.permute.xlu0 %1791  ;;  %v6850_v42 = vpop.permute.xlu1 %1787 }
 0x49c   :  { %v6852_v38 = vpop.permute.xlu0 %1802  ;;  %v6854_v32 = vpop.permute.xlu1 %1795 }
 0x4a0   :  { %v6856_v46 = vpop.permute.xlu0 %1810  ;;  %v6858_v25 = vpop.permute.xlu1 %1806 }
 0x4a4   :  { %v6860_v29 = vpop.permute.xlu0 %1821  ;;  %v6863_v51 = vpop.permute.xlu1 %1817 }
 0x4a5   :  { %2962 = vrot.lane.b32.xlu0 %v1633_v40, %s5750_s20  ;;  %2964 = vrot.lane.b32.xlu1 %v1634_v4, %s5750_s20 }
 0x4a8   :  { %v6866_v24 = vpop.permute.xlu0 %1832  ;;  %v6870_v59 = vpop.permute.xlu1 %1825 }
 0x4a9   :  { %2966 = vrot.lane.b32.xlu0 %v1635_v48, %s5750_s20  ;;  %2976 = vrot.lane.b32.xlu1 %v1640_v44, %s5750_s20 }
 0x4ac   :  { %v6873_v63 = vpop.permute.xlu0 %1840  ;;  %v6877_v40 = vpop.permute.xlu1 %1836 }
 0x4ad   :  { %2974 = vrot.lane.b32.xlu0 %v1639_v19, %s5750_s20  ;;  %2980 = vrot.lane.b32.xlu1 %v1642_v33, %s5750_s20 }
 0x4b0   :  { %v6879_v4 = vpop.permute.xlu0 %2524  ;;  %v6884_v48 = vpop.permute.xlu1 %2528 }
 0x4b1   :  { %2978 = vrot.lane.b32.xlu0 %v1641_v56, %s5750_s20  ;;  %2984 = vrot.lane.b32.xlu1 %v1644_v31, %s5750_s20  ;;  %8392 = vst [vmem:[#allocation55_spill] sm:$0xff] %v6879_v4  ;;  %8393 = vst [vmem:[#allocation56_spill] sm:$0xff] %v6884_v48 }
 0x4b4   :  { %v2945_v44 = vpop.permute.xlu0 %2944 }
 0x4b5   :  { %2982 = vrot.lane.b32.xlu0 %v1643_v18, %s5750_s20 }
 0x4d4   :  { %1680 = vadd.xlane.f32.xlu0 %v1679_v61  ;;  %v1703_v61 = vsel %vm1648_vm5, %v1642_v33, 0.0  ;;  %v2947_v33 = vpop.permute.xlu1 %2946 }
 0x4d5   :  { %1677 = vadd.xlane.f32.xlu1 %v1676_v57  ;;  %v1700_v57 = vsel %vm1648_vm5, %v1641_v56, 0.0  ;;  %v6888_v56 = vpop.xlane.xlu0 %1653 }
 0x4d8   :  { %1683 = vadd.xlane.f32.xlu0 %v1682_v58  ;;  %v1706_v58 = vsel %vm1648_vm5, %v1643_v18, 0.0  ;;  %v2949_v18 = vpop.permute.xlu1 %2948 }
 0x4d9   :  { %1695 = vadd.xlane.f32.xlu1 %v1694_v14  ;;  %v1583_v14 = vcombine.high %v6752_v7, %v6752_v7 }
 0x4db   :  { %v1615_v19 = vrot.slane %v1583_v14, %v5885_v2 }
 0x4dc   :  { %1698 = vadd.xlane.f32.xlu0 %v1697_v62  ;;  %v1709_v62 = vsel %vm1648_vm5, %v1644_v31, 0.0  ;;  %v6894_v7 = vpop.xlane.xlu1 %1650 }
 0x4dd   :  { %1704 = vadd.xlane.f32.xlu1 %v1703_v61  ;;  %v1646_v61 = vmul.f32 %v1615_v19, %v6729_v41  ;;  %v1645_v31 = vmul.f32 %v1615_v19, %v6738_v36 }
 0x4df   :  { %v1712_v36 = vsel %vm1648_vm5, %v1645_v31, 0.0 }
 0x4e0   :  { %1701 = vadd.xlane.f32.xlu0 %v1700_v57  ;;  %v6892_v57 = vpop.xlane.xlu0 %1656  ;;  %v2951_v22 = vpop.permute.xlu1 %2950 }
 0x4e4   :  { %1707 = vadd.xlane.f32.xlu0 %v1706_v58  ;;  %v2953_v58 = vpop.permute.xlu0 %2952  ;;  %v2957_v14 = vpop.permute.xlu1 %2956 }
 0x4e5   :  { %v3028_v28 = vsel %vm1648_vm5, %v2953_v58, 0.0 }
 0x4e8   :  { %1710 = vadd.xlane.f32.xlu0 %v1709_v62  ;;  %v2955_v10 = vpop.permute.xlu0 %2954  ;;  %v1647_v62 = vmul.f32 %v1615_v19, %v6735_v55  ;;  %v2961_v39 = vpop.permute.xlu1 %2960  ;;  %v3019_v19 = vsel %vm1648_vm5, %v2947_v33, 0.0 }
 0x4e9   :  { %v3031_v27 = vsel %vm1648_vm5, %v2955_v10, 0.0  ;;  %v3016_v10 = vsel %vm1648_vm5, %v2945_v44, 0.0  ;;  %v3034_v44 = vsel %vm1648_vm5, %v2957_v14, 0.0 }
 0x4ea   :  { %v1718_v58 = vsel %vm1648_vm5, %v1647_v62, 0.0 }
 0x4ec   :  { %v2959_v41 = vpop.permute.xlu0 %2958  ;;  %v2969_v60 = vpop.permute.xlu1 %2968 }
 0x4ed   :  { %v3037_v33 = vsel %vm1648_vm5, %v2959_v41, 0.0  ;;  %v3022_v41 = vsel %vm1648_vm5, %v2949_v18, 0.0 }
 0x4ee   :  { %2988 = vrot.lane.b32.xlu1 %v1646_v61, %s5750_s20 }
 0x4f0   :  { %v2971_v13 = vpop.permute.xlu0 %2970  ;;  %v2973_v34 = vpop.permute.xlu1 %2972 }
 0x4fe   :  { %2986 = vrot.lane.b32.xlu0 %v1645_v31, %s5750_s20 }
 0x502   :  { %2990 = vrot.lane.b32.xlu0 %v1647_v62, %s5750_s20 }
 0x50c   :  { %v6900_v11 = vpop.xlane.xlu0 %1659 }
 0x510   :  { %v6902_v35 = vpop.xlane.xlu0 %1668 }
 0x512   :  { %1713 = vadd.xlane.f32.xlu1 %v1712_v36  ;;  %v1715_v36 = vsel %vm1648_vm5, %v1646_v61, 0.0 }
 0x514   :  { %v6905_v26 = vpop.xlane.xlu0 %1674 }
 0x515   :  { %v6908_v55 = vpop.xlane.xlu1 %1662 }
 0x516   :  { %3020 = vadd.xlane.f32.xlu1 %v3019_v19  ;;  %v3040_v19 = vsel %vm1648_vm5, %v2961_v39, 0.0  ;;  %v3025_v39 = vsel %vm1648_vm5, %v2951_v22, 0.0 }
 0x518   :  { %v6911_v5 = vpop.xlane.xlu0 %1689 }
 0x519   :  { %v6913_v23 = vpop.xlane.xlu1 %1665 }
 0x51a   :  { %3029 = vadd.xlane.f32.xlu1 %v3028_v28 }
 0x51c   :  { %v6916_v31 = vpop.xlane.xlu0 %1692 }
 0x51d   :  { %v6920_v9 = vpop.xlane.xlu1 %1671 }
 0x51e   :  { %3032 = vadd.xlane.f32.xlu1 %v3031_v27  ;;  %v3055_v27 = vsel %vm1648_vm5, %v2971_v13, 0.0 }
 0x520   :  { %v2963_v28 = vpop.permute.xlu0 %2962 }
 0x521   :  { %1716 = vadd.xlane.f32.xlu0 %v1715_v36  ;;  %v6924_v30 = vpop.xlane.xlu1 %1686  ;;  %v3058_v36 = vsel %vm1648_vm5, %v2973_v34, 0.0 }
 0x522   :  { %3038 = vadd.xlane.f32.xlu1 %v3037_v33 }
 0x524   :  { %v2967_v61 = vpop.permute.xlu0 %2966 }
 0x525   :  { %1719 = vadd.xlane.f32.xlu0 %v1718_v58  ;;  %v2965_v62 = vpop.permute.xlu1 %2964  ;;  %v3049_v13 = vsel %vm1648_vm5, %v2967_v61, 0.0 }
 0x526   :  { %3041 = vadd.xlane.f32.xlu1 %v3040_v19  ;;  %v3046_v33 = vsel %vm1648_vm5, %v2965_v62, 0.0 }
 0x528   :  { %v2975_v58 = vpop.permute.xlu0 %2974 }
 0x529   :  { %3017 = vadd.xlane.f32.xlu0 %v3016_v10  ;;  %v2977_v19 = vpop.permute.xlu1 %2976  ;;  %v3052_v10 = vsel %vm1648_vm5, %v2969_v60, 0.0  ;;  %v3061_v14 = vsel %vm1648_vm5, %v2975_v58, 0.0 }
 0x52a   :  { %3056 = vadd.xlane.f32.xlu1 %v3055_v27  ;;  %v3064_v34 = vsel %vm1648_vm5, %v2977_v19, 0.0  ;;  %v3043_v27 = vsel %vm1648_vm5, %v2963_v28, 0.0 }
 0x52c   :  { %v2979_v18 = vpop.permute.xlu0 %2978 }
 0x52d   :  { %3023 = vadd.xlane.f32.xlu0 %v3022_v41  ;;  %v2981_v22 = vpop.permute.xlu1 %2980  ;;  %v3067_v41 = vsel %vm1648_vm5, %v2979_v18, 0.0 }
 0x52e   :  { %3059 = vadd.xlane.f32.xlu1 %v3058_v36  ;;  %v3070_v60 = vsel %vm1648_vm5, %v2981_v22, 0.0 }
 0x530   :  { %v2983_v36 = vpop.permute.xlu0 %2982 }
 0x531   :  { %3026 = vadd.xlane.f32.xlu0 %v3025_v39  ;;  %v3073_v61 = vsel %vm1648_vm5, %v2983_v36, 0.0  ;;  %v2985_v62 = vpop.permute.xlu1 %2984 }
 0x532   :  { %3047 = vadd.xlane.f32.xlu1 %v3046_v33  ;;  %v3076_v39 = vsel %vm1648_vm5, %v2985_v62, 0.0  ;;  %v6947_v62 = vsub.f32 %v6894_v7, %v6304_v49  ;;  %v6971_v7 = vsub.f32 %v6902_v35, %v6492_v52  ;;  %v6987_v35 = vsub.f32 %v6920_v9, %v6830_v15 }
 0x535   :  { %3035 = vadd.xlane.f32.xlu0 %v3034_v44 }
 0x536   :  { %3050 = vadd.xlane.f32.xlu1 %v3049_v13 }
 0x539   :  { %3053 = vadd.xlane.f32.xlu0 %v3052_v10 }
 0x53a   :  { %3065 = vadd.xlane.f32.xlu1 %v3064_v34 }
 0x53d   :  { %3044 = vadd.xlane.f32.xlu0 %v3043_v27 }
 0x53e   :  { %3068 = vadd.xlane.f32.xlu1 %v3067_v41 }
 0x541   :  { %3062 = vadd.xlane.f32.xlu0 %v3061_v14 }
 0x542   :  { %3074 = vadd.xlane.f32.xlu1 %v3073_v61 }
 0x545   :  { %3071 = vadd.xlane.f32.xlu0 %v3070_v60  ;;  %v6951_v60 = vsub.f32 %v6888_v56, %v6300_v6  ;;  %v6967_v56 = vsub.f32 %v6908_v55, %v6308_v12  ;;  %v6991_v55 = vsub.f32 %v6911_v5, %v6848_v0 }
 0x546   :  { %3077 = vadd.xlane.f32.xlu1 %v3076_v39  ;;  %v6957_v39 = vsub.f32 %v6900_v11, %v6302_v43  ;;  %v6977_v11 = vsub.f32 %v6913_v23, %v6490_v54  ;;  %v6997_v23 = vsub.f32 %v6924_v30, %v6850_v42 }
 0x561   :  { %v1681_v33 = vpop.xlane.xlu0 %1680 }
 0x562   :  { %v1678_v28 = vpop.xlane.xlu1 %1677  ;;  %v7009_v9 = vsub.f32 %v1681_v33, %v6846_v20 }
 0x563   :  { %v7006_v5 = vsub.f32 %v1678_v28, %v6838_v16 }
 0x565   :  { %v1684_v44 = vpop.xlane.xlu0 %1683 }
 0x566   :  { %v1696_v13 = vpop.xlane.xlu1 %1695 }
 0x567   :  { %v7014_v30 = vsub.f32 %v1696_v13, %v6852_v38 }
 0x569   :  { %v1699_v19 = vpop.xlane.xlu0 %1698 }
 0x56a   :  { %v1705_v18 = vpop.xlane.xlu1 %1704 }
 0x56b   :  { %v7022_v28 = vsub.f32 %v1705_v18, %v6863_v51 }
 0x56d   :  { %v1702_v10 = vpop.xlane.xlu0 %1701 }
 0x56e   :  { %v2989_v34 = vpop.permute.xlu1 %2988  ;;  %v7033_v21 = vsub.f32 %v1702_v10, %v6856_v46 }
 0x56f   :  { %v3082_v58 = vsel %vm1648_vm5, %v2989_v34, 0.0  ;;  %v6961_v34 = vsub.f32 %v6892_v57, %v6306_v50  ;;  %v6981_v57 = vsub.f32 %v6905_v26, %v6842_v45  ;;  %v7001_v26 = vsub.f32 %v6916_v31, %v6854_v32 }
 0x570   :  { %3083 = vadd.xlane.f32.xlu1 %v3082_v58  ;;  %v7017_v31 = vsub.f32 %v1684_v44, %v6844_v53 }
 0x571   :  { %v1708_v27 = vpop.xlane.xlu0 %1707 }
 0x572   :  { %v7041_v4 = vsub.f32 %v1708_v27, %v6860_v29 }
 0x575   :  { %v1711_v41 = vpop.xlane.xlu0 %1710 }
 0x579   :  { %v2987_v36 = vpop.permute.xlu0 %2986 }
 0x57a   :  { %v3079_v22 = vsel %vm1648_vm5, %v2987_v36, 0.0 }
 0x57b   :  { %3080 = vadd.xlane.f32.xlu0 %v3079_v22 }
 0x57d   :  { %v2991_v14 = vpop.permute.xlu0 %2990 }
 0x57e   :  { %v3085_v61 = vsel %vm1648_vm5, %v2991_v14, 0.0 }
 0x57f   :  { %3086 = vadd.xlane.f32.xlu1 %v3085_v61  ;;  %v7025_v61 = vsub.f32 %v1699_v19, %v6858_v25 }
 0x581   :  { %8394 = vst [vmem:[#allocation57_spill] sm:$0xff] %v7025_v61 }
 0x590   :  { %1915 = vperm.xlu1 %5356, %v6947_v62  }
 0x591   :  { %1918 = vperm.xlu0 %5357, %v6951_v60  }
 0x594   :  { %1924 = vperm.xlu1 %5356, %v6957_v39  }
 0x595   :  { %1921 = vperm.xlu0 %5357, %v6961_v34  }
 0x598   :  { %1927 = vperm.xlu1 %5356, %v6967_v56  }
 0x599   :  { %1933 = vperm.xlu0 %5357, %v6971_v7  }
 0x59c   :  { %1930 = vperm.xlu1 %5356, %v6977_v11  }
 0x59d   :  { %1939 = vperm.xlu0 %5357, %v6981_v57  }
 0x59f   :  { %v1714_v58 = vpop.xlane.xlu1 %1713 }
 0x5a0   :  { %1936 = vperm.xlu1 %5356, %v6987_v35   ;;  %v7030_v44 = vsub.f32 %v1714_v58, %v6866_v24 }
 0x5a1   :  { %1954 = vperm.xlu0 %5357, %v6991_v55  }
 0x5a2   :  { %8395 = vst [vmem:[#allocation58_spill] sm:$0xff] %v7030_v44 }
 0x5a3   :  { %v3021_v36 = vpop.xlane.xlu1 %3020 }
 0x5a4   :  { %1951 = vperm.xlu1 %5356, %v6997_v23   ;;  %v7038_v19 = vsub.f32 %v3021_v36, %v6300_v6 }
 0x5a5   :  { %1957 = vperm.xlu0 %5357, %v7001_v26  }
 0x5a7   :  { %v3030_v22 = vpop.xlane.xlu1 %3029 }
 0x5a8   :  { %1942 = vperm.xlu1 %5356, %v7006_v5   ;;  %v7046_v10 = vsub.f32 %v3030_v22, %v6308_v12 }
 0x5a9   :  { %1945 = vperm.xlu0 %5357, %v7009_v9  }
 0x5aa   :  { %8396 = vst [vmem:[#allocation59_spill] sm:$0xff] %v7046_v10 }
 0x5ab   :  { %v3033_v14 = vpop.xlane.xlu1 %3032 }
 0x5ac   :  { %1960 = vperm.xlu1 %5356, %v7014_v30   ;;  %v7054_v6 = vsub.f32 %v3033_v14, %v6490_v54 }
 0x5ad   :  { %1948 = vperm.xlu0 %5357, %v7017_v31  }
 0x5ae   :  { %v1717_v33 = vpop.xlane.xlu0 %1716  ;;  %8397 = vst [vmem:[#allocation60_spill] sm:$0xff] %v7054_v6 }
 0x5af   :  { %v3039_v47 = vpop.xlane.xlu1 %3038  ;;  %v7057_v27 = vsub.f32 %v1717_v33, %v6877_v40 }
 0x5b0   :  { %1969 = vperm.xlu1 %5356, %v7022_v28   ;;  %v7062_v12 = vsub.f32 %v3039_v47, %v6830_v15 }
 0x5b1   :  { %1963 = vperm.xlu0 %5357, %v7025_v61   ;;  %v7049_v61 = vsub.f32 %v1711_v41, %v6870_v59 }
 0x5b2   :  { %v1720_v13 = vpop.xlane.xlu0 %1719  ;;  %8398 = vst [vmem:[#allocation61_spill] sm:$0xff] %v7062_v12 }
 0x5b3   :  { %v3042_v48 = vpop.xlane.xlu1 %3041  ;;  %v7065_v22 = vsub.f32 %v1720_v13, %v6873_v63 }
 0x5b4   :  { %1978 = vperm.xlu1 %5356, %v7030_v44   ;;  %v7070_v54 = vsub.f32 %v3042_v48, %v6842_v45 }
 0x5b5   :  { %1966 = vperm.xlu0 %5357, %v7033_v21  }
 0x5b6   :  { %v3018_v18 = vpop.xlane.xlu0 %3017  ;;  %8399 = vst [vmem:[#allocation62_spill] sm:$0xff] %v7070_v54 }
 0x5b7   :  { %v3057_v58 = vpop.xlane.xlu1 %3056  ;;  %v7073_v14 = vsub.f32 %v3018_v18, %v6304_v49 }
 0x5b8   :  { %3140 = vperm.xlu1 %5356, %v7038_v19   ;;  %v7078_v47 = vsub.f32 %v3057_v58, %v6848_v0 }
 0x5b9   :  { %1972 = vperm.xlu0 %5357, %v7041_v4  }
 0x5ba   :  { %v3024_v44 = vpop.xlane.xlu0 %3023  ;;  %8400 = vst [vmem:[#allocation63_spill] sm:$0xff] %v7078_v47 }
 0x5bb   :  { %v3060_v36 = vpop.xlane.xlu1 %3059  ;;  %v7081_v15 = vsub.f32 %v3024_v44, %v6306_v50 }
 0x5bc   :  { %3149 = vperm.xlu1 %5356, %v7046_v10   ;;  %v7086_v45 = vsub.f32 %v3060_v36, %v6854_v32 }
 0x5bd   :  { %1975 = vperm.xlu0 %5357, %v7049_v61   ;;  %8401 = vst [vmem:[#allocation64_spill] sm:$0xff] %v7081_v15 }
 0x5be   :  { %v3027_v41 = vpop.xlane.xlu0 %3026  ;;  %8402 = vst [vmem:[#allocation65_spill] sm:$0xff] %v7086_v45 }
 0x5bf   :  { %v3048_v10 = vpop.xlane.xlu1 %3047  ;;  %v7089_v48 = vsub.f32 %v3027_v41, %v6302_v43 }
 0x5c0   :  { %3152 = vperm.xlu1 %5356, %v7054_v6   ;;  %v7094_v50 = vsub.f32 %v3048_v10, %v6846_v20 }
 0x5c1   :  { %1981 = vperm.xlu0 %5357, %v7057_v27   ;;  %8403 = vst [vmem:[#allocation66_spill] sm:$0xff] %v7089_v48 }
 0x5c2   :  { %v3036_v33 = vpop.xlane.xlu0 %3035  ;;  %8404 = vst [vmem:[#allocation67_spill] sm:$0xff] %v7094_v50 }
 0x5c3   :  { %v3051_v13 = vpop.xlane.xlu1 %3050  ;;  %v7097_v0 = vsub.f32 %v3036_v33, %v6492_v52 }
 0x5c4   :  { %3158 = vperm.xlu1 %5356, %v7062_v12   ;;  %v7102_v32 = vsub.f32 %v3051_v13, %v6844_v53 }
 0x5c5   :  { %1984 = vperm.xlu0 %5357, %v7065_v22   ;;  %8405 = vst [vmem:[#allocation68_spill] sm:$0xff] %v7097_v0 }
 0x5c6   :  { %v3054_v49 = vpop.xlane.xlu0 %3053  ;;  %8406 = vst [vmem:[#allocation69_spill] sm:$0xff] %v7102_v32 }
 0x5c7   :  { %v3066_v18 = vpop.xlane.xlu1 %3065  ;;  %v7105_v43 = vsub.f32 %v3054_v49, %v6850_v42 }
 0x5c8   :  { %3161 = vperm.xlu1 %5356, %v7070_v54   ;;  %v7110_v20 = vsub.f32 %v3066_v18, %v6858_v25 }
 0x5c9   :  { %3137 = vperm.xlu0 %5357, %v7073_v14   ;;  %8407 = vst [vmem:[#allocation70_spill] sm:$0xff] %v7105_v43 }
 0x5ca   :  { %v3045_v44 = vpop.xlane.xlu0 %3044  ;;  %8408 = vst [vmem:[#allocation71_spill] sm:$0xff] %v7110_v20 }
 0x5cb   :  { %v3069_v58 = vpop.xlane.xlu1 %3068  ;;  %v7113_v10 = vsub.f32 %v3045_v44, %v6838_v16 }
 0x5cc   :  { %3176 = vperm.xlu1 %5356, %v7078_v47   ;;  %v7118_v53 = vsub.f32 %v3069_v58, %v6856_v46  ;;  %v2552_v58 = vrot.slane %v6107_v37, %v5901_v8  ;;  %v8422_v47 = vld [vmem:[#allocation20_spill] sm:$0xff] }
 0x5cd   :  { %3143 = vperm.xlu0 %5357, %v7081_v15   ;;  %8409 = vst [vmem:[#allocation72_spill] sm:$0xff] %v7113_v10 }
 0x5ce   :  { %v3063_v52 = vpop.xlane.xlu0 %3062  ;;  %8410 = vst [vmem:[#allocation73_spill] sm:$0xff] %v7118_v53 }
 0x5cf   :  { %v3075_v36 = vpop.xlane.xlu1 %3074  ;;  %v7121_v42 = vsub.f32 %v3063_v52, %v6852_v38 }
 0x5d0   :  { %3179 = vperm.xlu1 %5356, %v7086_v45   ;;  %v7126_v25 = vsub.f32 %v3075_v36, %v6860_v29  ;;  %v8418_v36 = vld [vmem:[#allocation22_spill] sm:$0xff] }
 0x5d1   :  { %3146 = vperm.xlu0 %5357, %v7089_v48   ;;  %8411 = vst [vmem:[#allocation74_spill] sm:$0xff] %v7121_v42 }
 0x5d2   :  { %v3072_v41 = vpop.xlane.xlu0 %3071  ;;  %8412 = vst [vmem:[#allocation75_spill] sm:$0xff] %v7126_v25 }
 0x5d3   :  { %v7129_v16 = vsub.f32 %v3072_v41, %v6863_v51  ;;  %v3078_v33 = vpop.xlane.xlu1 %3077 }
 0x5d4   :  { %3167 = vperm.xlu1 %5356, %v7094_v50   ;;  %v7134_v46 = vsub.f32 %v3078_v33, %v6870_v59  ;;  %v2537_v59 = vrot.slane %v6107_v37, %v5888_v3  ;;  %v7156_v33 = vrot.slane %v6107_v37, %v5918_v17 }
 0x5d5   :  { %3155 = vperm.xlu0 %5357, %v7097_v0   ;;  %8413 = vst [vmem:[#allocation76_spill] sm:$0xff] %v7129_v16 }
 0x5d6   :  { %8414 = vst [vmem:[#allocation77_spill] sm:$0xff] %v7134_v46  ;;  %8419 = vst [vmem:[#allocation22_spill] sm:$0xff] %v7156_v33 }
 0x5d8   :  { %3170 = vperm.xlu1 %5356, %v7102_v32  }
 0x5d9   :  { %3173 = vperm.xlu0 %5357, %v7105_v43  }
 0x5dc   :  { %3185 = vperm.xlu1 %5356, %v7110_v20  }
 0x5dd   :  { %3164 = vperm.xlu0 %5357, %v7113_v10  }
 0x5e0   :  { %3188 = vperm.xlu1 %5356, %v7118_v53  }
 0x5e1   :  { %3182 = vperm.xlu0 %5357, %v7121_v42   ;;  %v7169_v42 = vsub.s32 %v8422_v47, %v5882_v1 }
 0x5e4   :  { %3194 = vperm.xlu1 %5356, %v7126_v25  }
 0x5e5   :  { %3191 = vperm.xlu0 %5357, %v7129_v16   ;;  %v1990_v16 = vadd.s32 4294967288, %v8422_v47 }
 0x5e8   :  { %3197 = vperm.xlu1 %5356, %v7134_v46  }
 0x5fd   :  { %v3084_v38 = vpop.xlane.xlu1 %3083 }
 0x5fe   :  { %v7138_v13 = vsub.f32 %v3084_v38, %v6877_v40 }
 0x600   :  { %8415 = vst [vmem:[#allocation78_spill] sm:$0xff] %v7138_v13  ;;  %3203 = vperm.xlu1 %5356, %v7138_v13   ;;  %v8420_v13 = vld [vmem:[#allocation16_spill] sm:$0xff] }
 0x608   :  { %v3081_v29 = vpop.xlane.xlu0 %3080 }
 0x609   :  { %v7142_v51 = vsub.f32 %v3081_v29, %v6866_v24 }
 0x60b   :  { %8416 = vst [vmem:[#allocation79_spill] sm:$0xff] %v7142_v51  ;;  %3200 = vperm.xlu0 %5357, %v7142_v51  }
 0x60c   :  { %v3087_v49 = vpop.xlane.xlu1 %3086 }
 0x60d   :  { %v7146_v18 = vsub.f32 %v3087_v49, %v6873_v63 }
 0x60f   :  { %8417 = vst [vmem:[#allocation80_spill] sm:$0xff] %v7146_v18  ;;  %2539 = vbcast.lane.b32.xlu0 %v2537_v59, 256  ;;  %3206 = vperm.xlu1 %5356, %v7146_v18  }
 0x610   :  { %v1919_v40 = vpop.permute.xlu0 %1918  ;;  %v1916_v44 = vpop.permute.xlu1 %1915 }
 0x611   :  { %v1989_v0 = vrot.slane %v1916_v44, %v7169_v42 }
 0x613   :  { %2554 = vbcast.lane.b32.xlu0 %v2552_v58, 256  ;;  %2543 = vbcast.lane.b32.xlu1 %v2537_v59, 264 }
 0x614   :  { %v1922_v24 = vpop.permute.xlu0 %1921  ;;  %v1925_v52 = vpop.permute.xlu1 %1924 }
 0x617   :  { %2532 = vbcast.lane.b32.xlu0 %v8418_v36, 272  ;;  %2558 = vbcast.lane.b32.xlu1 %v2552_v58, 264  ;;  %v7162_v36 = vrot.slane %v6107_v37, %v8420_v13  ;;  %v7172_v37 = vsub.s32 %v1990_v16, %v5882_v1 }
 0x618   :  { %v1934_v63 = vpop.permute.xlu0 %1933  ;;  %v1928_v41 = vpop.permute.xlu1 %1927 }
 0x619   :  { %8421 = vst [vmem:[#allocation16_spill] sm:$0xff] %v7162_v36  ;;  %v2011_v43 = vrot.slane %v1928_v41, %v7172_v37  ;;  %v1994_v12 = vrot.slane %v1919_v40, %v7172_v37 }
 0x61b   :  { %2569 = vbcast.lane.b32.xlu0 %v7156_v33, 256  ;;  %2547 = vbcast.lane.b32.xlu1 %v2537_v59, 272 }
 0x61c   :  { %v1940_v38 = vpop.permute.xlu0 %1939  ;;  %v1931_v29 = vpop.permute.xlu1 %1930 }
 0x61f   :  { %2562 = vbcast.lane.b32.xlu0 %v2552_v58, 272  ;;  %2573 = vbcast.lane.b32.xlu1 %v7156_v33, 264  ;;  %v1997_v58 = vadd.s32 4294967280, %v8422_v47  ;;  %v2021_v47 = vrot.slane %v1934_v63, %v7169_v42 }
 0x620   :  { %v1955_v49 = vpop.permute.xlu0 %1954  ;;  %v1937_v18 = vpop.permute.xlu1 %1936 }
 0x621   :  { %v2025_v50 = vrot.slane %v1937_v18, %v7172_v37 }
 0x623   :  { %2584 = vbcast.lane.b32.xlu1 %v7162_v36, 256  ;;  %v7175_v36 = vsub.s32 %v1997_v58, %v5882_v1  ;;  %v2007_v1 = vrot.slane %v1925_v52, %v7169_v42  ;;  %v2026_v41 = vsel %vm1995_vm6, %v2025_v50, %v2021_v47 }
 0x624   :  { %v1958_v46 = vpop.permute.xlu0 %1957  ;;  %v1952_v25 = vpop.permute.xlu1 %1951 }
 0x625   :  { %v2016_v6 = vrot.slane %v1931_v29, %v7175_v36  ;;  %v2001_v16 = vrot.slane %v1922_v24, %v7175_v36  ;;  %v2012_v40 = vsel %vm1995_vm6, %v2011_v43, %v2007_v1  ;;  %v2030_v44 = vrot.slane %v1940_v38, %v7175_v36 }
 0x626   :  { %v1996_v29 = vsel %vm1995_vm6, %v1994_v12, %v1989_v0  ;;  %v2049_v52 = vrot.slane %v1952_v25, %v7169_v42  ;;  %v2053_v43 = vrot.slane %v1955_v49, %v7172_v37  ;;  %v2058_v25 = vrot.slane %v1958_v46, %v7175_v36 }
 0x627   :  { %v2017_v24 = vsel %vm2002_vm7, %v2016_v6, %v2012_v40 }
 0x628   :  { %v1946_v53 = vpop.permute.xlu0 %1945  ;;  %v1943_v20 = vpop.permute.xlu1 %1942 }
 0x629   :  { %v2039_v58 = vrot.slane %v1946_v53, %v7172_v37  ;;  %v2035_v18 = vrot.slane %v1943_v20, %v7169_v42  ;;  %v2003_v53 = vsel %vm2002_vm7, %v2001_v16, %v1996_v29  ;;  %v2031_v20 = vsel %vm2002_vm7, %v2030_v44, %v2026_v41 }
 0x62a   :  { %v2102_v0 = vsel %vm1447_vm12, %v2017_v24, %v2003_v53 }
 0x62b   :  { %v2040_v48 = vsel %vm1995_vm6, %v2039_v58, %v2035_v18  ;;  %v2103_v58 = vsel %vm1449_vm13, %v2031_v20, %v2102_v0 }
 0x62c   :  { %v1949_v45 = vpop.permute.xlu0 %1948  ;;  %v1961_v51 = vpop.permute.xlu1 %1960 }
 0x62d   :  { %v2044_v15 = vrot.slane %v1949_v45, %v7175_v36  ;;  %v2063_v47 = vrot.slane %v1961_v51, %v7169_v42 }
 0x62f   :  { %v2045_v38 = vsel %vm2002_vm7, %v2044_v15, %v2040_v48 }
 0x630   :  { %v1964_v59 = vpop.permute.xlu0 %1963  ;;  %v1970_v33 = vpop.permute.xlu1 %1969  ;;  %v2104_v15 = vsel %vm1451_vm3, %v2045_v38, %v2103_v58 }
 0x631   :  { %v2067_v50 = vrot.slane %v1964_v59, %v7172_v37  ;;  %v2054_v59 = vsel %vm1995_vm6, %v2053_v43, %v2049_v52  ;;  %v2077_v49 = vrot.slane %v1970_v33, %v7169_v42 }
 0x632   :  { %v2059_v51 = vsel %vm2002_vm7, %v2058_v25, %v2054_v59 }
 0x633   :  { %v2068_v48 = vsel %vm1995_vm6, %v2067_v50, %v2063_v47 }
 0x634   :  { %v1967_v32 = vpop.permute.xlu0 %1966  ;;  %v1979_v54 = vpop.permute.xlu1 %1978 }
 0x635   :  { %v2072_v12 = vrot.slane %v1967_v32, %v7175_v36  ;;  %v2091_v18 = vrot.slane %v1979_v54, %v7169_v42 }
 0x638   :  { %v1973_v10 = vpop.permute.xlu0 %1972  ;;  %v7198_v45 = vpop.permute.xlu1 %3140 }
 0x639   :  { %v2081_v6 = vrot.slane %v1973_v10, %v7172_v37  ;;  %v2073_v10 = vsel %vm2002_vm7, %v2072_v12, %v2068_v48 }
 0x63b   :  { %v2082_v46 = vsel %vm1995_vm6, %v2081_v6, %v2077_v49 }
 0x63c   :  { %v1976_v63 = vpop.permute.xlu0 %1975  ;;  %v3150_v40 = vpop.permute.xlu1 %3149 }
 0x63d   :  { %v2086_v16 = vrot.slane %v1976_v63, %v7175_v36  ;;  %v2105_v63 = vsel %vm1453_vm14, %v2059_v51, %v2104_v15 }
 0x63e   :  { %v2106_v24 = vsel %vm1455_vm0, %v2073_v10, %v2105_v63 }
 0x63f   :  { %v2087_v41 = vsel %vm2002_vm7, %v2086_v16, %v2082_v46 }
 0x640   :  { %v1982_v1 = vpop.permute.xlu0 %1981  ;;  %v2107_v53 = vsel %vm1457_vm1, %v2087_v41, %v2106_v24  ;;  %v3153_v50 = vpop.permute.xlu1 %3152 }
 0x641   :  { %v2095_v32 = vrot.slane %v1982_v1, %v7172_v37 }
 0x643   :  { %v2096_v29 = vsel %vm1995_vm6, %v2095_v32, %v2091_v18  ;;  %v3229_v18 = vrot.slane %v3150_v40, %v7172_v37 }
 0x644   :  { %v1985_v44 = vpop.permute.xlu0 %1984  ;;  %v3159_v43 = vpop.permute.xlu1 %3158 }
 0x645   :  { %v2100_v33 = vrot.slane %v1985_v44, %v7175_v36  ;;  %v3243_v44 = vrot.slane %v3159_v43, %v7172_v37 }
 0x647   :  { %v2101_v52 = vsel %vm2002_vm7, %v2100_v33, %v2096_v29 }
 0x648   :  { %v2108_v20 = vsel %vm1459_vm4, %v2101_v52, %v2107_v53  ;;  %v3162_v38 = vpop.permute.xlu1 %3161  ;;  %v3138_v12 = vpop.permute.xlu0 %3137  ;;  %v3215_v52 = vrot.slane %v7198_v45, %v7172_v37  ;;  %v3234_v53 = vrot.slane %v3153_v50, %v7175_v36 }
 0x649   :  { %v2110_v54 = vsel %vm1407_vm2, %v2108_v20, -inf  ;;  %v3211_v33 = vrot.slane %v3138_v12, %v7169_v42  ;;  %v3248_v40 = vrot.slane %v3162_v38, %v7175_v36 }
 0x64a   :  { %2111 = vmax.xlane.f32.xlu0 %v2110_v54 }
 0x64c   :  { %v3177_v6 = vpop.permute.xlu1 %3176  ;;  %v3144_v0 = vpop.permute.xlu0 %3143 }
 0x64d   :  { %v3220_v63 = vrot.slane %v3144_v0, %v7175_v36  ;;  %v3216_v0 = vsel %vm1995_vm6, %v3215_v52, %v3211_v33 }
 0x64f   :  { %v3221_v50 = vsel %vm2002_vm7, %v3220_v63, %v3216_v0 }
 0x650   :  { %v3180_v25 = vpop.permute.xlu1 %3179  ;;  %v3147_v47 = vpop.permute.xlu0 %3146 }
 0x651   :  { %v3225_v32 = vrot.slane %v3147_v47, %v7169_v42 }
 0x653   :  { %v3230_v29 = vsel %vm1995_vm6, %v3229_v18, %v3225_v32 }
 0x654   :  { %v3168_v16 = vpop.permute.xlu1 %3167  ;;  %v3156_v1 = vpop.permute.xlu0 %3155 }
 0x655   :  { %v3239_v51 = vrot.slane %v3156_v1, %v7169_v42  ;;  %v3257_v24 = vrot.slane %v3168_v16, %v7172_v37  ;;  %v3235_v1 = vsel %vm2002_vm7, %v3234_v53, %v3230_v29  ;;  %v3276_v29 = vrot.slane %v3180_v25, %v7175_v36 }
 0x657   :  { %v3244_v20 = vsel %vm1995_vm6, %v3243_v44, %v3239_v51 }
 0x658   :  { %v3171_v59 = vpop.permute.xlu1 %3170  ;;  %v3174_v58 = vpop.permute.xlu0 %3173  ;;  %v3249_v38 = vsel %vm2002_vm7, %v3248_v40, %v3244_v20 }
 0x659   :  { %v3267_v16 = vrot.slane %v3174_v58, %v7169_v42  ;;  %v3262_v45 = vrot.slane %v3171_v59, %v7175_v36  ;;  %v3320_v58 = vsel %vm1447_vm12, %v3235_v1, %v3221_v50 }
 0x65a   :  { %v3321_v63 = vsel %vm1449_vm13, %v3249_v38, %v3320_v58 }
 0x65c   :  { %v3186_v49 = vpop.permute.xlu1 %3185  ;;  %v3165_v15 = vpop.permute.xlu0 %3164 }
 0x65d   :  { %v3253_v41 = vrot.slane %v3165_v15, %v7169_v42  ;;  %v3271_v15 = vrot.slane %v3177_v6, %v7172_v37  ;;  %v3285_v32 = vrot.slane %v3186_v49, %v7172_v37 }
 0x65f   :  { %v3258_v54 = vsel %vm1995_vm6, %v3257_v24, %v3253_v41  ;;  %v3272_v49 = vsel %vm1995_vm6, %v3271_v15, %v3267_v16 }
 0x660   :  { %v3189_v48 = vpop.permute.xlu1 %3188  ;;  %v3183_v10 = vpop.permute.xlu0 %3182  ;;  %v3277_v53 = vsel %vm2002_vm7, %v3276_v29, %v3272_v49 }
 0x661   :  { %v3281_v43 = vrot.slane %v3183_v10, %v7169_v42  ;;  %v3263_v10 = vsel %vm2002_vm7, %v3262_v45, %v3258_v54  ;;  %v3290_v51 = vrot.slane %v3189_v48, %v7175_v36 }
 0x662   :  { %v3322_v48 = vsel %vm1451_vm3, %v3263_v10, %v3321_v63 }
 0x663   :  { %v3286_v59 = vsel %vm1995_vm6, %v3285_v32, %v3281_v43 }
 0x664   :  { %v3195_v46 = vpop.permute.xlu1 %3194  ;;  %v3192_v12 = vpop.permute.xlu0 %3191 }
 0x665   :  { %v3295_v18 = vrot.slane %v3192_v12, %v7169_v42  ;;  %v3299_v41 = vrot.slane %v3195_v46, %v7172_v37  ;;  %v3291_v46 = vsel %vm2002_vm7, %v3290_v51, %v3286_v59  ;;  %v3323_v12 = vsel %vm1453_vm14, %v3277_v53, %v3322_v48 }
 0x667   :  { %v3300_v52 = vsel %vm1995_vm6, %v3299_v41, %v3295_v18 }
 0x668   :  { %v3198_v47 = vpop.permute.xlu1 %3197 }
 0x669   :  { %v3304_v44 = vrot.slane %v3198_v47, %v7175_v36  ;;  %v3324_v47 = vsel %vm1455_vm0, %v3291_v46, %v3323_v12 }
 0x66b   :  { %v3305_v20 = vsel %vm2002_vm7, %v3304_v44, %v3300_v52 }
 0x66c   :  { %v3325_v1 = vsel %vm1457_vm1, %v3305_v20, %v3324_v47 }
 0x67f   :  { %v3204_v33 = vpop.permute.xlu1 %3203 }
 0x680   :  { %v3313_v40 = vrot.slane %v3204_v33, %v7172_v37 }
 0x68a   :  { %v3201_v6 = vpop.permute.xlu0 %3200 }
 0x68b   :  { %v3309_v24 = vrot.slane %v3201_v6, %v7169_v42 }
 0x68d   :  { %v3314_v25 = vsel %vm1995_vm6, %v3313_v40, %v3309_v24 }
 0x68e   :  { %v3207_v54 = vpop.permute.xlu1 %3206  ;;  %v7276_v50 = vpop.permute.xlu0 %2539 }
 0x68f   :  { %v3318_v43 = vrot.slane %v3207_v54, %v7175_v36 }
 0x691   :  { %v3319_v0 = vsel %vm2002_vm7, %v3318_v43, %v3314_v25 }
 0x692   :  { %v3326_v16 = vsel %vm1459_vm4, %v3319_v0, %v3325_v1  ;;  %v7278_v15 = vpop.permute.xlu0 %2554 }
 0x693   :  { %v3328_v45 = vsel %vm1407_vm2, %v3326_v16, -inf  ;;  %v8424_v16 = vld [vmem:[#allocation18_spill] sm:$0xff] }
 0x694   :  { %3329 = vmax.xlane.f32.xlu1 %v3328_v45 }
 0x696   :  { %v7280_v38 = vpop.permute.xlu0 %2532 }
 0x69a   :  { %v7282_v32 = vpop.permute.xlu0 %2569 }
 0x69e   :  { %v7284_v10 = vpop.permute.xlu0 %2562 }
 0x6d7   :  { %v2112_v51 = vpop.xlane.xlu0 %2111 }
 0x6d8   :  { %v2117_v18 = vrot.slane %v2112_v51, %v5885_v2  ;;  %v2121_v41 = vrot.slane %v2112_v51, %v5888_v3  ;;  %v2125_v49 = vrot.slane %v2112_v51, %v5901_v8  ;;  %v2133_v20 = vrot.slane %v2112_v51, %v8420_v13 }
 0x6d9   :  { %v7318_v45 = vrot.slane %v2112_v51, %v8424_v16 }
 0x6da   :  { %v2154_v58 = vsub.f32 %v6947_v62, %v2117_v18  ;;  %v2155_v59 = vsub.f32 %v6951_v60, %v2117_v18  ;;  %v2157_v44 = vsub.f32 %v6957_v39, %v2121_v41  ;;  %v2158_v33 = vsub.f32 %v6967_v56, %v2121_v41 }
 0x6db   :  { %v2156_v29 = vsub.f32 %v6961_v34, %v2117_v18  ;;  %v2159_v24 = vsub.f32 %v6977_v11, %v2121_v41  ;;  %v2160_v62 = vsub.f32 %v6971_v7, %v2125_v49  ;;  %v2129_v60 = vrot.slane %v2112_v51, %v5918_v17 }
 0x6dc   :  { %v2178_v6 = vmul.f32 1.442695, %v2154_v58  ;;  %v2180_v63 = vmul.f32 1.442695, %v2155_v59  ;;  %v2184_v48 = vmul.f32 1.442695, %v2157_v44  ;;  %v2161_v39 = vsub.f32 %v6987_v35, %v2125_v49 }
 0x6dd   :  { %v2186_v46 = vmul.f32 1.442695, %v2158_v33  ;;  %v2182_v52 = vmul.f32 1.442695, %v2156_v29  ;;  %v2188_v56 = vmul.f32 1.442695, %v2159_v24  ;;  %v2162_v53 = vsub.f32 %v6981_v57, %v2125_v49 }
 0x6de   :  { %5459 = vpow2.f32 %v2178_v6  ;;  %v2190_v34 = vmul.f32 1.442695, %v2160_v62  ;;  %v2163_v11 = vsub.f32 %v7006_v5, %v2129_v60  ;;  %v2192_v40 = vmul.f32 1.442695, %v2161_v39  ;;  %v8423_v57 = vld [vmem:[#allocation17_spill] sm:$0xff]  ;;  %v8425_v44 = vld [vmem:[#allocation19_spill] sm:$0xff] }
 0x6df   :  { %5461 = vpow2.f32 %v2180_v63  ;;  %v2164_v35 = vsub.f32 %v7009_v9, %v2129_v60  ;;  %v2194_v43 = vmul.f32 1.442695, %v2162_v53  ;;  %v2137_v12 = vrot.slane %v2112_v51, %v8423_v57  ;;  %v8427_v62 = vld [vmem:[#allocation57_spill] sm:$0xff] }
 0x6e0   :  { %5463 = vpow2.f32 %v2184_v48  ;;  %v2166_v25 = vsub.f32 %v6997_v23, %v2133_v20  ;;  %v2196_v5 = vmul.f32 1.442695, %v2163_v11  ;;  %v2165_v1 = vsub.f32 %v7017_v31, %v2129_v60 }
 0x6e1   :  { %5465 = vpow2.f32 %v2186_v46  ;;  %v2198_v9 = vmul.f32 1.442695, %v2164_v35  ;;  %v2169_v18 = vsub.f32 %v7014_v30, %v2137_v12  ;;  %v2167_v59 = vsub.f32 %v6991_v55, %v2133_v20 }
 0x6e2   :  { %5467 = vpow2.f32 %v2182_v52  ;;  %v2202_v23 = vmul.f32 1.442695, %v2166_v25  ;;  %v2200_v31 = vmul.f32 1.442695, %v2165_v1  ;;  %v7329_v33 = vrot.slane %v2112_v51, %v8425_v44  ;;  %v8426_v51 = vld [vmem:[#allocation58_spill] sm:$0xff] }
 0x6e3   :  { %5469 = vpow2.f32 %v2188_v56  ;;  %v2172_v30 = vsub.f32 %v7022_v28, %v7318_v45  ;;  %v2208_v6 = vmul.f32 1.442695, %v2169_v18  ;;  %v2168_v55 = vsub.f32 %v7001_v26, %v2133_v20 }
 0x6e4   :  { %5471 = vpow2.f32 %v2190_v34  ;;  %v2204_v29 = vmul.f32 1.442695, %v2167_v59  ;;  %v2175_v48 = vsub.f32 %v8426_v51, %v7329_v33  ;;  %v2170_v52 = vsub.f32 %v8427_v62, %v2137_v12 }
 0x6e5   :  { %5473 = vpow2.f32 %v2192_v40  ;;  %v2214_v24 = vmul.f32 1.442695, %v2172_v30  ;;  %v2206_v60 = vmul.f32 1.442695, %v2168_v55  ;;  %v2171_v53 = vsub.f32 %v7033_v21, %v2137_v12  ;;  %v7360_v40 = vpop.permute.xlu1 %2543 }
 0x6e6   :  { %5475 = vpow2.f32 %v2194_v43  ;;  %v2220_v26 = vmul.f32 1.442695, %v2175_v48  ;;  %v2210_v34 = vmul.f32 1.442695, %v2170_v52  ;;  %v2173_v35 = vsub.f32 %v7041_v4, %v7318_v45 }
 0x6e7   :  { %5477 = vpow2.f32 %v2196_v5  ;;  %v2212_v43 = vmul.f32 1.442695, %v2171_v53  ;;  %v2174_v25 = vsub.f32 %v7049_v61, %v7318_v45  ;;  %v2176_v18 = vsub.f32 %v7057_v27, %v7329_v33 }
 0x6e8   :  { %v7301_v54 = vpop.eup %5459  ;;  %5479 = vpow2.f32 %v2198_v9  ;;  %v2216_v5 = vmul.f32 1.442695, %v2173_v35  ;;  %v2177_v59 = vsub.f32 %v7065_v22, %v7329_v33 }
 0x6e9   :  { %v7303_v7 = vpop.eup %5461  ;;  %2251 = vperm.xlu0 %5357, %v7301_v54   ;;  %5481 = vpow2.f32 %v2202_v23  ;;  %v7374_v1 = vpop.permute.xlu1 %2558  ;;  %v2218_v23 = vmul.f32 1.442695, %v2174_v25 }
 0x6ea   :  { %2254 = vperm.xlu1 %5356, %v7303_v7   ;;  %v7310_v47 = vpop.eup %5463  ;;  %5483 = vpow2.f32 %v2200_v31  ;;  %v2222_v31 = vmul.f32 1.442695, %v2176_v18  ;;  %v2224_v27 = vmul.f32 1.442695, %v2177_v59  ;;  %v8442_v18 = vld [vmem:[#allocation64_spill] sm:$0xff] }
 0x6eb   :  { %v7312_v0 = vpop.eup %5465  ;;  %5485 = vpow2.f32 %v2208_v6 }
 0x6ec   :  { %v7321_v41 = vpop.eup %5467  ;;  %5487 = vpow2.f32 %v2204_v29 }
 0x6ed   :  { %2260 = vperm.xlu0 %5357, %v7310_v47   ;;  %v7323_v58 = vpop.eup %5469  ;;  %5489 = vpow2.f32 %v2214_v24  ;;  %v7386_v45 = vpop.permute.xlu1 %2547 }
 0x6ee   :  { %2263 = vperm.xlu1 %5356, %v7312_v0   ;;  %v7333_v63 = vpop.eup %5471  ;;  %5491 = vpow2.f32 %v2206_v60 }
 0x6ef   :  { %v7335_v49 = vpop.eup %5473  ;;  %5493 = vpow2.f32 %v2220_v26  ;;  %v8440_v26 = vld [vmem:[#allocation66_spill] sm:$0xff] }
 0x6f0   :  { %v7342_v28 = vpop.eup %5475  ;;  %5495 = vpow2.f32 %v2210_v34  ;;  %v8441_v34 = vld [vmem:[#allocation59_spill] sm:$0xff] }
 0x6f1   :  { %2257 = vperm.xlu0 %5357, %v7321_v41   ;;  %v7344_v46 = vpop.eup %5477  ;;  %5497 = vpow2.f32 %v2212_v43  ;;  %v7394_v6 = vpop.permute.xlu1 %2573 }
 0x6f2   :  { %2266 = vperm.xlu1 %5356, %v7323_v58   ;;  %v7349_v39 = vpop.eup %5479  ;;  %5499 = vpow2.f32 %v2216_v5 }
 0x6f3   :  { %v7351_v56 = vpop.eup %5481  ;;  %5501 = vpow2.f32 %v2218_v23 }
 0x6f4   :  { %v7356_v20 = vpop.eup %5483  ;;  %5503 = vpow2.f32 %v2222_v31  ;;  %v8443_v31 = vld [vmem:[#allocation60_spill] sm:$0xff] }
 0x6f5   :  { %2269 = vperm.xlu0 %5357, %v7333_v63   ;;  %8428 = vst [vmem:[#allocation20_spill] sm:$0xff] %v7356_v20  ;;  %v7358_v11 = vpop.eup %5485  ;;  %5505 = vpow2.f32 %v2224_v27  ;;  %v7401_v51 = vpop.permute.xlu1 %2584 }
 0x6f6   :  { %2272 = vperm.xlu1 %5356, %v7335_v49   ;;  %8429 = vst [vmem:[#allocation17_spill] sm:$0xff] %v7358_v11  ;;  %v7366_v21 = vpop.eup %5487 }
 0x6f7   :  { %8430 = vst [vmem:[#allocation18_spill] sm:$0xff] %v7366_v21  ;;  %v7368_v12 = vpop.eup %5489 }
 0x6f8   :  { %8431 = vst [vmem:[#allocation19_spill] sm:$0xff] %v7368_v12  ;;  %v7376_v4 = vpop.eup %5491 }
 0x6f9   :  { %2275 = vperm.xlu0 %5357, %v7342_v28   ;;  %8432 = vst [vmem:[#allocation58_spill] sm:$0xff] %v7376_v4  ;;  %v7378_v9 = vpop.eup %5493 }
 0x6fa   :  { %2278 = vperm.xlu1 %5356, %v7344_v46   ;;  %8433 = vst [vmem:[#allocation57_spill] sm:$0xff] %v7378_v9  ;;  %v7384_v61 = vpop.eup %5495 }
 0x6fb   :  { %8434 = vst [vmem:[#allocation81_spill] sm:$0xff] %v7384_v61  ;;  %v7391_v30 = vpop.eup %5497 }
 0x6fc   :  { %8435 = vst [vmem:[#allocation82_spill] sm:$0xff] %v7391_v30  ;;  %v7396_v55 = vpop.eup %5499 }
 0x6fd   :  { %2281 = vperm.xlu0 %5357, %v7349_v39   ;;  %8436 = vst [vmem:[#allocation83_spill] sm:$0xff] %v7396_v55  ;;  %v7399_v29 = vpop.eup %5501 }
 0x6fe   :  { %2287 = vperm.xlu1 %5356, %v7351_v56   ;;  %8437 = vst [vmem:[#allocation84_spill] sm:$0xff] %v7399_v29  ;;  %v7404_v22 = vpop.eup %5503 }
 0x6ff   :  { %8438 = vst [vmem:[#allocation85_spill] sm:$0xff] %v7404_v22  ;;  %v7408_v24 = vpop.eup %5505 }
 0x700   :  { %8439 = vst [vmem:[#allocation86_spill] sm:$0xff] %v7408_v24 }
 0x701   :  { %2284 = vperm.xlu0 %5357, %v7356_v20  }
 0x702   :  { %2296 = vperm.xlu1 %5356, %v7358_v11  }
 0x705   :  { %2290 = vperm.xlu0 %5357, %v7366_v21  }
 0x706   :  { %2305 = vperm.xlu1 %5356, %v7368_v12  }
 0x709   :  { %2293 = vperm.xlu0 %5357, %v7376_v4  }
 0x70a   :  { %2314 = vperm.xlu1 %5356, %v7378_v9  }
 0x70d   :  { %2299 = vperm.xlu0 %5357, %v7384_v61  }
 0x711   :  { %2302 = vperm.xlu0 %5357, %v7391_v30   ;;  %v8446_v30 = vld [vmem:[#allocation72_spill] sm:$0xff] }
 0x715   :  { %2308 = vperm.xlu0 %5357, %v7396_v55  }
 0x719   :  { %2311 = vperm.xlu0 %5357, %v7399_v29   ;;  %v8444_v29 = vld [vmem:[#allocation68_spill] sm:$0xff] }
 0x71d   :  { %2317 = vperm.xlu0 %5357, %v7404_v22  }
 0x721   :  { %v3330_v33 = vpop.xlane.xlu1 %3329  ;;  %2320 = vperm.xlu0 %5357, %v7408_v24  }
 0x722   :  { %v3335_v48 = vrot.slane %v3330_v33, %v5885_v2  ;;  %v3339_v62 = vrot.slane %v3330_v33, %v5888_v3  ;;  %v3343_v5 = vrot.slane %v3330_v33, %v5901_v8 }
 0x724   :  { %v3372_v52 = vsub.f32 %v7073_v14, %v3335_v48  ;;  %v3373_v60 = vsub.f32 %v7038_v19, %v3335_v48  ;;  %v3375_v53 = vsub.f32 %v8440_v26, %v3339_v62  ;;  %v3376_v35 = vsub.f32 %v8441_v34, %v3339_v62  ;;  %v8445_v26 = vld [vmem:[#allocation61_spill] sm:$0xff] }
 0x725   :  { %v3374_v23 = vsub.f32 %v8442_v18, %v3335_v48  ;;  %v3377_v27 = vsub.f32 %v8443_v31, %v3339_v62  ;;  %v3347_v14 = vrot.slane %v3330_v33, %v5918_v17  ;;  %v3378_v19 = vsub.f32 %v8444_v29, %v3343_v5 }
 0x726   :  { %v3396_v43 = vmul.f32 1.442695, %v3372_v52  ;;  %v3398_v25 = vmul.f32 1.442695, %v3373_v60  ;;  %v3402_v59 = vmul.f32 1.442695, %v3375_v53  ;;  %v3379_v34 = vsub.f32 %v8445_v26, %v3343_v5 }
 0x727   :  { %v3404_v24 = vmul.f32 1.442695, %v3376_v35  ;;  %v3400_v22 = vmul.f32 1.442695, %v3374_v23  ;;  %v3406_v52 = vmul.f32 1.442695, %v3377_v27  ;;  %v3351_v60 = vrot.slane %v3330_v33, %v8420_v13 }
 0x728   :  { %5507 = vpow2.f32 %v3396_v43  ;;  %v3381_v48 = vsub.f32 %v8446_v30, %v3347_v14  ;;  %v3408_v53 = vmul.f32 1.442695, %v3378_v19  ;;  %v8447_v43 = vld [vmem:[#allocation62_spill] sm:$0xff]  ;;  %v3410_v35 = vmul.f32 1.442695, %v3379_v34  ;;  %v8451_v30 = vld [vmem:[#allocation67_spill] sm:$0xff] }
 0x729   :  { %5509 = vpow2.f32 %v3398_v25  ;;  %v3380_v62 = vsub.f32 %v8447_v43, %v3343_v5  ;;  %v7431_v29 = vrot.slane %v3330_v33, %v8423_v57  ;;  %v7442_v19 = vrot.slane %v3330_v33, %v8424_v16  ;;  %v8454_v26 = vld [vmem:[#allocation74_spill] sm:$0xff] }
 0x72a   :  { %5511 = vpow2.f32 %v3402_v59  ;;  %v3414_v59 = vmul.f32 1.442695, %v3381_v48  ;;  %v8455_v48 = vld [vmem:[#allocation69_spill] sm:$0xff] }
 0x72b   :  { %5513 = vpow2.f32 %v3404_v24  ;;  %v8450_v24 = vld [vmem:[#allocation70_spill] sm:$0xff]  ;;  %v3412_v5 = vmul.f32 1.442695, %v3380_v62  ;;  %v3387_v34 = vsub.f32 %v8454_v26, %v7431_v29 }
 0x72c   :  { %5515 = vpow2.f32 %v3400_v22  ;;  %v3384_v23 = vsub.f32 %v8450_v24, %v3351_v60  ;;  %v3382_v22 = vsub.f32 %v8451_v30, %v3347_v14  ;;  %v7454_v24 = vrot.slane %v3330_v33, %v8425_v44  ;;  %v8458_v30 = vld [vmem:[#allocation76_spill] sm:$0xff]  ;;  %v8462_v33 = vld [vmem:[#allocation79_spill] sm:$0xff] }
 0x72d   :  { %5517 = vpow2.f32 %v3406_v52  ;;  %v3390_v26 = vsub.f32 %v8458_v30, %v7442_v19 }
 0x72e   :  { %5519 = vpow2.f32 %v3408_v53  ;;  %v3420_v52 = vmul.f32 1.442695, %v3384_v23  ;;  %v3383_v53 = vsub.f32 %v8455_v48, %v3347_v14  ;;  %v3416_v43 = vmul.f32 1.442695, %v3382_v22 }
 0x72f   :  { %5521 = vpow2.f32 %v3410_v35  ;;  %v3426_v23 = vmul.f32 1.442695, %v3387_v34  ;;  %v8463_v34 = vld [vmem:[#allocation65_spill] sm:$0xff] }
 0x730   :  { %5523 = vpow2.f32 %v3414_v59  ;;  %v8459_v59 = vld [vmem:[#allocation63_spill] sm:$0xff]  ;;  %v3418_v22 = vmul.f32 1.442695, %v3383_v53 }
 0x731   :  { %5525 = vpow2.f32 %v3412_v5  ;;  %v3385_v14 = vsub.f32 %v8459_v59, %v3351_v60 }
 0x732   :  { %v7425_v25 = vpop.eup %5507  ;;  %5527 = vpow2.f32 %v3420_v52  ;;  %v3386_v52 = vsub.f32 %v8463_v34, %v3351_v60 }
 0x733   :  { %8448 = vst [vmem:[#allocation66_spill] sm:$0xff] %v7425_v25  ;;  %v7427_v18 = vpop.eup %5509  ;;  %3469 = vperm.xlu0 %5357, %v7425_v25   ;;  %5529 = vpow2.f32 %v3416_v43  ;;  %v3422_v30 = vmul.f32 1.442695, %v3385_v14  ;;  %v8469_v14 = vld [vmem:[#allocation73_spill] sm:$0xff] }
 0x734   :  { %8449 = vst [vmem:[#allocation59_spill] sm:$0xff] %v7427_v18  ;;  %3472 = vperm.xlu1 %5356, %v7427_v18   ;;  %v7436_v31 = vpop.eup %5511  ;;  %5531 = vpow2.f32 %v3426_v23 }
 0x735   :  { %8452 = vst [vmem:[#allocation64_spill] sm:$0xff] %v7436_v31  ;;  %v7438_v27 = vpop.eup %5513  ;;  %5533 = vpow2.f32 %v3418_v22 }
 0x736   :  { %8453 = vst [vmem:[#allocation60_spill] sm:$0xff] %v7438_v27  ;;  %v7448_v62 = vpop.eup %5515 }
 0x737   :  { %3478 = vperm.xlu0 %5357, %v7436_v31   ;;  %8456 = vst [vmem:[#allocation68_spill] sm:$0xff] %v7448_v62  ;;  %v7450_v35 = vpop.eup %5517  ;;  %v3432_v31 = vmul.f32 1.442695, %v3390_v26  ;;  %v3424_v26 = vmul.f32 1.442695, %v3386_v52  ;;  %v8472_v52 = vld [vmem:[#allocation75_spill] sm:$0xff] }
 0x738   :  { %3481 = vperm.xlu1 %5356, %v7438_v27   ;;  %8457 = vst [vmem:[#allocation61_spill] sm:$0xff] %v7450_v35  ;;  %v7460_v5 = vpop.eup %5519 }
 0x739   :  { %8460 = vst [vmem:[#allocation72_spill] sm:$0xff] %v7460_v5  ;;  %v7462_v48 = vpop.eup %5521  ;;  %5535 = vpow2.f32 %v3432_v31  ;;  %v3389_v31 = vsub.f32 %v8469_v14, %v7431_v29 }
 0x73a   :  { %8461 = vst [vmem:[#allocation62_spill] sm:$0xff] %v7462_v48  ;;  %v7469_v59 = vpop.eup %5523  ;;  %5537 = vpow2.f32 %v3422_v30  ;;  %v3391_v30 = vsub.f32 %v8472_v52, %v7442_v19 }
 0x73b   :  { %3475 = vperm.xlu0 %5357, %v7448_v62   ;;  %v3393_v62 = vsub.f32 %v8462_v33, %v7454_v24  ;;  %8464 = vst [vmem:[#allocation70_spill] sm:$0xff] %v7469_v59  ;;  %v7471_v53 = vpop.eup %5525  ;;  %v8466_v33 = vld [vmem:[#allocation71_spill] sm:$0xff] }
 0x73c   :  { %3484 = vperm.xlu1 %5356, %v7450_v35   ;;  %8465 = vst [vmem:[#allocation67_spill] sm:$0xff] %v7471_v53  ;;  %v3388_v23 = vsub.f32 %v8466_v33, %v7431_v29  ;;  %v7477_v35 = vpop.eup %5527  ;;  %v8475_v29 = vld [vmem:[#allocation77_spill] sm:$0xff] }
 0x73d   :  { %v3438_v43 = vmul.f32 1.442695, %v3393_v62  ;;  %8467 = vst [vmem:[#allocation74_spill] sm:$0xff] %v7477_v35  ;;  %v7479_v60 = vpop.eup %5529 }
 0x73e   :  { %8468 = vst [vmem:[#allocation69_spill] sm:$0xff] %v7479_v60  ;;  %v3428_v62 = vmul.f32 1.442695, %v3388_v23  ;;  %v7485_v22 = vpop.eup %5531  ;;  %v3392_v23 = vsub.f32 %v8475_v29, %v7442_v19  ;;  %v8481_v19 = vld [vmem:[#allocation80_spill] sm:$0xff]  ;;  %v8482_v29 = vld [vmem:[#allocation21_spill] sm:$0xff] }
 0x73f   :  { %3487 = vperm.xlu0 %5357, %v7460_v5   ;;  %5539 = vpow2.f32 %v3438_v43  ;;  %8470 = vst [vmem:[#allocation76_spill] sm:$0xff] %v7485_v22  ;;  %v7487_v34 = vpop.eup %5533  ;;  %v3430_v43 = vmul.f32 1.442695, %v3389_v31  ;;  %v8478_v31 = vld [vmem:[#allocation78_spill] sm:$0xff] }
 0x740   :  { %3490 = vperm.xlu1 %5356, %v7462_v48   ;;  %5541 = vpow2.f32 %v3424_v26  ;;  %8471 = vst [vmem:[#allocation63_spill] sm:$0xff] %v7487_v34  ;;  %v3434_v26 = vmul.f32 1.442695, %v3391_v30  ;;  %v3436_v52 = vmul.f32 1.442695, %v3392_v23  ;;  %v3395_v30 = vsub.f32 %v8481_v19, %v7454_v24 }
 0x741   :  { %5543 = vpow2.f32 %v3428_v62  ;;  %v3394_v62 = vsub.f32 %v8478_v31, %v7454_v24  ;;  %v2612_v24 = vrot.slane %v8482_v29, %v8424_v16 }
 0x742   :  { %5545 = vpow2.f32 %v3430_v43  ;;  %v3442_v23 = vmul.f32 1.442695, %v3395_v30 }
 0x743   :  { %3496 = vperm.xlu0 %5357, %v7469_v59   ;;  %v7493_v33 = vpop.eup %5535  ;;  %5547 = vpow2.f32 %v3434_v26  ;;  %v3440_v43 = vmul.f32 1.442695, %v3394_v62  ;;  %v2627_v62 = vrot.slane %v8482_v29, %v8425_v44 }
 0x744   :  { %3493 = vperm.xlu1 %5356, %v7471_v53   ;;  %8473 = vst [vmem:[#allocation79_spill] sm:$0xff] %v7493_v33  ;;  %5549 = vpow2.f32 %v3436_v52 }
 0x745   :  { %5551 = vpow2.f32 %v3440_v43 }
 0x746   :  { %5553 = vpow2.f32 %v3442_v23  ;;  %v8488_v23 = vld [vmem:[#allocation22_spill] sm:$0xff] }
 0x747   :  { %3505 = vperm.xlu0 %5357, %v7477_v35   ;;  %v7495_v35 = vpop.eup %5537 }
 0x748   :  { %3499 = vperm.xlu1 %5356, %v7479_v60   ;;  %8474 = vst [vmem:[#allocation65_spill] sm:$0xff] %v7495_v35 }
 0x749   :  { %v7501_v14 = vpop.eup %5539 }
 0x74a   :  { %8476 = vst [vmem:[#allocation71_spill] sm:$0xff] %v7501_v14 }
 0x74b   :  { %3514 = vperm.xlu0 %5357, %v7485_v22   ;;  %v8480_v22 = vld [vmem:[#allocation16_spill] sm:$0xff] }
 0x74c   :  { %3502 = vperm.xlu1 %5356, %v7487_v34   ;;  %v7503_v34 = vpop.eup %5541 }
 0x74d   :  { %8477 = vst [vmem:[#allocation73_spill] sm:$0xff] %v7503_v34 }
 0x74f   :  { %3523 = vperm.xlu0 %5357, %v7493_v33   ;;  %v7509_v33 = vpop.eup %5543 }
 0x750   :  { %3508 = vperm.xlu1 %5356, %v7495_v35   ;;  %8479 = vst [vmem:[#allocation75_spill] sm:$0xff] %v7509_v33 }
 0x753   :  { %3532 = vperm.xlu0 %5357, %v7501_v14   ;;  %v2597_v14 = vrot.slane %v8482_v29, %v8423_v57 }
 0x754   :  { %3511 = vperm.xlu1 %5356, %v7503_v34   ;;  %v7517_v34 = vpop.eup %5545 }
 0x755   :  { %8483 = vst [vmem:[#allocation77_spill] sm:$0xff] %v7517_v34  ;;  %v7520_v26 = vpop.eup %5547 }
 0x756   :  { %8484 = vst [vmem:[#allocation78_spill] sm:$0xff] %v7520_v26  ;;  %v7526_v31 = vpop.eup %5549 }
 0x757   :  { %2588 = vbcast.lane.b32.xlu0 %v8480_v22, 264  ;;  %8485 = vst [vmem:[#allocation16_spill] sm:$0xff] %v7526_v31  ;;  %v7531_v52 = vpop.eup %5551 }
 0x758   :  { %3517 = vperm.xlu1 %5356, %v7509_v33   ;;  %8486 = vst [vmem:[#allocation80_spill] sm:$0xff] %v7531_v52  ;;  %v7534_v19 = vpop.eup %5553 }
 0x759   :  { %8487 = vst [vmem:[#allocation21_spill] sm:$0xff] %v7534_v19 }
 0x75b   :  { %2599 = vbcast.lane.b32.xlu0 %v2597_v14, 256 }
 0x75c   :  { %3520 = vperm.xlu1 %5356, %v7517_v34  }
 0x75f   :  { %2592 = vbcast.lane.b32.xlu0 %v8480_v22, 272 }
 0x760   :  { %3526 = vperm.xlu1 %5356, %v7520_v26  }
 0x763   :  { %2618 = vbcast.lane.b32.xlu0 %v2612_v24, 264 }
 0x764   :  { %3529 = vperm.xlu1 %5356, %v7526_v31  }
 0x767   :  { %2629 = vbcast.lane.b32.xlu0 %v2627_v62, 256 }
 0x768   :  { %3535 = vperm.xlu1 %5356, %v7531_v52   ;;  %v2252_v22 = vpop.permute.xlu0 %2251 }
 0x769   :  { %v2255_v43 = vpop.permute.xlu1 %2254  ;;  %v2325_v25 = vrot.slane %v2252_v22, %v7169_v42 }
 0x76a   :  { %v2329_v18 = vrot.slane %v2255_v43, %v7172_v37 }
 0x76b   :  { %2622 = vbcast.lane.b32.xlu0 %v2612_v24, 272 }
 0x76c   :  { %3538 = vperm.xlu1 %5356, %v7534_v19   ;;  %v2261_v30 = vpop.permute.xlu0 %2260  ;;  %v2330_v20 = vsel %vm1995_vm6, %v2329_v18, %v2325_v25 }
 0x76d   :  { %v2264_v31 = vpop.permute.xlu1 %2263  ;;  %v2339_v55 = vrot.slane %v2261_v30, %v7169_v42 }
 0x770   :  { %2577 = vbcast.lane.b32.xlu1 %v8488_v23, 272  ;;  %v2258_v34 = vpop.permute.xlu0 %2257 }
 0x771   :  { %v2267_v33 = vpop.permute.xlu1 %2266  ;;  %v2334_v4 = vrot.slane %v2258_v34, %v7175_v36 }
 0x774   :  { %2603 = vbcast.lane.b32.xlu1 %v2597_v14, 264  ;;  %v2270_v26 = vpop.permute.xlu0 %2269 }
 0x775   :  { %v2273_v52 = vpop.permute.xlu1 %2272  ;;  %v2353_v9 = vrot.slane %v2270_v26, %v7169_v42 }
 0x776   :  { %v2357_v61 = vrot.slane %v2273_v52, %v7172_v37 }
 0x778   :  { %2614 = vbcast.lane.b32.xlu1 %v2612_v24, 256  ;;  %v2276_v29 = vpop.permute.xlu0 %2275  ;;  %v2358_v18 = vsel %vm1995_vm6, %v2357_v61, %v2353_v9 }
 0x779   :  { %v2279_v60 = vpop.permute.xlu1 %2278  ;;  %v2362_v22 = vrot.slane %v2276_v29, %v7175_v36 }
 0x77a   :  { %v2367_v52 = vrot.slane %v2279_v60, %v7169_v42 }
 0x77c   :  { %2607 = vbcast.lane.b32.xlu1 %v2597_v14, 272  ;;  %v2282_v35 = vpop.permute.xlu0 %2281  ;;  %v2343_v14 = vrot.slane %v2264_v31, %v7172_v37  ;;  %v2335_v31 = vsel %vm2002_vm7, %v2334_v4, %v2330_v20  ;;  %v2363_v4 = vsel %vm2002_vm7, %v2362_v22, %v2358_v18 }
 0x77d   :  { %v2288_v5 = vpop.permute.xlu1 %2287  ;;  %v2371_v43 = vrot.slane %v2282_v35, %v7172_v37 }
 0x77e   :  { %v2344_v30 = vsel %vm1995_vm6, %v2343_v14, %v2339_v55  ;;  %v2381_v35 = vrot.slane %v2288_v5, %v7169_v42 }
 0x780   :  { %2633 = vbcast.lane.b32.xlu1 %v2627_v62, 264  ;;  %v2285_v53 = vpop.permute.xlu0 %2284 }
 0x781   :  { %v2297_v23 = vpop.permute.xlu1 %2296  ;;  %v2376_v34 = vrot.slane %v2285_v53, %v7175_v36 }
 0x782   :  { %v2395_v53 = vrot.slane %v2297_v23, %v7169_v42 }
 0x784   :  { %2637 = vbcast.lane.b32.xlu1 %v2627_v62, 272  ;;  %v2291_v59 = vpop.permute.xlu0 %2290  ;;  %v2348_v62 = vrot.slane %v2267_v33, %v7175_v36 }
 0x785   :  { %v2306_v12 = vpop.permute.xlu1 %2305  ;;  %v2385_v33 = vrot.slane %v2291_v59, %v7172_v37  ;;  %v2372_v59 = vsel %vm1995_vm6, %v2371_v43, %v2367_v52 }
 0x786   :  { %v2349_v26 = vsel %vm2002_vm7, %v2348_v62, %v2344_v30  ;;  %v2409_v9 = vrot.slane %v2306_v12, %v7169_v42 }
 0x788   :  { %v2294_v19 = vpop.permute.xlu0 %2293 }
 0x789   :  { %v2390_v21 = vrot.slane %v2294_v19, %v7175_v36  ;;  %v2377_v19 = vsel %vm2002_vm7, %v2376_v34, %v2372_v59  ;;  %v2315_v61 = vpop.permute.xlu1 %2314 }
 0x78a   :  { %v2423_v43 = vrot.slane %v2315_v61, %v7169_v42 }
 0x78c   :  { %v2300_v48 = vpop.permute.xlu0 %2299 }
 0x78d   :  { %v2399_v25 = vrot.slane %v2300_v48, %v7172_v37  ;;  %v2386_v48 = vsel %vm1995_vm6, %v2385_v33, %v2381_v35 }
 0x78e   :  { %v2391_v5 = vsel %vm2002_vm7, %v2390_v21, %v2386_v48 }
 0x790   :  { %v2303_v27 = vpop.permute.xlu0 %2302 }
 0x791   :  { %v2404_v55 = vrot.slane %v2303_v27, %v7175_v36  ;;  %v2434_v27 = vsel %vm1447_vm12, %v2349_v26, %v2335_v31 }
 0x792   :  { %v2435_v23 = vsel %vm1449_vm13, %v2363_v4, %v2434_v27 }
 0x793   :  { %v2436_v22 = vsel %vm1451_vm3, %v2377_v19, %v2435_v23 }
 0x794   :  { %v2309_v24 = vpop.permute.xlu0 %2308  ;;  %v2437_v31 = vsel %vm1453_vm14, %v2391_v5, %v2436_v22 }
 0x795   :  { %v2413_v20 = vrot.slane %v2309_v24, %v7172_v37  ;;  %v2400_v24 = vsel %vm1995_vm6, %v2399_v25, %v2395_v53 }
 0x797   :  { %v2414_v62 = vsel %vm1995_vm6, %v2413_v20, %v2409_v9 }
 0x798   :  { %v2312_v11 = vpop.permute.xlu0 %2311 }
 0x799   :  { %v2418_v60 = vrot.slane %v2312_v11, %v7175_v36  ;;  %v2405_v11 = vsel %vm2002_vm7, %v2404_v55, %v2400_v24 }
 0x79a   :  { %v2438_v33 = vsel %vm1455_vm0, %v2405_v11, %v2437_v31 }
 0x79b   :  { %v2419_v12 = vsel %vm2002_vm7, %v2418_v60, %v2414_v62 }
 0x79c   :  { %v2318_v29 = vpop.permute.xlu0 %2317  ;;  %v2439_v52 = vsel %vm1457_vm1, %v2419_v12, %v2438_v33 }
 0x79d   :  { %v2427_v14 = vrot.slane %v2318_v29, %v7172_v37 }
 0x79f   :  { %v2428_v34 = vsel %vm1995_vm6, %v2427_v14, %v2423_v43 }
 0x7a0   :  { %v2321_v30 = vpop.permute.xlu0 %2320 }
 0x7a1   :  { %v2432_v21 = vrot.slane %v2321_v30, %v7175_v36 }
 0x7a3   :  { %v2433_v26 = vsel %vm2002_vm7, %v2432_v21, %v2428_v34 }
 0x7a4   :  { %v2440_v25 = vsel %vm1459_vm4, %v2433_v26, %v2439_v52 }
 0x7a5   :  { %v2442_v18 = vsel %vm1407_vm2, %v2440_v25, 0.0 }
 0x7a6   :  { %2443 = vadd.xlane.f32.xlu0 %v2442_v18 }
 0x7b2   :  { %v3470_v20 = vpop.permute.xlu0 %3469 }
 0x7b3   :  { %v3473_v35 = vpop.permute.xlu1 %3472  ;;  %v3543_v62 = vrot.slane %v3470_v20, %v7169_v42 }
 0x7b4   :  { %v3547_v22 = vrot.slane %v3473_v35, %v7172_v37 }
 0x7b6   :  { %v3479_v59 = vpop.permute.xlu0 %3478  ;;  %v3548_v52 = vsel %vm1995_vm6, %v3547_v22, %v3543_v62 }
 0x7b7   :  { %v3482_v55 = vpop.permute.xlu1 %3481  ;;  %v3557_v12 = vrot.slane %v3479_v59, %v7169_v42 }
 0x7b8   :  { %v3561_v30 = vrot.slane %v3482_v55, %v7172_v37 }
 0x7ba   :  { %v3476_v29 = vpop.permute.xlu0 %3475  ;;  %v3562_v20 = vsel %vm1995_vm6, %v3561_v30, %v3557_v12 }
 0x7bb   :  { %v3485_v4 = vpop.permute.xlu1 %3484  ;;  %v3552_v31 = vrot.slane %v3476_v29, %v7175_v36 }
 0x7bc   :  { %v3566_v21 = vrot.slane %v3485_v4, %v7175_v36 }
 0x7bd   :  { %v3553_v55 = vsel %vm2002_vm7, %v3552_v31, %v3548_v52 }
 0x7be   :  { %v3488_v48 = vpop.permute.xlu0 %3487  ;;  %v3567_v29 = vsel %vm2002_vm7, %v3566_v21, %v3562_v20 }
 0x7bf   :  { %v3491_v53 = vpop.permute.xlu1 %3490  ;;  %v3571_v34 = vrot.slane %v3488_v48, %v7169_v42 }
 0x7c0   :  { %v3575_v33 = vrot.slane %v3491_v53, %v7172_v37 }
 0x7c2   :  { %v3497_v27 = vpop.permute.xlu0 %3496 }
 0x7c3   :  { %v3494_v60 = vpop.permute.xlu1 %3493  ;;  %v3585_v53 = vrot.slane %v3497_v27, %v7169_v42 }
 0x7c4   :  { %v3580_v25 = vrot.slane %v3494_v60, %v7175_v36  ;;  %v3576_v60 = vsel %vm1995_vm6, %v3575_v33, %v3571_v34 }
 0x7c6   :  { %v3506_v24 = vpop.permute.xlu0 %3505 }
 0x7c7   :  { %v3500_v19 = vpop.permute.xlu1 %3499 }
 0x7c8   :  { %v3589_v18 = vrot.slane %v3500_v19, %v7172_v37  ;;  %v3599_v19 = vrot.slane %v3506_v24, %v7169_v42 }
 0x7ca   :  { %v3515_v11 = vpop.permute.xlu0 %3514 }
 0x7cb   :  { %v3503_v9 = vpop.permute.xlu1 %3502  ;;  %v3613_v30 = vrot.slane %v3515_v11, %v7169_v42 }
 0x7cc   :  { %v3594_v59 = vrot.slane %v3503_v9, %v7175_v36  ;;  %v3581_v9 = vsel %vm2002_vm7, %v3580_v25, %v3576_v60 }
 0x7ce   :  { %v3524_v26 = vpop.permute.xlu0 %3523 }
 0x7cf   :  { %v3509_v61 = vpop.permute.xlu1 %3508 }
 0x7d0   :  { %v3603_v4 = vrot.slane %v3509_v61, %v7172_v37  ;;  %v3590_v61 = vsel %vm1995_vm6, %v3589_v18, %v3585_v53 }
 0x7d2   :  { %v3604_v21 = vsel %vm1995_vm6, %v3603_v4, %v3599_v19  ;;  %v3533_v24 = vpop.permute.xlu0 %3532 }
 0x7d3   :  { %v3512_v5 = vpop.permute.xlu1 %3511 }
 0x7d4   :  { %v3608_v48 = vrot.slane %v3512_v5, %v7175_v36  ;;  %v3595_v5 = vsel %vm2002_vm7, %v3594_v59, %v3590_v61 }
 0x7d7   :  { %v3518_v14 = vpop.permute.xlu1 %3517 }
 0x7d8   :  { %v3617_v62 = vrot.slane %v3518_v14, %v7172_v37  ;;  %v3627_v14 = vrot.slane %v3524_v26, %v7169_v42  ;;  %v3641_v26 = vrot.slane %v3533_v24, %v7169_v42  ;;  %v7634_v42 = vpop.permute.xlu0 %2588 }
 0x7da   :  { %v3618_v34 = vsel %vm1995_vm6, %v3617_v62, %v3613_v30 }
 0x7db   :  { %v3521_v23 = vpop.permute.xlu1 %3520 }
 0x7dc   :  { %v3622_v22 = vrot.slane %v3521_v23, %v7175_v36  ;;  %v3652_v23 = vsel %vm1447_vm12, %v3567_v29, %v3553_v55  ;;  %v7636_v60 = vpop.permute.xlu0 %2599 }
 0x7dd   :  { %v3653_v11 = vsel %vm1449_vm13, %v3581_v9, %v3652_v23 }
 0x7de   :  { %v3623_v52 = vsel %vm2002_vm7, %v3622_v22, %v3618_v34  ;;  %v3654_v18 = vsel %vm1451_vm3, %v3595_v5, %v3653_v11 }
 0x7df   :  { %v3527_v43 = vpop.permute.xlu1 %3526 }
 0x7e0   :  { %v3631_v12 = vrot.slane %v3527_v43, %v7172_v37  ;;  %v3609_v43 = vsel %vm2002_vm7, %v3608_v48, %v3604_v21  ;;  %v7638_v19 = vpop.permute.xlu0 %2592 }
 0x7e1   :  { %v3655_v55 = vsel %vm1453_vm14, %v3609_v43, %v3654_v18  ;;  %v8489_v43 = vld [vmem:[#allocation55_spill] sm:$0xff] }
 0x7e2   :  { %v3632_v25 = vsel %vm1995_vm6, %v3631_v12, %v3627_v14 }
 0x7e3   :  { %v3530_v35 = vpop.permute.xlu1 %3529 }
 0x7e4   :  { %v3636_v27 = vrot.slane %v3530_v35, %v7175_v36 }
 0x7e6   :  { %v3637_v35 = vsel %vm2002_vm7, %v3636_v27, %v3632_v25 }
 0x7e7   :  { %v3536_v31 = vpop.permute.xlu1 %3535 }
 0x7e8   :  { %v3645_v33 = vrot.slane %v3536_v31, %v7172_v37  ;;  %v3656_v37 = vsel %vm1455_vm0, %v3623_v52, %v3655_v55 }
 0x7e9   :  { %v3657_v53 = vsel %vm1457_vm1, %v3637_v35, %v3656_v37 }
 0x7ea   :  { %v3646_v4 = vsel %vm1995_vm6, %v3645_v33, %v3641_v26  ;;  %v8490_v33 = vld [vmem:[#allocation56_spill] sm:$0xff] }
 0x7eb   :  { %v3539_v20 = vpop.permute.xlu1 %3538 }
 0x7ec   :  { %v3650_v59 = vrot.slane %v3539_v20, %v7175_v36  ;;  %v7640_v36 = vpop.permute.xlu0 %2618 }
 0x7ee   :  { %v3651_v29 = vsel %vm2002_vm7, %v3650_v59, %v3646_v4 }
 0x7ef   :  { %v3658_v48 = vsel %vm1459_vm4, %v3651_v29, %v3657_v53 }
 0x7f0   :  { %v3660_v62 = vsel %vm1407_vm2, %v3658_v48, 0.0  ;;  %v7642_v22 = vpop.permute.xlu0 %2629  ;;  %vm2831_vm2 = vcmask 785920  }
 0x7f1   :  { %3661 = vadd.xlane.f32.xlu1 %v3660_v62 }
 0x7f4   :  { %v7644_v12 = vpop.permute.xlu0 %2622 }
 0x833   :  { %v2444_v9 = vpop.xlane.xlu0 %2443 }
 0x834   :  { %v2449_v61 = vrot.slane %v2444_v9, %v5885_v2  ;;  %v2453_v30 = vrot.slane %v2444_v9, %v5888_v3  ;;  %v2457_v27 = vrot.slane %v2444_v9, %v5901_v8  ;;  %v2461_v31 = vrot.slane %v2444_v9, %v5918_v17 }
 0x835   :  { %v2465_v23 = vrot.slane %v2444_v9, %v8420_v13  ;;  %v2469_v26 = vrot.slane %v2444_v9, %v8423_v57 }
 0x836   :  { %5555 = vrcp.f32 %v2449_v61 }
 0x837   :  { %5557 = vrcp.f32 %v2453_v30 }
 0x838   :  { %5559 = vrcp.f32 %v2457_v27 }
 0x839   :  { %5561 = vrcp.f32 %v2461_v31  ;;  %v8491_v31 = vld [vmem:[#allocation18_spill] sm:$0xff] }
 0x83a   :  { %5563 = vrcp.f32 %v2465_v23 }
 0x83b   :  { %5565 = vrcp.f32 %v2469_v26 }
 0x840   :  { %v5556_v5 = vpop.eup %5555 }
 0x841   :  { %v5558_v14 = vpop.eup %5557  ;;  %v2487_v21 = vmul.f32 %v5556_v5, %v7301_v54  ;;  %v2488_v24 = vmul.f32 %v5556_v5, %v7303_v7  ;;  %v2489_v59 = vmul.f32 %v5556_v5, %v7321_v41  ;;  %v7672_v41 = vpop.permute.xlu1 %2577 }
 0x842   :  { %v2491_v52 = vmul.f32 %v5558_v14, %v7310_v47  ;;  %v2492_v25 = vmul.f32 %v5558_v14, %v7312_v0  ;;  %v5560_v18 = vpop.eup %5559  ;;  %v2473_v47 = vrot.slane %v2444_v9, %v8424_v16  ;;  %v2493_v4 = vmul.f32 %v5558_v14, %v7323_v58  ;;  %v8492_v14 = vld [vmem:[#allocation17_spill] sm:$0xff] }
 0x843   :  { %v2663_v34 = vmul.f32 %v8489_v43, %v2487_v21  ;;  %v2664_v11 = vmul.f32 %v8490_v33, %v2488_v24  ;;  %v2495_v35 = vmul.f32 %v5560_v18, %v7333_v63  ;;  %v2496_v20 = vmul.f32 %v5560_v18, %v7335_v49  ;;  %v5562_v37 = vpop.eup %5561 }
 0x844   :  { %v2666_v54 = vmul.f32 %v7276_v50, %v2491_v52  ;;  %v2667_v7 = vmul.f32 %v7360_v40, %v2492_v25  ;;  %v2477_v63 = vrot.slane %v2444_v9, %v8425_v44  ;;  %5567 = vrcp.f32 %v2473_v47  ;;  %v5564_v62 = vpop.eup %5563  ;;  %v8494_v52 = vld [vmem:[#allocation19_spill] sm:$0xff]  ;;  %v8496_v47 = vld [vmem:[#allocation57_spill] sm:$0xff] }
 0x845   :  { %2689 = vperm.xlu0 %5357, %v2663_v34   ;;  %2694 = vperm.xlu1 %5356, %v2664_v11   ;;  %v2669_v0 = vmul.f32 %v7278_v15, %v2495_v35  ;;  %v2670_v55 = vmul.f32 %v7374_v1, %v2496_v20  ;;  %v2665_v49 = vmul.f32 %v7280_v38, %v2489_v59  ;;  %v5566_v27 = vpop.eup %5565  ;;  %v7682_v23 = vpop.permute.xlu1 %2603  ;;  %v8493_v34 = vld [vmem:[#allocation20_spill] sm:$0xff]  ;;  %v8495_v35 = vld [vmem:[#allocation81_spill] sm:$0xff] }
 0x846   :  { %v2668_v29 = vmul.f32 %v7386_v45, %v2493_v4  ;;  %v2499_v53 = vmul.f32 %v5562_v37, %v7344_v46  ;;  %v2500_v48 = vmul.f32 %v5562_v37, %v7349_v39  ;;  %5569 = vrcp.f32 %v2477_v63  ;;  %v8497_v4 = vld [vmem:[#allocation58_spill] sm:$0xff] }
 0x847   :  { %v2497_v9 = vmul.f32 %v5560_v18, %v7342_v28  ;;  %v2503_v30 = vmul.f32 %v5564_v62, %v7351_v56  ;;  %v2504_v5 = vmul.f32 %v5564_v62, %v8491_v31  ;;  %v2507_v21 = vmul.f32 %v5566_v27, %v8492_v14  ;;  %v8501_v31 = vld [vmem:[#allocation84_spill] sm:$0xff] }
 0x848   :  { %v2672_v58 = vmul.f32 %v7282_v32, %v2499_v53  ;;  %v2673_v61 = vmul.f32 %v7394_v6, %v2500_v48  ;;  %v2501_v11 = vmul.f32 %v5562_v37, %v8493_v34  ;;  %v2508_v20 = vmul.f32 %v5566_v27, %v8495_v35  ;;  %v8499_v48 = vld [vmem:[#allocation82_spill] sm:$0xff] }
 0x849   :  { %2704 = vperm.xlu0 %5357, %v2666_v54   ;;  %2709 = vperm.xlu1 %5356, %v2667_v7   ;;  %v2671_v46 = vmul.f32 %v7284_v10, %v2497_v9  ;;  %v2675_v39 = vmul.f32 %v7401_v51, %v2503_v30  ;;  %v2676_v28 = vmul.f32 %v7634_v42, %v2504_v5  ;;  %v7690_v26 = vpop.permute.xlu1 %2614  ;;  %v8500_v30 = vld [vmem:[#allocation85_spill] sm:$0xff] }
 0x84a   :  { %v2678_v56 = vmul.f32 %v7636_v60, %v2507_v21  ;;  %v2674_v54 = vmul.f32 %v7672_v41, %v2501_v11  ;;  %v2505_v37 = vmul.f32 %v5564_v62, %v8497_v4 }
 0x84c   :  { %v2677_v63 = vmul.f32 %v7638_v19, %v2505_v37 }
 0x84d   :  { %2719 = vperm.xlu0 %5357, %v2669_v0   ;;  %2724 = vperm.xlu1 %5356, %v2670_v55   ;;  %v2679_v55 = vmul.f32 %v7682_v23, %v2508_v20 }
 0x84e   :  { %v5568_v24 = vpop.eup %5567 }
 0x84f   :  { %v2511_v25 = vmul.f32 %v5568_v24, %v8494_v52  ;;  %v2513_v5 = vmul.f32 %v5568_v24, %v8501_v31 }
 0x850   :  { %v7688_v18 = vpop.eup %5569 }
 0x851   :  { %2699 = vperm.xlu0 %5357, %v2665_v49   ;;  %2714 = vperm.xlu1 %5356, %v2668_v29   ;;  %v2681_v7 = vmul.f32 %v7690_v26, %v2511_v25  ;;  %v2515_v0 = vmul.f32 %v7688_v18, %v8496_v47  ;;  %v8498_v49 = vld [vmem:[#allocation83_spill] sm:$0xff]  ;;  %v2683_v14 = vmul.f32 %v7644_v12, %v2513_v5 }
 0x852   :  { %v2512_v29 = vmul.f32 %v5568_v24, %v8498_v49  ;;  %v8502_v25 = vld [vmem:[#allocation59_spill] sm:$0xff] }
 0x853   :  { %v2684_v59 = vmul.f32 %v7642_v22, %v2515_v0 }
 0x854   :  { %v2682_v53 = vmul.f32 %v7640_v36, %v2512_v29  ;;  %v8506_v29 = vld [vmem:[#allocation62_spill] sm:$0xff] }
 0x855   :  { %2734 = vperm.xlu0 %5357, %v2672_v58   ;;  %2739 = vperm.xlu1 %5356, %v2673_v61   ;;  %v2509_v58 = vmul.f32 %v5566_v27, %v8499_v48  ;;  %v7704_v61 = vpop.permute.xlu1 %2607  ;;  %v8507_v48 = vld [vmem:[#allocation72_spill] sm:$0xff] }
 0x857   :  { %v2680_v9 = vmul.f32 %v7704_v61, %v2509_v58 }
 0x859   :  { %2729 = vperm.xlu0 %5357, %v2671_v46   ;;  %2749 = vperm.xlu1 %5356, %v2675_v39   ;;  %v2516_v46 = vmul.f32 %v7688_v18, %v8500_v30  ;;  %v7709_v62 = vpop.permute.xlu1 %2633  ;;  %v8508_v30 = vld [vmem:[#allocation61_spill] sm:$0xff] }
 0x85b   :  { %v2685_v39 = vmul.f32 %v7709_v62, %v2516_v46 }
 0x85d   :  { %2754 = vperm.xlu0 %5357, %v2676_v28   ;;  %2764 = vperm.xlu1 %5356, %v2678_v56   ;;  %v7714_v27 = vpop.permute.xlu1 %2637 }
 0x861   :  { %2744 = vperm.xlu0 %5357, %v2674_v54   ;;  %2779 = vperm.xlu1 %5356, %v2681_v7   ;;  %v8503_v7 = vld [vmem:[#allocation66_spill] sm:$0xff] }
 0x865   :  { %2769 = vperm.xlu0 %5357, %v2679_v55   ;;  %2794 = vperm.xlu1 %5356, %v2684_v59   ;;  %v8504_v55 = vld [vmem:[#allocation60_spill] sm:$0xff] }
 0x866   :  { %v8505_v59 = vld [vmem:[#allocation64_spill] sm:$0xff] }
 0x869   :  { %2759 = vperm.xlu0 %5357, %v2677_v63  }
 0x86d   :  { %2784 = vperm.xlu0 %5357, %v2682_v53  }
 0x871   :  { %2774 = vperm.xlu0 %5357, %v2680_v9  }
 0x875   :  { %2799 = vperm.xlu0 %5357, %v2685_v39   ;;  %v8509_v39 = vld [vmem:[#allocation68_spill] sm:$0xff] }
 0x879   :  { %2789 = vperm.xlu0 %5357, %v2683_v14  }
 0x87e   :  { %v3662_v21 = vpop.xlane.xlu1 %3661 }
 0x87f   :  { %v3667_v28 = vrot.slane %v3662_v21, %v5885_v2  ;;  %v3671_v56 = vrot.slane %v3662_v21, %v5888_v3  ;;  %v3675_v34 = vrot.slane %v3662_v21, %v5901_v8  ;;  %v3679_v11 = vrot.slane %v3662_v21, %v5918_v17 }
 0x880   :  { %v3683_v20 = vrot.slane %v3662_v21, %v8420_v13  ;;  %v3687_v17 = vrot.slane %v3662_v21, %v8423_v57 }
 0x881   :  { %5571 = vrcp.f32 %v3667_v28  ;;  %v8510_v28 = vld [vmem:[#allocation69_spill] sm:$0xff] }
 0x882   :  { %5573 = vrcp.f32 %v3671_v56 }
 0x883   :  { %5575 = vrcp.f32 %v3675_v34  ;;  %v8511_v34 = vld [vmem:[#allocation70_spill] sm:$0xff] }
 0x884   :  { %5577 = vrcp.f32 %v3679_v11 }
 0x885   :  { %5579 = vrcp.f32 %v3683_v20 }
 0x886   :  { %5581 = vrcp.f32 %v3687_v17 }
 0x88b   :  { %v5572_v52 = vpop.eup %5571 }
 0x88c   :  { %v5574_v24 = vpop.eup %5573  ;;  %v3706_v54 = vmul.f32 %v5572_v52, %v8502_v25  ;;  %v3705_v35 = vmul.f32 %v5572_v52, %v8503_v7  ;;  %v3707_v31 = vmul.f32 %v5572_v52, %v8509_v39 }
 0x88d   :  { %v3710_v8 = vmul.f32 %v5574_v24, %v8504_v55  ;;  %v3709_v4 = vmul.f32 %v5574_v24, %v8505_v59  ;;  %v5576_v37 = vpop.eup %5575  ;;  %v3711_v46 = vmul.f32 %v5574_v24, %v8508_v30  ;;  %v8512_v24 = vld [vmem:[#allocation67_spill] sm:$0xff] }
 0x88e   :  { %v3737_v47 = vmul.f32 %v3706_v54, %v8490_v33  ;;  %v3736_v0 = vmul.f32 %v3705_v35, %v8489_v43  ;;  %v3714_v53 = vmul.f32 %v5576_v37, %v8506_v29  ;;  %v3713_v33 = vmul.f32 %v5576_v37, %v8507_v48  ;;  %v8514_v35 = vld [vmem:[#allocation65_spill] sm:$0xff]  ;;  %v8519_v29 = vld [vmem:[#allocation71_spill] sm:$0xff] }
 0x88f   :  { %v3740_v63 = vmul.f32 %v3710_v8, %v7360_v40  ;;  %v3739_v49 = vmul.f32 %v3709_v4, %v7276_v50  ;;  %v3691_v43 = vrot.slane %v3662_v21, %v8424_v16  ;;  %v5578_v40 = vpop.eup %5577  ;;  %v3695_v50 = vrot.slane %v3662_v21, %v8425_v44  ;;  %v8513_v21 = vld [vmem:[#allocation74_spill] sm:$0xff]  ;;  %v8516_v8 = vld [vmem:[#allocation63_spill] sm:$0xff]  ;;  %v8520_v48 = vld [vmem:[#allocation73_spill] sm:$0xff] }
 0x890   :  { %3767 = vperm.xlu1 %5356, %v3737_v47   ;;  %3762 = vperm.xlu0 %5357, %v3736_v0   ;;  %v3743_v58 = vmul.f32 %v3714_v53, %v7374_v1  ;;  %v3742_v9 = vmul.f32 %v3713_v33, %v7278_v15  ;;  %v3741_v5 = vmul.f32 %v3711_v46, %v7386_v45  ;;  %v5580_v11 = vpop.eup %5579  ;;  %v8515_v47 = vld [vmem:[#allocation76_spill] sm:$0xff]  ;;  %v8517_v4 = vld [vmem:[#allocation79_spill] sm:$0xff] }
 0x891   :  { %5583 = vrcp.f32 %v3691_v43  ;;  %v3738_v14 = vmul.f32 %v3707_v31, %v7280_v38  ;;  %v3718_v56 = vmul.f32 %v5578_v40, %v8510_v28  ;;  %v3717_v1 = vmul.f32 %v5578_v40, %v8511_v34  ;;  %v5582_v7 = vpop.eup %5581  ;;  %v8521_v43 = vld [vmem:[#allocation86_spill] sm:$0xff]  ;;  %v8524_v31 = vld [vmem:[#allocation80_spill] sm:$0xff] }
 0x892   :  { %5585 = vrcp.f32 %v3695_v50  ;;  %v3715_v25 = vmul.f32 %v5576_v37, %v8512_v24  ;;  %v3721_v54 = vmul.f32 %v5580_v11, %v8513_v21  ;;  %v3722_v20 = vmul.f32 %v5580_v11, %v8514_v35  ;;  %v8525_v50 = vld [vmem:[#allocation16_spill] sm:$0xff]  ;;  %v8529_v21 = vld [vmem:[#allocation51_spill] sm:$0xff] }
 0x893   :  { %v3746_v15 = vmul.f32 %v3718_v56, %v7394_v6  ;;  %v3745_v52 = vmul.f32 %v3717_v1, %v7282_v32  ;;  %v3725_v0 = vmul.f32 %v5582_v7, %v8515_v47  ;;  %v3719_v59 = vmul.f32 %v5578_v40, %v8516_v8  ;;  %v8527_v34 = vld [vmem:[#allocation48_spill] sm:$0xff] }
 0x894   :  { %3782 = vperm.xlu1 %5356, %v3740_v63   ;;  %3777 = vperm.xlu0 %5357, %v3739_v49   ;;  %v3744_v38 = vmul.f32 %v3715_v25, %v7284_v10  ;;  %v3748_v45 = vmul.f32 %v3721_v54, %v7401_v51  ;;  %v3749_v32 = vmul.f32 %v3722_v20, %v7634_v42  ;;  %v8518_v63 = vld [vmem:[#allocation75_spill] sm:$0xff] }
 0x895   :  { %v3751_v6 = vmul.f32 %v3725_v0, %v7636_v60  ;;  %v3747_v10 = vmul.f32 %v3719_v59, %v7672_v41  ;;  %v3726_v49 = vmul.f32 %v5582_v7, %v8518_v63  ;;  %v3723_v33 = vmul.f32 %v5580_v11, %v8520_v48  ;;  %v8528_v11 = vld [vmem:[#allocation49_spill] sm:$0xff]  ;;  %v8534_v63 = vld [vmem:[#allocation54_spill] sm:$0xff] }
 0x897   :  { %v3752_v42 = vmul.f32 %v3726_v49, %v7682_v23  ;;  %v3750_v41 = vmul.f32 %v3723_v33, %v7638_v19  ;;  %v8523_v23 = vld [vmem:[#allocation77_spill] sm:$0xff] }
 0x898   :  { %3797 = vperm.xlu1 %5356, %v3743_v58   ;;  %3792 = vperm.xlu0 %5357, %v3742_v9   ;;  %v2517_v58 = vmul.f32 %v7688_v18, %v8521_v43  ;;  %v8522_v9 = vld [vmem:[#allocation78_spill] sm:$0xff]  ;;  %v3727_v39 = vmul.f32 %v5582_v7, %v8523_v23  ;;  %v8530_v7 = vld [vmem:[#allocation52_spill] sm:$0xff]  ;;  %v8535_v43 = vld [vmem:[#allocation35_spill] sm:$0xff] }
 0x89b   :  { %v5584_v55 = vpop.eup %5583 }
 0x89c   :  { %3787 = vperm.xlu1 %5356, %v3741_v5   ;;  %3772 = vperm.xlu0 %5357, %v3738_v14   ;;  %v3729_v37 = vmul.f32 %v5584_v55, %v8517_v4  ;;  %v5586_v17 = vpop.eup %5585  ;;  %v3730_v30 = vmul.f32 %v5584_v55, %v8522_v9  ;;  %v3731_v19 = vmul.f32 %v5584_v55, %v8525_v50  ;;  %v8526_v14 = vld [vmem:[#allocation21_spill] sm:$0xff] }
 0x89d   :  { %v3733_v53 = vmul.f32 %v5586_v17, %v8519_v29  ;;  %v3734_v40 = vmul.f32 %v5586_v17, %v8524_v31  ;;  %v3735_v28 = vmul.f32 %v5586_v17, %v8526_v14 }
 0x89e   :  { %v3754_v51 = vmul.f32 %v3729_v37, %v7690_v26  ;;  %v2686_v26 = vmul.f32 %v7714_v27, %v2517_v58  ;;  %v3755_v46 = vmul.f32 %v3730_v30, %v7640_v36  ;;  %v3756_v5 = vmul.f32 %v3731_v19, %v7644_v12 }
 0x89f   :  { %v3757_v60 = vmul.f32 %v3733_v53, %v7642_v22  ;;  %v3753_v22 = vmul.f32 %v3727_v39, %v7704_v61  ;;  %v3758_v18 = vmul.f32 %v3734_v40, %v7709_v62 }
 0x8a0   :  { %3812 = vperm.xlu1 %5356, %v3746_v15   ;;  %3807 = vperm.xlu0 %5357, %v3745_v52   ;;  %v3759_v15 = vmul.f32 %v3735_v28, %v7714_v27  ;;  %v8531_v27 = vld [vmem:[#allocation53_spill] sm:$0xff] }
 0x8a4   :  { %3802 = vperm.xlu1 %5356, %v3744_v38   ;;  %3822 = vperm.xlu0 %5357, %v3748_v45  }
 0x8a8   :  { %3827 = vperm.xlu1 %5356, %v3749_v32   ;;  %3837 = vperm.xlu0 %5357, %v3751_v6   ;;  %v8532_v32 = vld [vmem:[#allocation31_spill] sm:$0xff] }
 0x8ac   :  { %3817 = vperm.xlu1 %5356, %v3747_v10   ;;  %3852 = vperm.xlu0 %5357, %v3754_v51   ;;  %v8533_v10 = vld [vmem:[#allocation50_spill] sm:$0xff] }
 0x8b0   :  { %3842 = vperm.xlu1 %5356, %v3752_v42   ;;  %3867 = vperm.xlu0 %5357, %v3757_v60  }
 0x8b4   :  { %3832 = vperm.xlu1 %5356, %v3750_v41   ;;  %2804 = vperm.xlu0 %5357, %v2686_v26   ;;  %v8536_v41 = vld [vmem:[#allocation32_spill] sm:$0xff] }
 0x8b8   :  { %3857 = vperm.xlu1 %5356, %v3755_v46  }
 0x8bc   :  { %3847 = vperm.xlu1 %5356, %v3753_v22  }
 0x8c0   :  { %3872 = vperm.xlu1 %5356, %v3758_v18   ;;  %v8537_v18 = vld [vmem:[#allocation33_spill] sm:$0xff] }
 0x8c4   :  { %3862 = vperm.xlu1 %5356, %v3756_v5   ;;  %v2690_v36 = vpop.permute.xlu0 %2689  ;;  %v2695_v56 = vpop.permute.xlu1 %2694 }
 0x8c5   :  { %v2807_v1 = vmul.f32 %v2690_v36, %v8527_v34  ;;  %v2808_v61 = vmul.f32 %v2695_v56, %v8528_v11 }
 0x8c7   :  { %v2832_v52 = vsel %vm2831_vm2, %v2807_v1, 0.0  ;;  %v2833_v62 = vsel %vm2831_vm2, %v2808_v61, 0.0  ;;  %v5371_v61 = vld [vmem:[#allocation8] sm:$0xff]  }
 0x8c8   :  { %v2834_v24 = vadd.f32 %v2833_v62, %v2832_v52  ;;  %3877 = vperm.xlu1 %5356, %v3759_v15   ;;  %v2705_v25 = vpop.permute.xlu0 %2704  ;;  %v2710_v12 = vpop.permute.xlu1 %2709  ;;  %5294 = vmatpush3.bf16.msra.mxu1 %v5371_v61 }
 0x8c9   :  { %v2810_v54 = vmul.f32 %v2705_v25, %v8529_v21  ;;  %v2811_v38 = vmul.f32 %v2710_v12, %v8530_v7  ;;  %v8538_v25 = vmov 0.0  }
 0x8ca   :  { %5295 = vmatprep.subr.bf16.mxu1 %v8538_v25 }
 0x8cb   :  { %v2843_v45 = vsel %vm2831_vm2, %v2810_v54, 0.0  ;;  %v2844_v35 = vsel %vm2831_vm2, %v2811_v38, 0.0 }
 0x8cc   :  { %v2845_v20 = vadd.f32 %v2844_v35, %v2843_v45  ;;  %v2720_v47 = vpop.permute.xlu0 %2719  ;;  %v2725_v0 = vpop.permute.xlu1 %2724  ;;  %v8539_v35 = vld [vmem:[#allocation34_spill] sm:$0xff] }
 0x8cd   :  { %v2813_v55 = vmul.f32 %v2720_v47, %v8531_v27  ;;  %v2814_v6 = vmul.f32 %v2725_v0, %v8532_v32 }
 0x8cf   :  { %v2854_v8 = vsel %vm2831_vm2, %v2813_v55, 0.0  ;;  %v2855_v59 = vsel %vm2831_vm2, %v2814_v6, 0.0  ;;  %v5373_v6 = vld [vmem:[#allocation8 + $0x10] sm:$0xff]  }
 0x8d0   :  { %v2856_v4 = vadd.f32 %v2855_v59, %v2854_v8  ;;  %v2700_v37 = vpop.permute.xlu0 %2699  ;;  %v2715_v17 = vpop.permute.xlu1 %2714  ;;  %v8540_v8 = vld [vmem:[#allocation39_spill] sm:$0xff] }
 0x8d1   :  { %v2809_v51 = vmul.f32 %v2700_v37, %v8533_v10  ;;  %v2812_v49 = vmul.f32 %v2715_v17, %v8534_v63 }
 0x8d3   :  { %v2835_v29 = vsel %vm2831_vm2, %v2809_v51, 0.0  ;;  %v2846_v53 = vsel %vm2831_vm2, %v2812_v49, 0.0  ;;  %v8541_v49 = vld [vmem:[#allocation37_spill] sm:$0xff] }
 0x8d4   :  { %v2836_v42 = vadd.f32 %v2835_v29, %v2834_v24  ;;  %v2847_v60 = vadd.f32 %v2846_v53, %v2845_v20  ;;  %v2735_v48 = vpop.permute.xlu0 %2734  ;;  %v2740_v33 = vpop.permute.xlu1 %2739  ;;  %v5372_v24 = vld [vmem:[#allocation8 + $0x8] sm:$0xff]  }
 0x8d5   :  { %v2816_v58 = vmul.f32 %v2735_v48, %v8535_v43  ;;  %v2817_v26 = vmul.f32 %v2740_v33, %v8536_v41  ;;  %5296 = vmatpush3.bf16.msra.mxu1 %v5372_v24 }
 0x8d6   :  { %v2837_v9 = vrot.slane %v2836_v42, 4  ;;  %v2848_v30 = vrot.slane %v2847_v60, 4  ;;  %5297 = vmatprep.subr.bf16.mxu1 %v8538_v25 }
 0x8d7   :  { %v2865_v46 = vsel %vm2831_vm2, %v2816_v58, 0.0  ;;  %v2866_v23 = vsel %vm2831_vm2, %v2817_v26, 0.0 }
 0x8d8   :  { %v2838_v39 = vadd.f32 %v2837_v9, %v2836_v42  ;;  %v2849_v22 = vadd.f32 %v2848_v30, %v2847_v60  ;;  %v2867_v31 = vadd.f32 %v2866_v23, %v2865_v46  ;;  %v2730_v40 = vpop.permute.xlu0 %2729  ;;  %v2750_v55 = vpop.permute.xlu1 %2749  ;;  %v5374_v60 = vld [vmem:[#allocation8 + $0x18] sm:$0xff]   ;;  %v8542_v30 = vld [vmem:[#allocation36_spill] sm:$0xff] }
 0x8d9   :  { %v2815_v50 = vmul.f32 %v2730_v40, %v8537_v18  ;;  %v2819_v29 = vmul.f32 %v2750_v55, %v8541_v49  ;;  %5298 = vmatpush3.bf16.msra.mxu1 %v5373_v6  ;;  %v8543_v40 = vld [vmem:[#allocation41_spill] sm:$0xff] }
 0x8da   :  { %v2839_v19 = vrot.slane %v2838_v39, 2  ;;  %v2850_v5 = vrot.slane %v2849_v22, 2  ;;  %5299 = vmatprep.subr.bf16.mxu1 %v8538_v25 }
 0x8db   :  { %v2857_v14 = vsel %vm2831_vm2, %v2815_v50, 0.0  ;;  %v2876_v9 = vsel %vm2831_vm2, %v2819_v29, 0.0 }
 0x8dc   :  { %v2840_v28 = vadd.f32 %v2839_v19, %v2838_v39  ;;  %v2851_v36 = vadd.f32 %v2850_v5, %v2849_v22  ;;  %v2858_v56 = vadd.f32 %v2857_v14, %v2856_v4  ;;  %v2755_v1 = vpop.permute.xlu0 %2754  ;;  %v2765_v22 = vpop.permute.xlu1 %2764 }
 0x8dd   :  { %v2820_v59 = vmul.f32 %v2755_v1, %v8540_v8  ;;  %5300 = vmatpush3.bf16.msra.mxu1 %v5374_v60 }
 0x8de   :  { %v2841_v15 = vrot.slane %v2840_v28, 1  ;;  %v2852_v52 = vrot.slane %v2851_v36, 1  ;;  %v2859_v62 = vrot.slane %v2858_v56, 4 }
 0x8df   :  { %v2877_v48 = vsel %vm2831_vm2, %v2820_v59, 0.0 }
 0x8e0   :  { %v2842_v12 = vadd.f32 %v2841_v15, %v2840_v28  ;;  %v2853_v54 = vadd.f32 %v2852_v52, %v2851_v36  ;;  %v2860_v38 = vadd.f32 %v2859_v62, %v2858_v56  ;;  %v2745_v45 = vpop.permute.xlu0 %2744  ;;  %v2878_v39 = vadd.f32 %v2877_v48, %v2876_v9  ;;  %v8544_v36 = vld [vmem:[#allocation38_spill] sm:$0xff] }
 0x8e1   :  { %v2818_v20 = vmul.f32 %v2745_v45, %v8539_v35  ;;  %v2822_v56 = vmul.f32 %v2765_v22, %v8544_v36 }
 0x8e2   :  { %v4001_v47 = vsel %vm1447_vm12, %v2853_v54, %v2842_v12  ;;  %v2861_v0 = vrot.slane %v2860_v38, 2  ;;  %v8545_v54 = vld [vmem:[#allocation43_spill] sm:$0xff] }
 0x8e3   :  { %v2868_v4 = vsel %vm2831_vm2, %v2818_v20, 0.0  ;;  %v2887_v12 = vsel %vm2831_vm2, %v2822_v56, 0.0 }
 0x8e4   :  { %v2862_v37 = vadd.f32 %v2861_v0, %v2860_v38  ;;  %v2869_v17 = vadd.f32 %v2868_v4, %v2867_v31  ;;  %v2770_v51 = vpop.permute.xlu0 %2769 }
 0x8e5   :  { %v2823_v50 = vmul.f32 %v2770_v51, %v8543_v40 }
 0x8e6   :  { %v2863_v53 = vrot.slane %v2862_v37, 1  ;;  %v2870_v42 = vrot.slane %v2869_v17, 4 }
 0x8e7   :  { %v2888_v15 = vsel %vm2831_vm2, %v2823_v50, 0.0 }
 0x8e8   :  { %v2864_v33 = vadd.f32 %v2863_v53, %v2862_v37  ;;  %v2871_v58 = vadd.f32 %v2870_v42, %v2869_v17  ;;  %v2760_v26 = vpop.permute.xlu0 %2759  ;;  %v2889_v45 = vadd.f32 %v2888_v15, %v2887_v12  ;;  %v8547_v12 = vld [vmem:[#allocation42_spill] sm:$0xff] }
 0x8e9   :  { %v2821_v46 = vmul.f32 %v2760_v26, %v8542_v30 }
 0x8ea   :  { %v4002_v23 = vsel %vm1449_vm13, %v2864_v33, %v4001_v47  ;;  %v2872_v31 = vrot.slane %v2871_v58, 2  ;;  %v2780_v33 = vpop.permute.xlu1 %2779 }
 0x8eb   :  { %v2879_v19 = vsel %vm2831_vm2, %v2821_v46, 0.0 }
 0x8ec   :  { %v2873_v5 = vadd.f32 %v2872_v31, %v2871_v58  ;;  %v2880_v14 = vadd.f32 %v2879_v19, %v2878_v39  ;;  %v2785_v28 = vpop.permute.xlu0 %2784 }
 0x8ee   :  { %v2874_v1 = vrot.slane %v2873_v5, 1  ;;  %v2881_v61 = vrot.slane %v2880_v14, 4  ;;  %v2795_v26 = vpop.permute.xlu1 %2794 }
 0x8f0   :  { %v2875_v52 = vadd.f32 %v2874_v1, %v2873_v5  ;;  %v2882_v62 = vadd.f32 %v2881_v61, %v2880_v14  ;;  %v2775_v24 = vpop.permute.xlu0 %2774 }
 0x8f1   :  { %v2824_v38 = vmul.f32 %v2775_v24, %v8545_v54 }
 0x8f2   :  { %v2883_v20 = vrot.slane %v2882_v62, 2  ;;  %v4003_v47 = vsel %vm1451_vm3, %v2875_v52, %v4002_v23 }
 0x8f3   :  { %v2890_v0 = vsel %vm2831_vm2, %v2824_v38, 0.0  ;;  %v2826_v38 = vmul.f32 %v2785_v28, %v8547_v12 }
 0x8f4   :  { %v2884_v55 = vadd.f32 %v2883_v20, %v2882_v62  ;;  %v2891_v6 = vadd.f32 %v2890_v0, %v2889_v45  ;;  %v2800_v58 = vpop.permute.xlu0 %2799  ;;  %v8546_v62 = vld [vmem:[#allocation40_spill] sm:$0xff] }
 0x8f5   :  { %v2825_v24 = vmul.f32 %v2780_v33, %v8546_v62 }
 0x8f6   :  { %v2885_v59 = vrot.slane %v2884_v55, 1  ;;  %v2892_v4 = vrot.slane %v2891_v6, 4 }
 0x8f8   :  { %v2886_v37 = vadd.f32 %v2885_v59, %v2884_v55  ;;  %v2893_v17 = vadd.f32 %v2892_v4, %v2891_v6  ;;  %v2790_v9 = vpop.permute.xlu0 %2789  ;;  %v8548_v55 = vld [vmem:[#allocation44_spill] sm:$0xff]  ;;  %v2898_v4 = vsel %vm2831_vm2, %v2825_v24, 0.0 }
 0x8f9   :  { %v2829_v6 = vmul.f32 %v2800_v58, %v8548_v55 }
 0x8fa   :  { %v2894_v51 = vrot.slane %v2893_v17, 2  ;;  %v4004_v29 = vsel %vm1453_vm14, %v2886_v37, %v4003_v47 }
 0x8fc   :  { %v2895_v53 = vadd.f32 %v2894_v51, %v2893_v17  ;;  %v8549_v51 = vld [vmem:[#allocation47_spill] sm:$0xff] }
 0x8fe   :  { %v2896_v42 = vrot.slane %v2895_v53, 1 }
 0x900   :  { %v2897_v60 = vadd.f32 %v2896_v42, %v2895_v53 }
 0x902   :  { %v7819_v48 = vsel %vm1455_vm0, %v2897_v60, %v4004_v29  ;;  %v2899_v29 = vsel %vm2831_vm2, %v2826_v38, 0.0 }
 0x90f   :  { %v3763_v46 = vpop.permute.xlu0 %3762  ;;  %v3768_v23 = vpop.permute.xlu1 %3767 }
 0x910   :  { %v3880_v45 = vmul.f32 %v3763_v46, %v8527_v34  ;;  %v3881_v0 = vmul.f32 %v3768_v23, %v8528_v11  ;;  %v2828_v34 = vmul.f32 %v2795_v26, %v8549_v51 }
 0x912   :  { %v3905_v53 = vsel %vm3904_vm8, %v3880_v45, 0.0 }
 0x913   :  { %v3778_v39 = vpop.permute.xlu0 %3777  ;;  %v3783_v22 = vpop.permute.xlu1 %3782 }
 0x914   :  { %v3883_v59 = vmul.f32 %v3778_v39, %v8529_v21  ;;  %v3884_v37 = vmul.f32 %v3783_v22, %v8530_v7  ;;  %v3906_v21 = vsel %vm3904_vm8, %v3881_v0, 0.0  ;;  %v8550_v22 = vld [vmem:[#allocation45_spill] sm:$0xff] }
 0x916   :  { %v3916_v58 = vsel %vm3904_vm8, %v3883_v59, 0.0 }
 0x917   :  { %v3793_v31 = vpop.permute.xlu0 %3792  ;;  %v3798_v50 = vpop.permute.xlu1 %3797 }
 0x918   :  { %v3886_v17 = vmul.f32 %v3793_v31, %v8531_v27  ;;  %v3887_v28 = vmul.f32 %v3798_v50, %v8532_v32  ;;  %v2910_v32 = vsel %vm2831_vm2, %v2829_v6, 0.0  ;;  %v3907_v31 = vadd.f32 %v3906_v21, %v3905_v53 }
 0x919   :  { %v2900_v21 = vadd.f32 %v2899_v29, %v2898_v4 }
 0x91a   :  { %v3927_v23 = vsel %vm3904_vm8, %v3886_v17, 0.0  ;;  %v3928_v39 = vsel %vm3904_vm8, %v3887_v28, 0.0 }
 0x91b   :  { %v3773_v19 = vpop.permute.xlu0 %3772  ;;  %v3788_v5 = vpop.permute.xlu1 %3787 }
 0x91c   :  { %v3882_v11 = vmul.f32 %v3773_v19, %v8533_v10  ;;  %v3885_v33 = vmul.f32 %v3788_v5, %v8534_v63  ;;  %v3917_v10 = vsel %vm3904_vm8, %v3884_v37, 0.0 }
 0x91f   :  { %v3808_v14 = vpop.permute.xlu0 %3807  ;;  %v3813_v56 = vpop.permute.xlu1 %3812 }
 0x920   :  { %v3889_v7 = vmul.f32 %v3808_v14, %v8535_v43  ;;  %v3890_v27 = vmul.f32 %v3813_v56, %v8536_v41  ;;  %v2827_v43 = vmul.f32 %v2790_v9, %v8550_v22  ;;  %v3908_v41 = vsel %vm3904_vm8, %v3882_v11, 0.0 }
 0x921   :  { %v3909_v24 = vadd.f32 %v3908_v41, %v3907_v31  ;;  %v2909_v11 = vsel %vm2831_vm2, %v2828_v34, 0.0 }
 0x922   :  { %v3939_v14 = vsel %vm3904_vm8, %v3890_v27, 0.0  ;;  %v2901_v37 = vsel %vm2831_vm2, %v2827_v43, 0.0 }
 0x923   :  { %v3823_v1 = vpop.permute.xlu0 %3822  ;;  %v3803_v61 = vpop.permute.xlu1 %3802 }
 0x924   :  { %v3888_v26 = vmul.f32 %v3803_v61, %v8537_v18  ;;  %v3892_v50 = vmul.f32 %v3823_v1, %v8541_v49  ;;  %v3919_v18 = vsel %vm3904_vm8, %v3885_v33, 0.0  ;;  %v3918_v61 = vadd.f32 %v3917_v10, %v3916_v58  ;;  %v8551_v1 = vld [vmem:[#allocation46_spill] sm:$0xff] }
 0x925   :  { %v2911_v58 = vadd.f32 %v2910_v32, %v2909_v11 }
 0x926   :  { %v3949_v6 = vsel %vm3904_vm8, %v3892_v50, 0.0 }
 0x927   :  { %v3838_v15 = vpop.permute.xlu0 %3837  ;;  %v3828_v52 = vpop.permute.xlu1 %3827 }
 0x928   :  { %v3893_v46 = vmul.f32 %v3828_v52, %v8540_v8  ;;  %v3938_v8 = vsel %vm3904_vm8, %v3889_v7, 0.0  ;;  %v3929_v52 = vadd.f32 %v3928_v39, %v3927_v23  ;;  %v3895_v28 = vmul.f32 %v3838_v15, %v8544_v36 }
 0x929   :  { %v3940_v0 = vadd.f32 %v3939_v14, %v3938_v8 }
 0x92a   :  { %v3950_v9 = vsel %vm3904_vm8, %v3893_v46, 0.0  ;;  %v3960_v39 = vsel %vm3904_vm8, %v3895_v28, 0.0 }
 0x92b   :  { %v7824_v20 = vpop.permute.xlu0 %3852  ;;  %v3818_v47 = vpop.permute.xlu1 %3817  ;;  %v3951_v53 = vadd.f32 %v3950_v9, %v3949_v6 }
 0x92c   :  { %v3891_v63 = vmul.f32 %v3818_v47, %v8539_v35  ;;  %v3930_v35 = vsel %vm3904_vm8, %v3888_v26, 0.0  ;;  %v3920_v47 = vadd.f32 %v3919_v18, %v3918_v61  ;;  %v2902_v26 = vadd.f32 %v2901_v37, %v2900_v21 }
 0x92d   :  { %v3931_v17 = vadd.f32 %v3930_v35, %v3929_v52  ;;  %v3898_v18 = vmul.f32 %v7824_v20, %v8546_v62 }
 0x92e   :  { %v3941_v38 = vsel %vm3904_vm8, %v3891_v63, 0.0  ;;  %v3921_v46 = vrot.slane %v3920_v47, 4  ;;  %v2903_v41 = vrot.slane %v2902_v26, 4 }
 0x92f   :  { %v7837_v42 = vpop.permute.xlu0 %3867  ;;  %v3843_v60 = vpop.permute.xlu1 %3842  ;;  %v3942_v33 = vadd.f32 %v3941_v38, %v3940_v0  ;;  %v3932_v23 = vrot.slane %v3931_v17, 4 }
 0x930   :  { %v3896_v49 = vmul.f32 %v3843_v60, %v8543_v40  ;;  %v3910_v40 = vrot.slane %v3909_v24, 4  ;;  %v3922_v50 = vadd.f32 %v3921_v46, %v3920_v47  ;;  %v3901_v47 = vmul.f32 %v7837_v42, %v8549_v51 }
 0x931   :  { %v3943_v15 = vrot.slane %v3942_v33, 4 }
 0x932   :  { %v3961_v60 = vsel %vm3904_vm8, %v3896_v49, 0.0  ;;  %v3911_v4 = vadd.f32 %v3910_v40, %v3909_v24  ;;  %v3923_v9 = vrot.slane %v3922_v50, 2  ;;  %v3982_v40 = vsel %vm3904_vm8, %v3901_v47, 0.0 }
 0x933   :  { %v2805_v19 = vpop.permute.xlu0 %2804  ;;  %v3833_v5 = vpop.permute.xlu1 %3832  ;;  %v3962_v63 = vadd.f32 %v3961_v60, %v3960_v39  ;;  %v3944_v8 = vadd.f32 %v3943_v15, %v3942_v33 }
 0x934   :  { %v3894_v56 = vmul.f32 %v3833_v5, %v8542_v30  ;;  %v2830_v45 = vmul.f32 %v2805_v19, %v8551_v1  ;;  %v3933_v5 = vadd.f32 %v3932_v23, %v3931_v17  ;;  %v3924_v17 = vadd.f32 %v3923_v9, %v3922_v50 }
 0x935   :  { %v3945_v20 = vrot.slane %v3944_v8, 2 }
 0x936   :  { %v3952_v59 = vsel %vm3904_vm8, %v3894_v56, 0.0  ;;  %v2912_v7 = vsel %vm2831_vm2, %v2830_v45, 0.0  ;;  %v3912_v56 = vrot.slane %v3911_v4, 2  ;;  %v3934_v49 = vrot.slane %v3933_v5, 2 }
 0x937   :  { %v3858_v30 = vpop.permute.xlu1 %3857  ;;  %v3953_v27 = vadd.f32 %v3952_v59, %v3951_v53  ;;  %v2913_v34 = vadd.f32 %v2912_v7, %v2911_v58  ;;  %v3971_v45 = vsel %vm3904_vm8, %v3898_v18, 0.0  ;;  %v3946_v42 = vadd.f32 %v3945_v20, %v3944_v8 }
 0x938   :  { %v3899_v43 = vmul.f32 %v3858_v30, %v8547_v12  ;;  %v2904_v12 = vadd.f32 %v2903_v41, %v2902_v26  ;;  %v3913_v59 = vadd.f32 %v3912_v56, %v3911_v4  ;;  %v3935_v33 = vadd.f32 %v3934_v49, %v3933_v5 }
 0x939   :  { %v3954_v29 = vrot.slane %v3953_v27, 4  ;;  %v2914_v14 = vrot.slane %v2913_v34, 4  ;;  %v3925_v46 = vrot.slane %v3924_v17, 1 }
 0x93a   :  { %v3972_v52 = vsel %vm3904_vm8, %v3899_v43, 0.0  ;;  %v2905_v21 = vrot.slane %v2904_v12, 2  ;;  %v3936_v15 = vrot.slane %v3935_v33, 1 }
 0x93b   :  { %v3848_v10 = vpop.permute.xlu1 %3847  ;;  %v3955_v61 = vadd.f32 %v3954_v29, %v3953_v27  ;;  %v2915_v0 = vadd.f32 %v2914_v14, %v2913_v34  ;;  %v3973_v6 = vadd.f32 %v3972_v52, %v3971_v45  ;;  %v3914_v27 = vrot.slane %v3913_v59, 1 }
 0x93c   :  { %v3897_v36 = vmul.f32 %v3848_v10, %v8545_v54  ;;  %v3937_v5 = vadd.f32 %v3936_v15, %v3935_v33  ;;  %v8555_v15 = vld [vmem:[#allocation27_spill] sm:$0xff] }
 0x93d   :  { %v3956_v30 = vrot.slane %v3955_v61, 2  ;;  %v3915_v43 = vadd.f32 %v3914_v27, %v3913_v59  ;;  %v8552_v27 = vld [vmem:[#allocation23_spill] sm:$0xff] }
 0x93e   :  { %v3963_v31 = vsel %vm3904_vm8, %v3897_v36, 0.0  ;;  %v2906_v36 = vadd.f32 %v2905_v21, %v2904_v12 }
 0x93f   :  { %v3964_v32 = vadd.f32 %v3963_v31, %v3962_v63  ;;  %v3873_v19 = vpop.permute.xlu1 %3872  ;;  %v3957_v58 = vadd.f32 %v3956_v30, %v3955_v61  ;;  %v3947_v63 = vrot.slane %v3946_v42, 1  ;;  %v3926_v31 = vadd.f32 %v3925_v46, %v3924_v17 }
 0x940   :  { %v3902_v35 = vmul.f32 %v3873_v19, %v8548_v55  ;;  %v2907_v19 = vrot.slane %v2906_v36, 1 }
 0x941   :  { %v3965_v54 = vrot.slane %v3964_v32, 4  ;;  %v3948_v18 = vadd.f32 %v3947_v63, %v3946_v42  ;;  %v4019_v61 = vsel %vm1447_vm12, %v3926_v31, %v3915_v43 }
 0x942   :  { %v3983_v37 = vsel %vm3904_vm8, %v3902_v35, 0.0  ;;  %v2908_v12 = vadd.f32 %v2907_v19, %v2906_v36  ;;  %v4020_v9 = vsel %vm1449_vm13, %v3937_v5, %v4019_v61 }
 0x943   :  { %v3966_v24 = vadd.f32 %v3965_v54, %v3964_v32  ;;  %v3863_v38 = vpop.permute.xlu1 %3862  ;;  %v3984_v60 = vadd.f32 %v3983_v37, %v3982_v40  ;;  %v4021_v45 = vsel %vm1451_vm3, %v3948_v18, %v4020_v9 }
 0x944   :  { %v3900_v62 = vmul.f32 %v3863_v38, %v8550_v22  ;;  %v2916_v22 = vrot.slane %v2915_v0, 2 }
 0x945   :  { %v3967_v28 = vrot.slane %v3966_v24, 2 }
 0x946   :  { %v3974_v55 = vsel %vm3904_vm8, %v3900_v62, 0.0  ;;  %v2917_v34 = vadd.f32 %v2916_v22, %v2915_v0  ;;  %v4006_v0 = vsel %vm1457_vm1, %v2908_v12, %v7819_v48 }
 0x947   :  { %v3975_v53 = vadd.f32 %v3974_v55, %v3973_v6  ;;  %v3878_v11 = vpop.permute.xlu1 %3877  ;;  %v3968_v10 = vadd.f32 %v3967_v28, %v3966_v24 }
 0x948   :  { %v3903_v51 = vmul.f32 %v3878_v11, %v8551_v1  ;;  %v3958_v1 = vrot.slane %v3957_v58, 1  ;;  %v2918_v8 = vrot.slane %v2917_v34, 1 }
 0x949   :  { %v3976_v7 = vrot.slane %v3975_v53, 4  ;;  %v3969_v41 = vrot.slane %v3968_v10, 1 }
 0x94a   :  { %v3985_v26 = vsel %vm3904_vm8, %v3903_v51, 0.0  ;;  %v3959_v56 = vadd.f32 %v3958_v1, %v3957_v58  ;;  %v2919_v49 = vadd.f32 %v2918_v8, %v2917_v34  ;;  %v8556_v34 = vld [vmem:[#allocation25_spill] sm:$0xff] }
 0x94b   :  { %v3977_v23 = vadd.f32 %v3976_v7, %v3975_v53  ;;  %v3986_v39 = vadd.f32 %v3985_v26, %v3984_v60  ;;  %v3970_v52 = vadd.f32 %v3969_v41, %v3968_v10  ;;  %v8553_v10 = vld [vmem:[#allocation24_spill] sm:$0xff]  ;;  %v8558_v41 = vld [vmem:[#allocation29_spill] sm:$0xff] }
 0x94c   :  { %v4022_v47 = vsel %vm1453_vm14, %v3959_v56, %v4021_v45  ;;  %v4007_v59 = vsel %vm1459_vm4, %v2919_v49, %v4006_v0 }
 0x94d   :  { %v3978_v4 = vrot.slane %v3977_v23, 2  ;;  %v3987_v29 = vrot.slane %v3986_v39, 4  ;;  %v4023_v20 = vsel %vm1455_vm0, %v3970_v52, %v4022_v47 }
 0x94f   :  { %v3979_v50 = vadd.f32 %v3978_v4, %v3977_v23  ;;  %v3988_v32 = vadd.f32 %v3987_v29, %v3986_v39  ;;  %v8554_v39 = vld [vmem:[#allocation26_spill] sm:$0xff]  ;;  %v8557_v29 = vld [vmem:[#allocation28_spill] sm:$0xff] }
 0x951   :  { %v3980_v14 = vrot.slane %v3979_v50, 1  ;;  %v3989_v54 = vrot.slane %v3988_v32, 2 }
 0x953   :  { %v3990_v35 = vadd.f32 %v3989_v54, %v3988_v32  ;;  %v3981_v24 = vadd.f32 %v3980_v14, %v3979_v50  ;;  %v8559_v32 = vld [vmem:[#allocation30_spill] sm:$0xff] }
 0x955   :  { %v3991_v38 = vrot.slane %v3990_v35, 1  ;;  %v4024_v6 = vsel %vm1457_vm1, %v3981_v24, %v4023_v20 }
 0x957   :  { %v3992_v62 = vadd.f32 %v3991_v38, %v3990_v35 }
 0x959   :  { %v4025_v30 = vsel %vm1459_vm4, %v3992_v62, %v4024_v6 }
 0x95a   :  { %v5358_v37 = vpack.i.bf16 %v4025_v30, %v4007_v59 }
 0x95c   :  { %5359 = vrot.lane.b32.xlu0 %v5358_v37, %s5743_s18 }
 0x9ce   :  { %v5360_v55 = vpop.permute.xlu0 %5359 }
 0x9cf   :  { %v5362_v17 = vunpack.i.h.bf16 %v5360_v55  ;;  %v5361_v28 = vunpack.i.l.bf16 %v5360_v55 }
 0x9d1   :  { %v4029_v53 = vsel %vm1648_vm5, %v5361_v28, %v5362_v17 }
 0x9d2   :  { %v4030_v11 = vpack.c.bf16 %v4029_v53, %v4029_v53 }
 0x9d4   :  { %5302 = vmatmul.mubr.msk.bf16.vlgmr.msra.gmra.mrb[24].mxu1 %vm695_vm15, %v4030_v11 }
 0xaa7   :  { %v4100_v21 = vpop.f32.mrb[24].mxu1 }
 0xaa8   :  { %v4107_v33 = vrot.slane %v4100_v21, 1  ;;  %v4108_v48 = vrot.slane %v4100_v21, 2  ;;  %v4109_v40 = vrot.slane %v4100_v21, 3  ;;  %v5303_v51 = vpop.f32.mrb[25].mxu1  ;;  %v4110_v22 = vrot.slane %v4100_v21, 4 }
 0xaa9   :  { %v4103_v42 = vpop.f32.mrb[26].mxu1  ;;  %v4111_v60 = vrot.slane %v4100_v21, 5  ;;  %v4112_v7 = vrot.slane %v4100_v21, 6  ;;  %v4113_v46 = vrot.slane %v4100_v21, 7  ;;  %v4122_v4 = vadd.f32 %v4100_v21, %v8556_v34 }
 0xaaa   :  { %v4123_v58 = vadd.f32 %v4107_v33, %v8552_v27  ;;  %v5304_v26 = vpop.f32.mrb[27].mxu1  ;;  %v4124_v23 = vadd.f32 %v4108_v48, %v8553_v10  ;;  %v4125_v36 = vadd.f32 %v4109_v40, %v8554_v39  ;;  %v4126_v63 = vadd.f32 %v4110_v22, %v8555_v15 }
 0xaab   :  { %v4127_v43 = vadd.f32 %v4111_v60, %v8557_v29  ;;  %v4128_v50 = vadd.f32 %v4112_v7, %v8558_v41  ;;  %v4129_v19 = vadd.f32 %v4113_v46, %v8559_v32  ;;  %v5375_v41 = vld [vmem:[%s8210_s7] ss:$8 sps:$4 sm:$0xff]   ;;  %v5380_v32 = vld [vmem:[%s8210_s7 + $0x14] ss:$8 sps:$4 sm:$0xff]  }
 0xaac   :  { %v4138_v1 = vrot.slane %v4123_v58, 7  ;;  %v4140_v31 = vrot.slane %v4124_v23, 6  ;;  %v4142_v18 = vrot.slane %v4125_v36, 5  ;;  %v4144_v14 = vrot.slane %v4126_v63, 4 }
 0xaad   :  { %v4146_v56 = vrot.slane %v4127_v43, 3  ;;  %v4148_v52 = vrot.slane %v4128_v50, 2  ;;  %v4150_v12 = vrot.slane %v4129_v19, 1 }
 0xaae   :  { %v4139_v5 = vsel %vm1447_vm12, %v4138_v1, %v4122_v4 }
 0xaaf   :  { %v4141_v8 = vsel %vm1449_vm13, %v4140_v31, %v4139_v5  ;;  %v5383_v5 = vld [vmem:[%s8210_s7 + $0x24] ss:$8 sps:$4 sm:$0xff]  }
 0xab0   :  { %v4143_v54 = vsel %vm1451_vm3, %v4142_v18, %v4141_v8  ;;  %v5381_v18 = vld [vmem:[%s8210_s7 + $0x20] ss:$8 sps:$4 sm:$0xff]   ;;  %v5386_v8 = vld [vmem:[%s8210_s7 + $0x34] ss:$8 sps:$4 sm:$0xff]  }
 0xab1   :  { %v4145_v61 = vsel %vm1453_vm14, %v4144_v14, %v4143_v54  ;;  %v5384_v14 = vld [vmem:[%s8210_s7 + $0x30] ss:$8 sps:$4 sm:$0xff]  }
 0xab2   :  { %v4147_v35 = vsel %vm1455_vm0, %v4146_v56, %v4145_v61 }
 0xab3   :  { %v4149_v9 = vsel %vm1457_vm1, %v4148_v52, %v4147_v35  ;;  %v7984_v35 = vld [vmem:[%s8206_s3] sm:$0xff] }
 0xab4   :  { %v4151_v24 = vsel %vm1459_vm4, %v4150_v12, %v4149_v9  ;;  %v7988_v12 = vrot.slane %v7984_v35, %v8420_v13  ;;  %v7992_v9 = vrot.slane %v7984_v35, %v8423_v57 }
 0xab5   :  { %v4153_v38 = vsel %vm695_vm15, %v4151_v24, 0.0 }
 0xab6   :  { %4154 = vadd.xlane.f32.xlu1 %v4153_v38 }
 0xb43   :  { %v4155_v49 = vpop.xlane.xlu1 %4154 }
 0xb44   :  { %v4156_v45 = vmul.f32 0.015625, %v4155_v49 }
 0xb46   :  { %v4158_v47 = vrot.slane %v4156_v45, 1  ;;  %v4159_v62 = vrot.slane %v4156_v45, 2  ;;  %v4160_v20 = vrot.slane %v4156_v45, 3  ;;  %v4161_v0 = vrot.slane %v4156_v45, 4 }
 0xb47   :  { %v4162_v6 = vrot.slane %v4156_v45, 5  ;;  %v4163_v59 = vrot.slane %v4156_v45, 6  ;;  %v4164_v30 = vrot.slane %v4156_v45, 7  ;;  %v7916_v37 = vsub.f32 %v4122_v4, %v4156_v45 }
 0xb48   :  { %v7918_v55 = vsub.f32 %v4123_v58, %v4158_v47  ;;  %v7920_v17 = vsub.f32 %v4124_v23, %v4159_v62  ;;  %v7922_v28 = vsub.f32 %v4125_v36, %v4160_v20  ;;  %v7924_v53 = vsub.f32 %v4126_v63, %v4161_v0 }
 0xb49   :  { %v7926_v11 = vsub.f32 %v4127_v43, %v4162_v6  ;;  %v7928_v21 = vsub.f32 %v4128_v50, %v4163_v59  ;;  %v7930_v33 = vsub.f32 %v4129_v19, %v4164_v30  ;;  %v4181_v22 = vmul.f32 %v7916_v37, %v7916_v37  ;;  %v5377_v50 = vld [vmem:[%s8210_s7 + $0x4] ss:$8 sps:$4 sm:$0xff]   ;;  %v5378_v19 = vld [vmem:[%s8210_s7 + $0x10] ss:$8 sps:$4 sm:$0xff]  }
 0xb4a   :  { %v4182_v48 = vmul.f32 %v7918_v55, %v7918_v55  ;;  %v4183_v40 = vmul.f32 %v7920_v17, %v7920_v17  ;;  %v4184_v51 = vmul.f32 %v7922_v28, %v7922_v28  ;;  %v4185_v42 = vmul.f32 %v7924_v53, %v7924_v53  ;;  %4364 = vmatprep.subr.bf16.mxu0 %v5377_v50 }
 0xb4b   :  { %v4186_v60 = vmul.f32 %v7926_v11, %v7926_v11  ;;  %v4187_v58 = vmul.f32 %v7928_v21, %v7928_v21  ;;  %v4188_v26 = vmul.f32 %v7930_v33, %v7930_v33  ;;  %4365 = vmatpush1.bf16.msra.mxu0 %v5375_v41 }
 0xb4c   :  { %v4197_v7 = vrot.slane %v4182_v48, 7  ;;  %v4199_v27 = vrot.slane %v4183_v40, 6  ;;  %v4201_v10 = vrot.slane %v4184_v51, 5  ;;  %v4203_v39 = vrot.slane %v4185_v42, 4  ;;  %4366 = vmatprep.subr.bf16.mxu0 %v5380_v32 }
 0xb4d   :  { %v4205_v15 = vrot.slane %v4186_v60, 3  ;;  %v4207_v34 = vrot.slane %v4187_v58, 2  ;;  %v4209_v29 = vrot.slane %v4188_v26, 1 }
 0xb4e   :  { %v4198_v46 = vsel %vm1447_vm12, %v4197_v7, %v4181_v22 }
 0xb4f   :  { %v4200_v23 = vsel %vm1449_vm13, %v4199_v27, %v4198_v46  ;;  %4367 = vmatpush1.bf16.msra.mxu0 %v5378_v19 }
 0xb50   :  { %v4202_v36 = vsel %vm1451_vm3, %v4201_v10, %v4200_v23  ;;  %4368 = vmatprep.subr.bf16.mxu0 %v5383_v5 }
 0xb51   :  { %v4204_v63 = vsel %vm1453_vm14, %v4203_v39, %v4202_v36 }
 0xb52   :  { %v4206_v4 = vsel %vm1455_vm0, %v4205_v15, %v4204_v63 }
 0xb53   :  { %v4208_v43 = vsel %vm1457_vm1, %v4207_v34, %v4206_v4  ;;  %4369 = vmatpush1.bf16.msra.mxu0 %v5381_v18 }
 0xb54   :  { %v4210_v1 = vsel %vm1459_vm4, %v4209_v29, %v4208_v43  ;;  %4370 = vmatprep.subr.bf16.mxu0 %v5386_v8 }
 0xb55   :  { %v4212_v31 = vsel %vm695_vm15, %v4210_v1, 0.0 }
 0xb56   :  { %4213 = vadd.xlane.f32.xlu0 %v4212_v31 }
 0xb57   :  { %4371 = vmatpush1.bf16.msra.mxu0 %v5384_v14 }
 0xb58   :  { %5305 = vmatprep.subr.bf16.mxu0 %v8538_v25 }
 0xbe3   :  { %v4214_v54 = vpop.xlane.xlu0 %4213 }
 0xbe4   :  { %v4215_v56 = vmul.f32 0.015625, %v4214_v54 }
 0xbe6   :  { %v4216_v61 = vadd.f32 1e-05, %v4215_v56 }
 0xbe8   :  { %5587 = vrsqrt.f32 %v4216_v61 }
 0xbf2   :  { %v5588_v52 = vpop.eup %5587 }
 0xbf3   :  { %v4219_v24 = vrot.slane %v5588_v52, 1  ;;  %v4220_v38 = vrot.slane %v5588_v52, 2  ;;  %v4221_v49 = vrot.slane %v5588_v52, 3  ;;  %v4222_v45 = vrot.slane %v5588_v52, 4 }
 0xbf4   :  { %v4223_v47 = vrot.slane %v5588_v52, 5  ;;  %v4224_v62 = vrot.slane %v5588_v52, 6  ;;  %v4225_v20 = vrot.slane %v5588_v52, 7  ;;  %v4234_v0 = vmul.f32 %v5588_v52, %v7916_v37 }
 0xbf5   :  { %v4235_v6 = vmul.f32 %v4219_v24, %v7918_v55  ;;  %v4236_v59 = vmul.f32 %v4220_v38, %v7920_v17  ;;  %v4237_v13 = vmul.f32 %v4221_v49, %v7922_v28  ;;  %v4238_v30 = vmul.f32 %v4222_v45, %v7924_v53 }
 0xbf6   :  { %v4239_v57 = vmul.f32 %v4223_v47, %v7926_v11  ;;  %v4240_v48 = vmul.f32 %v4224_v62, %v7928_v21  ;;  %v4241_v40 = vmul.f32 %v4225_v20, %v7930_v33  ;;  %v4246_v51 = vmul.f32 %v7988_v12, %v4234_v0  ;;  %v5387_v20 = vld [vmem:[%s8211_s8 + $0x40] sm:$0xff]  }
 0xbf7   :  { %v4247_v42 = vmul.f32 %v7988_v12, %v4235_v6  ;;  %v4248_v37 = vmul.f32 %v7988_v12, %v4236_v59  ;;  %v4249_v55 = vmul.f32 %v7988_v12, %v4237_v13  ;;  %v4250_v17 = vmul.f32 %v7988_v12, %v4238_v30  ;;  %v5388_v0 = vld [vmem:[%s8211_s8] sm:$0xff]   ;;  %v5389_v6 = vld [vmem:[%s8211_s8 + $0x48] sm:$0xff]   ;;  %5167 = vmatprep.subr.bf16.mxu1 %v5387_v20  ;;  %v5391_v13 = vld [vmem:[%s8211_s8 + $0x50] sm:$0xff]  }
 0xbf8   :  { %v4251_v28 = vmul.f32 %v7988_v12, %v4239_v57  ;;  %v4252_v53 = vmul.f32 %v7988_v12, %v4240_v48  ;;  %v4253_v11 = vmul.f32 %v7988_v12, %v4241_v40  ;;  %v8011_v21 = vadd.f32 %v7992_v9, %v4246_v51  ;;  %5168 = vmatpush3.bf16.msra.mxu1 %v5388_v0  ;;  %v5390_v59 = vld [vmem:[%s8211_s8 + $0x8] sm:$0xff]   ;;  %v5392_v30 = vld [vmem:[%s8211_s8 + $0x10] sm:$0xff]   ;;  %v5393_v57 = vld [vmem:[%s8211_s8 + $0x58] sm:$0xff]  }
 0xbf9   :  { %v8014_v33 = vadd.f32 %v7992_v9, %v4247_v42  ;;  %v8017_v22 = vadd.f32 %v7992_v9, %v4248_v37  ;;  %v8020_v60 = vadd.f32 %v7992_v9, %v4249_v55  ;;  %v8023_v7 = vadd.f32 %v7992_v9, %v4250_v17  ;;  %5169 = vmatprep.subr.bf16.mxu1 %v5389_v6  ;;  %v5394_v48 = vld [vmem:[%s8211_s8 + $0x18] sm:$0xff]   ;;  %v5395_v40 = vld [vmem:[%s8211_s8 + $0x60] sm:$0xff]   ;;  %v5397_v42 = vld [vmem:[%s8211_s8 + $0x68] sm:$0xff]  }
 0xbfa   :  { %v8026_v27 = vadd.f32 %v7992_v9, %v4251_v28  ;;  %v8029_v58 = vadd.f32 %v7992_v9, %v4252_v53  ;;  %v8032_v26 = vadd.f32 %v7992_v9, %v4253_v11  ;;  %v4266_v46 = vpack.c.bf16 %v8011_v21, %v8011_v21  ;;  %v5396_v51 = vld [vmem:[%s8211_s8 + $0x20] sm:$0xff]   ;;  %v5398_v37 = vld [vmem:[%s8211_s8 + $0x28] sm:$0xff]   ;;  %v5399_v55 = vld [vmem:[%s8211_s8 + $0x70] sm:$0xff]  }
 0xbfb   :  { %v4267_v10 = vpack.c.bf16 %v8014_v33, %v8014_v33  ;;  %v4268_v23 = vpack.c.bf16 %v8017_v22, %v8017_v22  ;;  %v4269_v39 = vpack.c.bf16 %v8020_v60, %v8020_v60  ;;  %v4270_v36 = vpack.c.bf16 %v8023_v7, %v8023_v7  ;;  %v5400_v17 = vld [vmem:[%s8211_s8 + $0x30] sm:$0xff]   ;;  %v5401_v28 = vld [vmem:[%s8211_s8 + $0x78] sm:$0xff]   ;;  %v107_v11 = vld [vmem:[%s8206_s3 + $0x8] sm:$0xff] }
 0xbfc   :  { %v4271_v15 = vpack.c.bf16 %v8026_v27, %v8026_v27  ;;  %v4272_v63 = vpack.c.bf16 %v8029_v58, %v8029_v58  ;;  %v4273_v34 = vpack.c.bf16 %v8032_v26, %v8032_v26  ;;  %v4298_v31 = vunpack.c.l.b16 %v4266_v46  ;;  %5170 = vmatpush3.bf16.msra.mxu1 %v5390_v59  ;;  %v5402_v53 = vld [vmem:[%s8211_s8 + $0x38] sm:$0xff]  }
 0xbfd   :  { %v4299_v4 = vunpack.c.l.b16 %v4267_v10  ;;  %v4300_v29 = vunpack.c.l.b16 %v4268_v23  ;;  %v4301_v43 = vunpack.c.l.b16 %v4269_v39  ;;  %v4302_v1 = vunpack.c.l.b16 %v4270_v36  ;;  %5171 = vmatprep.subr.bf16.mxu1 %v5391_v13 }
 0xbfe   :  { %v4303_v41 = vunpack.c.l.b16 %v4271_v15  ;;  %v4304_v19 = vunpack.c.l.b16 %v4272_v63  ;;  %v4305_v5 = vunpack.c.l.b16 %v4273_v34  ;;  %v4285_v46 = vrot.slane %v7984_v35, %v8424_v16 }
 0xbff   :  { %v4306_v50 = vrot.slane %v4299_v4, 7  ;;  %v4308_v32 = vrot.slane %v4300_v29, 6  ;;  %v4310_v8 = vrot.slane %v4301_v43, 5  ;;  %v4312_v54 = vrot.slane %v4302_v1, 4 }
 0xc00   :  { %v4314_v61 = vrot.slane %v4303_v41, 3  ;;  %v4316_v24 = vrot.slane %v4304_v19, 2  ;;  %v4318_v49 = vrot.slane %v4305_v5, 1  ;;  %5172 = vmatpush3.bf16.msra.mxu1 %v5392_v30  ;;  %v4289_v10 = vrot.slane %v107_v11, %v8424_v16 }
 0xc01   :  { %v4307_v18 = vsel %vm1447_vm12, %v4306_v50, %v4298_v31  ;;  %5173 = vmatprep.subr.bf16.mxu1 %v5393_v57 }
 0xc02   :  { %v4309_v14 = vsel %vm1449_vm13, %v4308_v32, %v4307_v18 }
 0xc03   :  { %v4311_v56 = vsel %vm1451_vm3, %v4310_v8, %v4309_v14 }
 0xc04   :  { %v4313_v52 = vsel %vm1453_vm14, %v4312_v54, %v4311_v56  ;;  %5174 = vmatpush3.bf16.msra.mxu1 %v5394_v48 }
 0xc05   :  { %v4315_v38 = vsel %vm1455_vm0, %v4314_v61, %v4313_v52  ;;  %5175 = vmatprep.subr.bf16.mxu1 %v5395_v40 }
 0xc06   :  { %v4317_v45 = vsel %vm1457_vm1, %v4316_v24, %v4315_v38 }
 0xc07   :  { %v4319_v47 = vsel %vm1459_vm4, %v4318_v49, %v4317_v45  ;;  %v4460_v45 = vrot.slane %v7984_v35, %v8425_v44 }
 0xc08   :  { %v4320_v62 = vpack.c.b16 %v4319_v47, %v4319_v47  ;;  %5176 = vmatpush3.bf16.msra.mxu1 %v5396_v51 }
 0xc09   :  { %5177 = vmatprep.subr.bf16.mxu1 %v5397_v42 }
 0xc0a   :  { %5083 = vmatmul.mubr.msk.bf16.vlgmr.msra.gmra.mrb[28].mxu0 %vm695_vm15, %v4320_v62 }
 0xc0b   :  { %5313 = vmatprep.mubr.msk.bf16.mxu0 %vm5748_vm10, %v8538_v25 }
 0xc0c   :  { %5178 = vmatpush3.bf16.msra.mxu1 %v5398_v37 }
 0xc0d   :  { %5179 = vmatprep.subr.bf16.mxu1 %v5399_v55 }
 0xc10   :  { %5180 = vmatpush3.bf16.msra.mxu1 %v5400_v17 }
 0xc11   :  { %5181 = vmatprep.subr.bf16.mxu1 %v5401_v28 }
 0xc14   :  { %5182 = vmatpush3.bf16.msra.mxu1 %v5402_v53 }
 0xcdd   :  { %v4398_v23 = vpop.f32.mrb[28].mxu0 }
 0xcde   :  { %v4399_v39 = vadd.f32 %v4398_v23, %v4285_v46  ;;  %v4400_v36 = vpop.f32.mrb[29].mxu0 }
 0xcdf   :  { %v4401_v15 = vadd.f32 %v4400_v36, %v4289_v10  ;;  %v4402_v63 = vpop.f32.mrb[30].mxu0 }
 0xce0   :  { %v4407_v34 = vmul.f32 0.044715, %v4399_v39  ;;  %v4403_v4 = vpop.f32.mrb[31].mxu0  ;;  %v4405_v8 = vmul.f32 0.5, %v4399_v39 }
 0xce1   :  { %v4408_v29 = vmul.f32 0.044715, %v4401_v15  ;;  %v4406_v54 = vmul.f32 0.5, %v4401_v15 }
 0xce2   :  { %v4409_v43 = vmul.f32 %v4407_v34, %v4399_v39 }
 0xce3   :  { %v4410_v1 = vmul.f32 %v4408_v29, %v4401_v15 }
 0xce4   :  { %v4411_v31 = vmul.f32 %v4409_v43, %v4399_v39 }
 0xce5   :  { %v4412_v41 = vmul.f32 %v4410_v1, %v4401_v15 }
 0xce6   :  { %v4413_v50 = vadd.f32 %v4411_v31, %v4399_v39 }
 0xce7   :  { %v4414_v32 = vadd.f32 %v4412_v41, %v4401_v15 }
 0xce8   :  { %v4415_v19 = vmul.f32 0.7978846, %v4413_v50 }
 0xce9   :  { %v4416_v5 = vmul.f32 0.7978846, %v4414_v32 }
 0xcea   :  { %5589 = vtanh.f32 %v4415_v19 }
 0xceb   :  { %5591 = vtanh.f32 %v4416_v5 }
 0xcf4   :  { %v5590_v18 = vpop.eup %5589 }
 0xcf5   :  { %v5592_v16 = vpop.eup %5591  ;;  %v4419_v14 = vadd.f32 1.0, %v5590_v18 }
 0xcf6   :  { %v4420_v56 = vadd.f32 1.0, %v5592_v16 }
 0xcf7   :  { %v4421_v61 = vmul.f32 %v4419_v14, %v4405_v8 }
 0xcf8   :  { %v4422_v52 = vmul.f32 %v4420_v56, %v4406_v54 }
 0xcf9   :  { %v4423_v38 = vpack.c.bf16 %v4421_v61, %v4421_v61 }
 0xcfa   :  { %v4424_v24 = vpack.c.bf16 %v4422_v52, %v4422_v52 }
 0xcfc   :  { %4589 = vmatprep.mubr.bf16.mxu1 %v4424_v24 }
 0xcfd   :  { %4590 = vmatmul.mubr.bf16.vlgmr.msra.gmra.mrb[28].mxu1 %v4423_v38 }
 0xdd0   :  { %v5183_v49 = vpop.f32.mrb[28].mxu1 }
 0xdd1   :  { %v5184_v47 = vpop.f32.mrb[29].mxu1 }
 0xdd2   :  { %v5185_v62 = vadd.f32 %v5184_v47, %v5183_v49  ;;  %v5186_v20 = vpop.f32.mrb[30].mxu1 }
 0xdd3   :  { %v5187_v0 = vpop.f32.mrb[31].mxu1 }
 0xdd4   :  { %v4592_v6 = vadd.f32 %v5185_v62, %v4460_v45 }
 0xdd6   :  { %v4598_v59 = vrot.slane %v4592_v6, 1  ;;  %v4599_v13 = vrot.slane %v4592_v6, 2  ;;  %v4600_v30 = vrot.slane %v4592_v6, 3  ;;  %v4601_v57 = vrot.slane %v4592_v6, 4 }
 0xdd7   :  { %v4602_v48 = vrot.slane %v4592_v6, 5  ;;  %v4603_v40 = vrot.slane %v4592_v6, 6  ;;  %v4604_v51 = vrot.slane %v4592_v6, 7  ;;  %v4613_v35 = vadd.f32 %v4592_v6, %v8011_v21 }
 0xdd8   :  { %v4614_v42 = vadd.f32 %v4598_v59, %v8014_v33  ;;  %v4615_v37 = vadd.f32 %v4599_v13, %v8017_v22  ;;  %v4616_v55 = vadd.f32 %v4600_v30, %v8020_v60  ;;  %v4617_v44 = vadd.f32 %v4601_v57, %v8023_v7 }
 0xdd9   :  { %v4618_v17 = vadd.f32 %v4602_v48, %v8026_v27  ;;  %v4619_v11 = vadd.f32 %v4603_v40, %v8029_v58  ;;  %v4620_v46 = vadd.f32 %v4604_v51, %v8032_v26 }
 0xdda   :  { %v4629_v28 = vrot.slane %v4614_v42, 7  ;;  %v4631_v53 = vrot.slane %v4615_v37, 6  ;;  %v4633_v23 = vrot.slane %v4616_v55, 5  ;;  %v4635_v22 = vrot.slane %v4617_v44, 4 }
 0xddb   :  { %v4637_v39 = vrot.slane %v4618_v17, 3  ;;  %v4639_v21 = vrot.slane %v4619_v11, 2  ;;  %v4641_v36 = vrot.slane %v4620_v46, 1 }
 0xddc   :  { %v4630_v10 = vsel %vm1447_vm12, %v4629_v28, %v4613_v35  ;;  %v5405_v28 = vld [vmem:[%s8212_s9 + $0x10] sm:$0xff]  }
 0xddd   :  { %v4632_v33 = vsel %vm1449_vm13, %v4631_v53, %v4630_v10  ;;  %v5406_v53 = vld [vmem:[%s8212_s9 + $0x18] sm:$0xff]  }
 0xdde   :  { %v4634_v60 = vsel %vm1451_vm3, %v4633_v23, %v4632_v33 }
 0xddf   :  { %v4636_v7 = vsel %vm1453_vm14, %v4635_v22, %v4634_v60 }
 0xde0   :  { %v4638_v27 = vsel %vm1455_vm0, %v4637_v39, %v4636_v7 }
 0xde1   :  { %v4640_v15 = vsel %vm1457_vm1, %v4639_v21, %v4638_v27 }
 0xde2   :  { %v4642_v58 = vsel %vm1459_vm4, %v4641_v36, %v4640_v15 }
 0xde3   :  { %v4644_v26 = vsel %vm695_vm15, %v4642_v58, 0.0 }
 0xde4   :  { %4645 = vadd.xlane.f32.xlu0 %v4644_v26 }
 0xe71   :  { %v4646_v63 = vpop.xlane.xlu0 %4645 }
 0xe72   :  { %v4647_v34 = vmul.f32 0.015625, %v4646_v63 }
 0xe74   :  { %v4649_v4 = vrot.slane %v4647_v34, 1  ;;  %v4650_v29 = vrot.slane %v4647_v34, 2  ;;  %v4651_v43 = vrot.slane %v4647_v34, 3  ;;  %v4652_v1 = vrot.slane %v4647_v34, 4 }
 0xe75   :  { %v4653_v31 = vrot.slane %v4647_v34, 5  ;;  %v4654_v41 = vrot.slane %v4647_v34, 6  ;;  %v4655_v50 = vrot.slane %v4647_v34, 7  ;;  %v4664_v32 = vsub.f32 %v4613_v35, %v4647_v34  ;;  %v5403_v35 = vld [vmem:[%s8212_s9] sm:$0xff]  }
 0xe76   :  { %v4665_v19 = vsub.f32 %v4614_v42, %v4649_v4  ;;  %v4666_v5 = vsub.f32 %v4615_v37, %v4650_v29  ;;  %v4667_v18 = vsub.f32 %v4616_v55, %v4651_v43  ;;  %v4668_v16 = vsub.f32 %v4617_v44, %v4652_v1  ;;  %5306 = vmatpush3.bf16.msra.mxu0 %v5403_v35 }
 0xe77   :  { %v4669_v8 = vsub.f32 %v4618_v17, %v4653_v31  ;;  %v4670_v14 = vsub.f32 %v4619_v11, %v4654_v41  ;;  %v4671_v54 = vsub.f32 %v4620_v46, %v4655_v50  ;;  %v4672_v38 = vmul.f32 %v4664_v32, %v4664_v32  ;;  %v5404_v17 = vld [vmem:[%s8212_s9 + $0x8] sm:$0xff]   ;;  %5307 = vmatprep.subr.bf16.mxu0 %v8538_v25 }
 0xe78   :  { %v4673_v56 = vmul.f32 %v4665_v19, %v4665_v19  ;;  %v4674_v61 = vmul.f32 %v4666_v5, %v4666_v5  ;;  %v4675_v52 = vmul.f32 %v4667_v18, %v4667_v18  ;;  %v4676_v24 = vmul.f32 %v4668_v16, %v4668_v16 }
 0xe79   :  { %v4677_v49 = vmul.f32 %v4669_v8, %v4669_v8  ;;  %v4678_v62 = vmul.f32 %v4670_v14, %v4670_v14  ;;  %v4679_v20 = vmul.f32 %v4671_v54, %v4671_v54 }
 0xe7a   :  { %v4688_v45 = vrot.slane %v4673_v56, 7  ;;  %v4690_v47 = vrot.slane %v4674_v61, 6  ;;  %v4692_v6 = vrot.slane %v4675_v52, 5  ;;  %v4694_v13 = vrot.slane %v4676_v24, 4  ;;  %5308 = vmatpush3.bf16.msra.mxu0 %v5404_v17 }
 0xe7b   :  { %v4696_v57 = vrot.slane %v4677_v49, 3  ;;  %v4698_v40 = vrot.slane %v4678_v62, 2  ;;  %v4700_v42 = vrot.slane %v4679_v20, 1  ;;  %5309 = vmatprep.subr.bf16.mxu0 %v8538_v25 }
 0xe7c   :  { %v4689_v0 = vsel %vm1447_vm12, %v4688_v45, %v4672_v38 }
 0xe7d   :  { %v4691_v59 = vsel %vm1449_vm13, %v4690_v47, %v4689_v0 }
 0xe7e   :  { %v4693_v30 = vsel %vm1451_vm3, %v4692_v6, %v4691_v59  ;;  %5310 = vmatpush3.bf16.msra.mxu0 %v5405_v28 }
 0xe7f   :  { %v4695_v48 = vsel %vm1453_vm14, %v4694_v13, %v4693_v30  ;;  %5311 = vmatprep.subr.bf16.mxu0 %v8538_v25 }
 0xe80   :  { %v4697_v51 = vsel %vm1455_vm0, %v4696_v57, %v4695_v48 }
 0xe81   :  { %v4699_v37 = vsel %vm1457_vm1, %v4698_v40, %v4697_v51 }
 0xe82   :  { %v4701_v55 = vsel %vm1459_vm4, %v4700_v42, %v4699_v37  ;;  %5312 = vmatpush3.bf16.msra.mxu0 %v5406_v53 }
 0xe83   :  { %v4703_v44 = vsel %vm695_vm15, %v4701_v55, 0.0  ;;  %5317 = vmatprep.subr.bf16.mxu0 %v8538_v25 }
 0xe84   :  { %4704 = vadd.xlane.f32.xlu1 %v4703_v44 }
 0xf11   :  { %v4705_v11 = vpop.xlane.xlu1 %4704 }
 0xf12   :  { %v4706_v46 = vmul.f32 0.015625, %v4705_v11 }
 0xf14   :  { %v4707_v10 = vadd.f32 1e-05, %v4706_v46 }
 0xf16   :  { %5593 = vrsqrt.f32 %v4707_v10 }
 0xf20   :  { %v5594_v23 = vpop.eup %5593 }
 0xf21   :  { %v4710_v33 = vrot.slane %v5594_v23, 1  ;;  %v4711_v22 = vrot.slane %v5594_v23, 2  ;;  %v4712_v60 = vrot.slane %v5594_v23, 3  ;;  %v4713_v39 = vrot.slane %v5594_v23, 4 }
 0xf22   :  { %v4714_v7 = vrot.slane %v5594_v23, 5  ;;  %v4715_v21 = vrot.slane %v5594_v23, 6  ;;  %v4716_v27 = vrot.slane %v5594_v23, 7  ;;  %v4725_v36 = vmul.f32 %v5594_v23, %v4664_v32 }
 0xf23   :  { %v4726_v15 = vmul.f32 %v4710_v33, %v4665_v19  ;;  %v4727_v58 = vmul.f32 %v4711_v22, %v4666_v5  ;;  %v4728_v26 = vmul.f32 %v4712_v60, %v4667_v18  ;;  %v4729_v63 = vmul.f32 %v4713_v39, %v4668_v16  ;;  %v5407_v22 = vld [vmem:[#allocation10] sm:$0xff]   ;;  %v5408_v60 = vld [vmem:[#allocation10 + $0x8] sm:$0xff]   ;;  %v5409_v39 = vld [vmem:[#allocation10 + $0x10] sm:$0xff]  }
 0xf24   :  { %v4730_v34 = vmul.f32 %v4714_v7, %v4669_v8  ;;  %v4731_v4 = vmul.f32 %v4715_v21, %v4670_v14  ;;  %v4732_v29 = vmul.f32 %v4716_v27, %v4671_v54  ;;  %v4733_v43 = vmul.f32 %v4725_v36, %v7988_v12  ;;  %v5410_v7 = vld [vmem:[#allocation10 + $0x18] sm:$0xff]   ;;  %v108_v21 = vld [vmem:[%s8206_s3 + $0x10] sm:$0xff]  ;;  %s5752_s3 = smov [#allocation11]  }
 0xf25   :  { %v4734_v1 = vmul.f32 %v4726_v15, %v7988_v12  ;;  %v4735_v31 = vmul.f32 %v4727_v58, %v7988_v12  ;;  %v4736_v41 = vmul.f32 %v4728_v26, %v7988_v12  ;;  %v4737_v50 = vmul.f32 %v4729_v63, %v7988_v12  ;;  %s4963_s25 = sshll.u32 %s5752_s3, 4  ;;  %s4964_s25 = int_to_ptr.vmem [resolvable:$true] %s4963_s25 }
 0xf26   :  { %v4738_v56 = vmul.f32 %v4730_v34, %v7988_v12  ;;  %v4739_v32 = vmul.f32 %v4731_v4, %v7988_v12  ;;  %v4740_v19 = vmul.f32 %v4732_v29, %v7988_v12  ;;  %v4741_v5 = vadd.f32 %v4733_v43, %v7992_v9  ;;  %s5708_s26 = scalar_lea.vmem %s4964_s25, 128  ;;  %p5713_p13 = scmp.lt.s32.totalorder %s4964_s25, %s4964_s25 }
 0xf27   :  { %v4742_v18 = vadd.f32 %v4734_v1, %v7992_v9  ;;  %v4743_v16 = vadd.f32 %v4735_v31, %v7992_v9  ;;  %v4744_v8 = vadd.f32 %v4736_v41, %v7992_v9  ;;  %v4745_v14 = vadd.f32 %v4737_v50, %v7992_v9  ;;  %p5709_p12 = scmp.ne.s32.totalorder %s4964_s25, %s5708_s26  ;;  %p5714_p0 = scmp.lt.s32.totalorder %s5708_s26, %s5708_s26 }
 0xf28   :  { %v4746_v54 = vadd.f32 %v4738_v56, %v7992_v9  ;;  %v4747_v61 = vadd.f32 %v4739_v32, %v7992_v9  ;;  %v4748_v52 = vadd.f32 %v4740_v19, %v7992_v9  ;;  %v4749_v24 = vpack.c.bf16 %v4741_v5, %v4741_v5 }
 0xf29   :  { %v4750_v38 = vpack.c.bf16 %v4742_v18, %v4742_v18  ;;  %v4751_v49 = vpack.c.bf16 %v4743_v16, %v4743_v16  ;;  %v4752_v12 = vpack.c.bf16 %v4744_v8, %v4744_v8  ;;  %v4753_v45 = vpack.c.bf16 %v4745_v14, %v4745_v14  ;;  %p5715_p1 = por %p5714_p0, %p5713_p13 }
 0xf2a   :  { %v4754_v47 = vpack.c.bf16 %v4746_v54, %v4746_v54  ;;  %v4755_v62 = vpack.c.bf16 %v4747_v61, %v4747_v61  ;;  %v4756_v20 = vpack.c.bf16 %v4748_v52, %v4748_v52  ;;  %v4777_v30 = vunpack.c.l.b16 %v4749_v24 }
 0xf2b   :  { %v4778_v0 = vunpack.c.l.b16 %v4750_v38  ;;  %v4779_v6 = vunpack.c.l.b16 %v4751_v49  ;;  %v4780_v59 = vunpack.c.l.b16 %v4752_v12  ;;  %v4781_v13 = vunpack.c.l.b16 %v4753_v45  ;;  %p5716_p2 = pnand %p5715_p1, %p5709_p12 }
 0xf2c   :  { %v4782_v57 = vunpack.c.l.b16 %v4754_v47  ;;  %v4783_v51 = vunpack.c.l.b16 %v4755_v62  ;;  %v4784_v42 = vunpack.c.l.b16 %v4756_v20  ;;  %v4768_v27 = vrot.slane %v108_v21, %v5885_v2 }
 0xf2d   :  { %v4785_v48 = vrot.slane %v4778_v0, 7  ;;  %v4787_v40 = vrot.slane %v4779_v6, 6  ;;  %v4789_v37 = vrot.slane %v4780_v59, 5  ;;  %v4791_v44 = vrot.slane %v4781_v13, 4 }
 0xf2e   :  { %v4793_v17 = vrot.slane %v4782_v57, 3  ;;  %v4795_v53 = vrot.slane %v4783_v51, 2  ;;  %v4797_v46 = vrot.slane %v4784_v42, 1  ;;  %v4888_v2 = vrot.slane %v108_v21, %v5888_v3 }
 0xf2f   :  { %v4786_v9 = vsel %vm1447_vm12, %v4785_v48, %v4777_v30 }
 0xf30   :  { %v4788_v55 = vsel %vm1449_vm13, %v4787_v40, %v4786_v9 }
 0xf31   :  { %v4790_v35 = vsel %vm1451_vm3, %v4789_v37, %v4788_v55 }
 0xf32   :  { %v4792_v28 = vsel %vm1453_vm14, %v4791_v44, %v4790_v35 }
 0xf33   :  { %v4794_v11 = vsel %vm1455_vm0, %v4793_v17, %v4792_v28 }
 0xf34   :  { %v4796_v10 = vsel %vm1457_vm1, %v4795_v53, %v4794_v11 }
 0xf35   :  { %v4798_v23 = vsel %vm1459_vm4, %v4797_v46, %v4796_v10 }
 0xf36   :  { %v4799_v33 = vpack.c.b16 %v4798_v23, %v4798_v23 }
 0xf38   :  { %5314 = vmatmul.mubr.msk.bf16.vlgmr.msra.gmra.mrb[32].mxu0 %vm695_vm15, %v4799_v33 }
 0xf39   :  { %5325 = vmatprep.mubr.msk.bf16.mxu0 %vm5748_vm10, %v8538_v25  ;;  %5318 = vmatpush3.bf16.msra.mxu0 %v5407_v22 }
 0xf3a   :  { %5319 = vmatprep.subr.bf16.mxu0 %v8538_v25 }
 0xf3d   :  { %5320 = vmatpush3.bf16.msra.mxu0 %v5408_v60 }
 0xf3e   :  { %5321 = vmatprep.subr.bf16.mxu0 %v8538_v25 }
 0xf41   :  { %5322 = vmatpush3.bf16.msra.mxu0 %v5409_v39 }
 0xf42   :  { %5323 = vmatprep.subr.bf16.mxu0 %v8538_v25 }
 0xf45   :  { %5324 = vmatpush3.bf16.msra.mxu0 %v5410_v7 }
0x100b   :  { %v4861_v36 = vpop.f32.mrb[32].mxu0 }
0x100c   :  { %v4862_v15 = vadd.f32 %v4861_v36, %v4768_v27  ;;  %v5315_v58 = vpop.f32.mrb[33].mxu0 }
0x100d   :  { %v4864_v26 = vpop.f32.mrb[34].mxu0 }
0x100e   :  { %v4868_v63 = vmul.f32 0.044715, %v4862_v15  ;;  %v5316_v34 = vpop.f32.mrb[35].mxu0  ;;  %v4867_v25 = vmul.f32 0.5, %v4862_v15 }
0x1010   :  { %v4869_v4 = vmul.f32 %v4868_v63, %v4862_v15 }
0x1012   :  { %v4870_v29 = vmul.f32 %v4869_v4, %v4862_v15 }
0x1014   :  { %v4871_v43 = vadd.f32 %v4870_v29, %v4862_v15 }
0x1016   :  { %v4872_v1 = vmul.f32 0.7978846, %v4871_v43 }
0x1018   :  { %5595 = vtanh.f32 %v4872_v1 }
0x1022   :  { %v5596_v31 = vpop.eup %5595 }
0x1023   :  { %v4874_v41 = vadd.f32 1.0, %v5596_v31 }
0x1025   :  { %v4875_v50 = vmul.f32 %v4874_v41, %v4867_v25 }
0x1027   :  { %v4876_v56 = vpack.c.bf16 %v4875_v50, %v4875_v50 }
0x1029   :  { %5326 = vmatmul.mubr.msk.bf16.vlgmr.msra.gmra.mrb[36].mxu0 %vm695_vm15, %v4876_v56 }
0x10fc   :  { %v4950_v32 = vpop.f32.mrb[36].mxu0 }
0x10fd   :  { %v4951_v19 = vadd.f32 %v4950_v32, %v4888_v2  ;;  %v5327_v5 = vpop.f32.mrb[37].mxu0 }
0x10fe   :  { %v4953_v18 = vpop.f32.mrb[38].mxu0 }
0x10ff   :  { %4956 = vst [vmem:[#allocation11] sm:$0xff] %v4951_v19  ;;  %v5328_v16 = vpop.f32.mrb[39].mxu0 }
0x1100   :  { %5719 = shalt.err (!%p5716_p2)
}
0x1101   :  { %s5720_s29 = scalar_lea.hbm %s8214_s11, 128 }
0x1102   :  { %p5721_p3 = scmp.ne.s32.totalorder %s8214_s11, %s5720_s29  ;;  %p5724_p4 = scmp.lt.u32.totalorder %s5720_s29, %s8214_s11 }
0x1104   :  { %p5726_p5 = pnand %p5724_p4, %p5721_p3 }
0x1106   :  { %5729 = shalt.err (!%p5726_p5)
}
0x1107   :  { %4966 = dma.vmem_to_hbm [thread:$0]  %s4964_s25, 128, %s8214_s11, [#allocation4]  }
0x1108   :  { %5736 = dma.done.wait [#allocation4], 128  }
0x1109   :  { %5737 = vsyncadd [#allocation4], 4294967168 }
0x110a   :  { %4970 = vsyncpa [#allocation3], 1 }
0x110b   :  { %4971 = vsyncpa [#allocation6], 1 }
0x110c   :  { %4972 = vsyncpa [#allocation9], 1 }
0x110d   :  { %4973 = vsyncpa [#allocation4], 1 }

</bundles_post_ra>
